<compile_context>
chip_gen: v5e
topology: v5e:2x2
jax: 0.10.0
libtpu: 0.0.40
codegen_flags: <defaults>
</compile_context>

<pallas_src>
import jax
import jax.numpy as jnp
from jax.experimental import pallas as pl
from jax.experimental.pallas import tpu as pltpu

HIDDEN = 1024  # fixed by the PyTorch module definition


def _mi_kernel(x_ref, w1_ref, b1_ref, w2_ref, b2_ref, w3_ref, b3_ref, out_ref):
    # x_ref : (2B, Dpad) bf16, rows [0:B] = cat([x1, x2]),
    #                          rows [B:2B] = cat([roll(x1,1,0), x2])
    # w1_ref: (Dpad, HIDDEN)   bf16 (zero-padded input rows)
    # b1_ref: (1, HIDDEN)      f32
    # w2_ref: (HIDDEN, HIDDEN) bf16
    # b2_ref: (1, HIDDEN)      f32
    # w3_ref: (1, HIDDEN)      f32 (layer-3 weight as a row)
    # b3_ref: (1,)             f32 in SMEM
    # out_ref: (1, 128)        f32, lane 0 = mi_jsd, lane 1 = mi_nwj
    x = x_ref[...]                                                    # (2B, Dpad) bf16

    # Layer 1: bf16 x bf16 -> f32 MXU, bias + ReLU in f32.
    h1 = jnp.maximum(
        jnp.dot(x, w1_ref[...], preferred_element_type=jnp.float32) + b1_ref[...],
        0.0)                                                          # (2B, HIDDEN) f32

    # Layer 2: keep both MXU operands bf16 (the activation cast is tiny).
    h2 = jnp.maximum(
        jnp.dot(h1.astype(jnp.bfloat16), w2_ref[...],
                preferred_element_type=jnp.float32) + b2_ref[...],
        0.0)                                                          # (2B, HIDDEN) f32

    # Layer 3 (HIDDEN -> 1) via VPU multiply + lane (XLU) reduction, + SMEM bias.
    y = jnp.sum(h2 * w3_ref[...], axis=-1, keepdims=True) + b3_ref[0]  # (2B, 1)

    two_b = y.shape[0]
    b = two_b // 2
    pos = y[:b, :]                                                    # (B, 1)
    neg = y[b:, :]                                                    # (B, 1)

    softplus = lambda v: jnp.logaddexp(v, 0.0)                        # stable log(1+exp(v))
    mi_jsd = -jnp.mean(softplus(-pos)) - jnp.mean(softplus(neg))
    mi_nwj = jnp.mean(pos) - jnp.mean(jnp.exp(neg)) + 1.0

    lane = jax.lax.broadcasted_iota(jnp.int32, out_ref.shape, 1)
    out_ref[...] = jnp.where(lane == 0, mi_jsd,
                             jnp.where(lane == 1, mi_nwj, 0.0))


def prepare_params(params, in_dim):
    """One-time param prep: cache bf16 weights, pad W1's input rows to a
    128-lane multiple, reshape small tensors.  Do NOT call per forward pass."""
    w1, b1, w2, b2, w3, b3 = params
    d_pad = max(128, ((in_dim + 127) // 128) * 128)
    w1_pad = jnp.zeros((d_pad, HIDDEN), jnp.float32).at[:in_dim, :].set(
        w1.astype(jnp.float32))
    return {
        "d_pad": d_pad,
        "in_dim": in_dim,
        "w1": w1_pad.astype(jnp.bfloat16),                    # (Dpad, HIDDEN) bf16
        "b1": jnp.reshape(b1, (1, HIDDEN)).astype(jnp.float32),
        "w2": w2.astype(jnp.bfloat16),                        # (HIDDEN, HIDDEN) bf16
        "b2": jnp.reshape(b2, (1, HIDDEN)).astype(jnp.float32),
        "w3": jnp.reshape(w3, (1, HIDDEN)).astype(jnp.float32),
        "b3": jnp.reshape(b3, (1,)).astype(jnp.float32),
    }


def mi_estimator_forward(x1, x2, prepared):
    """Pallas equivalent of MIEstimator.forward(x1, x2) -> (mi_jsd, mi_nwj)."""
    pos_in = jnp.concatenate([x1, x2], axis=1)
    neg_in = jnp.concatenate([jnp.roll(x1, 1, axis=0), x2], axis=1)
    x = jnp.concatenate([pos_in, neg_in], axis=0).astype(jnp.float32)  # (2B, D)

    d = x.shape[1]
    d_pad = prepared["d_pad"]
    assert d == prepared["in_dim"]
    if d_pad != d:
        x = jnp.pad(x, ((0, 0), (0, d_pad - d)))                       # lane-dense x
    x_bf = x.astype(jnp.bfloat16)                                      # (2B, Dpad)

    out = pl.pallas_call(
        _mi_kernel,
        out_shape=jax.ShapeDtypeStruct((1, 128), jnp.float32),
        in_specs=[
            pl.BlockSpec(memory_space=pltpu.MemorySpace.VMEM),   # x
            pl.BlockSpec(memory_space=pltpu.MemorySpace.VMEM),   # w1 (bf16)
            pl.BlockSpec(memory_space=pltpu.MemorySpace.VMEM),   # b1
            pl.BlockSpec(memory_space=pltpu.MemorySpace.VMEM),   # w2 (bf16)
            pl.BlockSpec(memory_space=pltpu.MemorySpace.VMEM),   # b2
            pl.BlockSpec(memory_space=pltpu.MemorySpace.VMEM),   # w3 row
            pl.BlockSpec(memory_space=pltpu.MemorySpace.SMEM),   # b3 scalar
        ],
        out_specs=pl.BlockSpec(memory_space=pltpu.MemorySpace.VMEM),
        compiler_params=pltpu.CompilerParams(vmem_limit_bytes=16 << 20),
    )(x_bf, prepared["w1"], prepared["b1"], prepared["w2"], prepared["b2"],
      prepared["w3"], prepared["b3"])

    return out[0, 0], out[0, 1]


def init_params(key, size1, size2):
    """Deterministic synthetic init (PyTorch-Linear-like uniform bounds).

    Weights stored as (in_features, out_features) so the kernel does x @ W + b,
    equivalent to PyTorch's x @ W_torch.T + b.
    """
    d = size1 + size2
    k1, k2, k3 = jax.random.split(key, 3)

    def lin(k, fan_in, fan_out):
        kw, kb = jax.random.split(k)
        bound = 1.0 / jnp.sqrt(jnp.float32(fan_in))
        w = jax.random.uniform(kw, (fan_in, fan_out), jnp.float32, -bound, bound)
        b = jax.random.uniform(kb, (1, fan_out), jnp.float32, -bound, bound)
        return w, b

    w1, b1 = lin(k1, d, HIDDEN)
    w2, b2 = lin(k2, HIDDEN, HIDDEN)
    w3, b3 = lin(k3, HIDDEN, 1)
    return w1, b1, w2, b2, w3, b3


if __name__ == "__main__":
    key = jax.random.PRNGKey(0)
    k_x1, k_x2, k_p = jax.random.split(key, 3)

    size1, size2, batch = 32, 32, 8
    x1 = jax.random.normal(k_x1, (batch, size1), jnp.float32)
    x2 = jax.random.normal(k_x2, (batch, size2), jnp.float32)
    params = init_params(k_p, size1, size2)

    prepared = prepare_params(params, size1 + size2)   # one-time bf16 cast / pad
    mi_jsd, mi_nwj = mi_estimator_forward(x1, x2, prepared)
    jax.block_until_ready((mi_jsd, mi_nwj))

    # Pure-JAX reference mirroring the kernel's numerics (bf16 MXU operands,
    # f32 accumulation), so the comparison is apples-to-apples.  Bit-parity
    # with a pure-f32 PyTorch module is not targeted (bf16 weight streaming).
    def ref_forward(x1, x2, params):
        w1, b1, w2, b2, w3, b3 = params
        w1b = w1.astype(jnp.bfloat16)
        w2b = w2.astype(jnp.bfloat16)

        def net(z):
            zb = z.astype(jnp.bfloat16)
            h1 = jnp.maximum(
                jnp.dot(zb, w1b, preferred_element_type=jnp.float32) + b1, 0.0)
            h2 = jnp.maximum(
                jnp.dot(h1.astype(jnp.bfloat16), w2b,
                        preferred_element_type=jnp.float32) + b2, 0.0)
            return h2 @ w3 + b3

        pos = net(jnp.concatenate([x1, x2], 1))
        neg = net(jnp.concatenate([jnp.roll(x1, 1, 0), x2], 1))
        sp = jax.nn.softplus
        return (-jnp.mean(sp(-pos)) - jnp.mean(sp(neg)),
                jnp.mean(pos) - jnp.mean(jnp.exp(neg)) + 1.0)

    r1, r2 = ref_forward(x1, x2, params)
    assert jnp.isfinite(mi_jsd) and jnp.isfinite(mi_nwj)
    assert jnp.allclose(mi_jsd, r1, atol=5e-3, rtol=5e-3)
    assert jnp.allclose(mi_nwj, r2, atol=5e-3, rtol=5e-3)

    print("KERNEL_OK")
</pallas_src>

<mosaic_0001>
module attributes {stable_mosaic.version = 11 : i64} {
  func.func @_mi_kernel(%arg0: memref<16x128xbf16, #tpu.memory_space<vmem>>, %arg1: memref<128x1024xbf16, #tpu.memory_space<vmem>>, %arg2: memref<1x1024xf32, #tpu.memory_space<vmem>>, %arg3: memref<1024x1024xbf16, #tpu.memory_space<vmem>>, %arg4: memref<1x1024xf32, #tpu.memory_space<vmem>>, %arg5: memref<1x1024xf32, #tpu.memory_space<vmem>>, %arg6: memref<1xf32, #tpu.memory_space<smem>>, %arg7: memref<1x128xf32, #tpu.memory_space<vmem>>) attributes {dimension_semantics = [], scalar_prefetch = 0 : i64, scratch_operands = 0 : i64, tpu.core_type = #tpu.core_type<tc>} {
    %c0 = arith.constant 0 : index
    %c0_0 = arith.constant 0 : index
    %0 = vector.load %arg0[%c0, %c0_0] : memref<16x128xbf16, #tpu.memory_space<vmem>>, vector<16x128xbf16>
    %c0_1 = arith.constant 0 : index
    %c0_2 = arith.constant 0 : index
    %1 = vector.load %arg1[%c0_1, %c0_2] : memref<128x1024xbf16, #tpu.memory_space<vmem>>, vector<128x1024xbf16>
    %cst = arith.constant dense<0.000000e+00> : vector<16x1024xf32>
    %2 = tpu.matmul %0, %1, %cst {dimension_numbers = #tpu.dot_dimension_numbers<[1], [0], [0], [1], [0, 0, 1, 1], [], []>} : vector<16x128xbf16>, vector<128x1024xbf16>, vector<16x1024xf32> -> vector<16x1024xf32>
    %c0_3 = arith.constant 0 : index
    %c0_4 = arith.constant 0 : index
    %3 = vector.load %arg2[%c0_3, %c0_4] : memref<1x1024xf32, #tpu.memory_space<vmem>>, vector<1x1024xf32>
    %4 = vector.broadcast %3 : vector<1x1024xf32> to vector<16x1024xf32>
    %5 = arith.addf %2, %4 : vector<16x1024xf32>
    %cst_5 = arith.constant 0.000000e+00 : f32
    %6 = vector.broadcast %cst_5 : f32 to vector<16x1024xf32>
    %7 = arith.maximumf %5, %6 : vector<16x1024xf32>
    %8 = arith.truncf %7 : vector<16x1024xf32> to vector<16x1024xbf16>
    %c0_6 = arith.constant 0 : index
    %c0_7 = arith.constant 0 : index
    %9 = vector.load %arg3[%c0_6, %c0_7] : memref<1024x1024xbf16, #tpu.memory_space<vmem>>, vector<1024x1024xbf16>
    %cst_8 = arith.constant dense<0.000000e+00> : vector<16x1024xf32>
    %10 = tpu.matmul %8, %9, %cst_8 {dimension_numbers = #tpu.dot_dimension_numbers<[1], [0], [0], [1], [0, 0, 1, 1], [], []>} : vector<16x1024xbf16>, vector<1024x1024xbf16>, vector<16x1024xf32> -> vector<16x1024xf32>
    %c0_9 = arith.constant 0 : index
    %c0_10 = arith.constant 0 : index
    %11 = vector.load %arg4[%c0_9, %c0_10] : memref<1x1024xf32, #tpu.memory_space<vmem>>, vector<1x1024xf32>
    %12 = vector.broadcast %11 : vector<1x1024xf32> to vector<16x1024xf32>
    %13 = arith.addf %10, %12 : vector<16x1024xf32>
    %cst_11 = arith.constant 0.000000e+00 : f32
    %14 = vector.broadcast %cst_11 : f32 to vector<16x1024xf32>
    %15 = arith.maximumf %13, %14 : vector<16x1024xf32>
    %c0_12 = arith.constant 0 : index
    %c0_13 = arith.constant 0 : index
    %16 = vector.load %arg5[%c0_12, %c0_13] : memref<1x1024xf32, #tpu.memory_space<vmem>>, vector<1x1024xf32>
    %17 = vector.broadcast %16 : vector<1x1024xf32> to vector<16x1024xf32>
    %18 = arith.mulf %15, %17 : vector<16x1024xf32>
    %cst_14 = arith.constant dense<0.000000e+00> : vector<16xf32>
    %19 = vector.multi_reduction <add>, %18, %cst_14 [1] : vector<16x1024xf32> to vector<16xf32>
    %20 = vector.shape_cast %19 : vector<16xf32> to vector<16x1xf32>
    %c0_15 = arith.constant 0 : index
    %21 = memref.load %arg6[%c0_15] : memref<1xf32, #tpu.memory_space<smem>>
    %22 = vector.broadcast %21 : f32 to vector<16x1xf32>
    %23 = arith.addf %20, %22 : vector<16x1xf32>
    %24 = vector.extract_strided_slice %23 {offsets = [0, 0], sizes = [8, 1], strides = [1, 1]} : vector<16x1xf32> to vector<8x1xf32>
    %25 = vector.extract_strided_slice %23 {offsets = [8, 0], sizes = [8, 1], strides = [1, 1]} : vector<16x1xf32> to vector<8x1xf32>
    %cst_16 = arith.constant 0.000000e+00 : f32
    %26 = vector.broadcast %cst_16 : f32 to vector<8x1xf32>
    %27 = arith.subf %26, %24 : vector<8x1xf32>
    %cst_17 = arith.constant 0.000000e+00 : f32
    %28 = vector.broadcast %cst_17 : f32 to vector<8x1xf32>
    %29 = arith.maximumf %27, %28 : vector<8x1xf32>
    %30 = vector.broadcast %cst_17 : f32 to vector<8x1xf32>
    %31 = arith.subf %27, %30 : vector<8x1xf32>
    %32 = arith.cmpf one, %31, %31 : vector<8x1xf32>
    %33 = vector.broadcast %cst_17 : f32 to vector<8x1xf32>
    %34 = arith.addf %27, %33 : vector<8x1xf32>
    %35 = math.absf %31 : vector<8x1xf32>
    %cst_18 = arith.constant 0.000000e+00 : f32
    %36 = vector.broadcast %cst_18 : f32 to vector<8x1xf32>
    %37 = arith.subf %36, %35 : vector<8x1xf32>
    %38 = math.exp %37 : vector<8x1xf32>
    %39 = math.log1p %38 : vector<8x1xf32>
    %40 = arith.addf %29, %39 : vector<8x1xf32>
    %41 = arith.select %32, %34, %40 : vector<8x1xi1>, vector<8x1xf32>
    %42 = vector.shape_cast %41 : vector<8x1xf32> to vector<1x8x1xf32>
    %cst_19 = arith.constant dense<0.000000e+00> : vector<1xf32>
    %43 = vector.multi_reduction <add>, %42, %cst_19 [1, 2] : vector<1x8x1xf32> to vector<1xf32>
    %44 = vector.shape_cast %43 : vector<1xf32> to vector<1x1x1xf32>
    %45 = vector.extract %44[0, 0, 0] : f32 from vector<1x1x1xf32>
    %cst_20 = arith.constant 8.000000e+00 : f32
    %46 = arith.divf %45, %cst_20 : f32
    %cst_21 = arith.constant 0.000000e+00 : f32
    %47 = arith.subf %cst_21, %46 : f32
    %cst_22 = arith.constant 0.000000e+00 : f32
    %48 = vector.broadcast %cst_22 : f32 to vector<8x1xf32>
    %49 = arith.maximumf %25, %48 : vector<8x1xf32>
    %50 = vector.broadcast %cst_22 : f32 to vector<8x1xf32>
    %51 = arith.subf %25, %50 : vector<8x1xf32>
    %52 = arith.cmpf one, %51, %51 : vector<8x1xf32>
    %53 = vector.broadcast %cst_22 : f32 to vector<8x1xf32>
    %54 = arith.addf %25, %53 : vector<8x1xf32>
    %55 = math.absf %51 : vector<8x1xf32>
    %cst_23 = arith.constant 0.000000e+00 : f32
    %56 = vector.broadcast %cst_23 : f32 to vector<8x1xf32>
    %57 = arith.subf %56, %55 : vector<8x1xf32>
    %58 = math.exp %57 : vector<8x1xf32>
    %59 = math.log1p %58 : vector<8x1xf32>
    %60 = arith.addf %49, %59 : vector<8x1xf32>
    %61 = arith.select %52, %54, %60 : vector<8x1xi1>, vector<8x1xf32>
    %62 = vector.shape_cast %61 : vector<8x1xf32> to vector<1x8x1xf32>
    %cst_24 = arith.constant dense<0.000000e+00> : vector<1xf32>
    %63 = vector.multi_reduction <add>, %62, %cst_24 [1, 2] : vector<1x8x1xf32> to vector<1xf32>
    %64 = vector.shape_cast %63 : vector<1xf32> to vector<1x1x1xf32>
    %65 = vector.extract %64[0, 0, 0] : f32 from vector<1x1x1xf32>
    %cst_25 = arith.constant 8.000000e+00 : f32
    %66 = arith.divf %65, %cst_25 : f32
    %67 = arith.subf %47, %66 : f32
    %68 = vector.shape_cast %24 : vector<8x1xf32> to vector<1x8x1xf32>
    %cst_26 = arith.constant dense<0.000000e+00> : vector<1xf32>
    %69 = vector.multi_reduction <add>, %68, %cst_26 [1, 2] : vector<1x8x1xf32> to vector<1xf32>
    %70 = vector.shape_cast %69 : vector<1xf32> to vector<1x1x1xf32>
    %71 = vector.extract %70[0, 0, 0] : f32 from vector<1x1x1xf32>
    %cst_27 = arith.constant 8.000000e+00 : f32
    %72 = arith.divf %71, %cst_27 : f32
    %73 = math.exp %25 : vector<8x1xf32>
    %74 = vector.shape_cast %73 : vector<8x1xf32> to vector<1x8x1xf32>
    %cst_28 = arith.constant dense<0.000000e+00> : vector<1xf32>
    %75 = vector.multi_reduction <add>, %74, %cst_28 [1, 2] : vector<1x8x1xf32> to vector<1xf32>
    %76 = vector.shape_cast %75 : vector<1xf32> to vector<1x1x1xf32>
    %77 = vector.extract %76[0, 0, 0] : f32 from vector<1x1x1xf32>
    %cst_29 = arith.constant 8.000000e+00 : f32
    %78 = arith.divf %77, %cst_29 : f32
    %79 = arith.subf %72, %78 : f32
    %cst_30 = arith.constant 1.000000e+00 : f32
    %80 = arith.addf %79, %cst_30 : f32
    %81 = tpu.iota {dimensions = array<i32: 1>} : vector<1x128xi32>
    %c0_i32 = arith.constant 0 : i32
    %82 = vector.broadcast %c0_i32 : i32 to vector<1x128xi32>
    %83 = arith.cmpi eq, %81, %82 : vector<1x128xi32>
    %c1_i32 = arith.constant 1 : i32
    %84 = vector.broadcast %c1_i32 : i32 to vector<1x128xi32>
    %85 = arith.cmpi eq, %81, %84 : vector<1x128xi32>
    %cst_31 = arith.constant 0.000000e+00 : f32
    %86 = vector.broadcast %80 : f32 to vector<1x128xf32>
    %87 = vector.broadcast %cst_31 : f32 to vector<1x128xf32>
    %88 = arith.select %85, %86, %87 : vector<1x128xi1>, vector<1x128xf32>
    %89 = vector.broadcast %67 : f32 to vector<1x128xf32>
    %90 = arith.select %83, %89, %88 : vector<1x128xi1>, vector<1x128xf32>
    %c0_32 = arith.constant 0 : index
    %c0_33 = arith.constant 0 : index
    %91 = vector.load %arg7[%c0_32, %c0_33] : memref<1x128xf32, #tpu.memory_space<vmem>>, vector<1x128xf32>
    tpu.vector_store %arg7[%c0_32, %c0_33], %90 {strides = array<i32>} : memref<1x128xf32, #tpu.memory_space<vmem>>, vector<1x128xf32>,
    return
  }
}

</mosaic_0001>

<bundles_post_ra>
// kernel: tpu_custom_call.1
= control target key start
LH: loop header
LB: loop body
LE: loop exit
PB: predicated region body
PF: predicated region fallthrough
CT: control target
= control target key end

     0   :  { %13 = vsyncpa [#allocation4], 0  ;;  %s8304_s0 = inlined_call_operand.hbm [shape: bf16[16,128], index: 0, kind: input, shape index: {}]   ;;  %s8305_s1 = inlined_call_operand.hbm [shape: bf16[128,1024], index: 1, kind: input, shape index: {}]   ;;  %s8306_s2 = inlined_call_operand.hbm [shape: f32[1,1024], index: 2, kind: input, shape index: {}]   ;;  %s8307_s3 = inlined_call_operand.hbm [shape: bf16[1024,1024], index: 3, kind: input, shape index: {}]   ;;  %s8308_s4 = inlined_call_operand.hbm [shape: f32[1,1024], index: 4, kind: input, shape index: {}]   ;;  %s8309_s5 = inlined_call_operand.hbm [shape: f32[1,1024], index: 5, kind: input, shape index: {}]   ;;  %s8310_s6 = inlined_call_operand.<no memory space> [shape: f32[1], index: 6, kind: input, shape index: {}]   ;;  %s8311_s7 = inlined_call_operand.hbm [shape: f32[1,128], index: 7, kind: output, shape index: {}]  }
   0x1   :  { %14 = vsyncpa [#allocation7], 0 }
   0x2   :  { %15 = vsyncpa [#allocation10], 0 }
   0x3   :  { %16 = vsyncpa [#allocation13], 0  ;;  %s35_s26 = sshll.u32 %s8305_s1, 4  ;;  %s36_s26 = int_to_ptr.hbm [resolvable:$true] %s35_s26 }
   0x4   :  { %17 = vsyncpa [#allocation5], 0  ;;  %s7970_s27 = smov [#allocation6]   ;;  %s59_s8 = sshll.u32 %s8307_s3, 4  ;;  %s60_s8 = int_to_ptr.hbm [resolvable:$true] %s59_s8 }
   0x5   :  { %s37_s28 = sshll.u32 %s7970_s27, 4  ;;  %s7971_s9 = smov 512   ;;  %s38_s28 = int_to_ptr.vmem [resolvable:$true] %s37_s28 }
   0x6   :  { %s7972_s10 = smov 32   ;;  %s7973_s11 = smov [#allocation9]  }
   0x7   :  { %43 = dma.hbm_to_vmem [thread:$0]  %s36_s26, 8192, %s38_s28, [#allocation7], %s7971_s9, %s7971_s9, %s7972_s10  }
   0x8   :  { %s61_s12 = sshll.u32 %s7973_s11, 4  ;;  %s22_s15 = sshll.u32 %s8304_s0, 4  ;;  %s62_s12 = int_to_ptr.vmem [resolvable:$true] %s61_s12  ;;  %s23_s15 = int_to_ptr.hbm [resolvable:$true] %s22_s15 }
   0x9   :  { %67 = dma.hbm_to_vmem [thread:$0]  %s60_s8, 65536, %s62_s12, [#allocation10], %s7971_s9, %s7971_s9, %s7972_s10  }
   0xa   :  { %s7974_s1 = smov [#allocation3]   ;;  %s49_s3 = sshll.u32 %s8306_s2, 4  ;;  %s50_s3 = int_to_ptr.hbm [resolvable:$true] %s49_s3 }
   0xb   :  { %s24_s16 = sshll.u32 %s7974_s1, 4  ;;  %s7975_s19 = smov 64   ;;  %s25_s16 = int_to_ptr.vmem [resolvable:$true] %s24_s16 }
   0xc   :  { %s7976_s20 = smov 4   ;;  %s7977_s21 = smov [#allocation8]  }
   0xd   :  { %30 = dma.hbm_to_vmem [thread:$0]  %s23_s15, 128, %s25_s16, [#allocation4], %s7975_s19, %s7975_s19, %s7976_s20  }
   0xe   :  { %s51_s22 = sshll.u32 %s7977_s21, 4  ;;  %s73_s0 = sshll.u32 %s8308_s4, 4  ;;  %s52_s22 = int_to_ptr.vmem [resolvable:$true] %s51_s22  ;;  %s74_s0 = int_to_ptr.hbm [resolvable:$true] %s73_s0 }
   0xf   :  { %54 = dma.hbm_to_vmem [thread:$0]  %s50_s3, 128, %s52_s22, [#allocation7]  }
  0x10   :  { %s84_s27 = sshll.u32 %s8309_s5, 4  ;;  %s7978_s28 = smov [#allocation11]   ;;  %s85_s27 = int_to_ptr.hbm [resolvable:$true] %s84_s27 }
  0x11   :  { %s75_s29 = sshll.u32 %s7978_s28, 4  ;;  %s7979_s2 = smov [#allocation12]   ;;  %s76_s29 = int_to_ptr.vmem [resolvable:$true] %s75_s29 }
  0x12   :  { %78 = dma.hbm_to_vmem [thread:$0]  %s74_s0, 128, %s76_s29, [#allocation10]  }
  0x13   :  { %s86_s30 = sshll.u32 %s7979_s2, 4  ;;  %s87_s30 = int_to_ptr.vmem [resolvable:$true] %s86_s30 }
  0x14   :  { %89 = dma.hbm_to_vmem [thread:$0]  %s85_s27, 128, %s87_s30, [#allocation13]  }
  0x15   :  { %7960 = dma.done.wait [#allocation4], 128  }
  0x16   :  { %7961 = vsyncadd [#allocation4], 4294967168 }
  0x17   :  { %7962 = dma.done.wait [#allocation7], 8320  }
  0x18   :  { %7963 = vsyncadd [#allocation7], 4294958976 }
  0x19   :  { %7964 = dma.done.wait [#allocation10], 65664  }
  0x1a   :  { %7965 = vsyncadd [#allocation10], 4294901632 }
  0x1b   :  { %7966 = dma.done.wait [#allocation13], 128  }
  0x1c   :  { %7967 = vsyncadd [#allocation13], 4294967168  ;;  %v5099_v0 = vld [vmem:[#allocation6 + $0x1c0] sm:$0xf]  ;;  %v7234_v2 = vld [vmem:[#allocation6 + $0x1c4] sm:$0xf] }
  0x1d   :  { %v7238_v1 = vld [vmem:[#allocation6 + $0x1dc] sm:$0xf0]  ;;  %v5101_v4 = vld [vmem:[#allocation6 + $0x1e0] sm:$0xf0]  ;;  %v5107_v5 = vld [vmem:[#allocation6 + $0x1c8] sm:$0xf] }
  0x1e   :  { %v5100_v3 = vor.u32 %v7238_v1, %v5099_v0  ;;  %v7239_v6 = vld [vmem:[#allocation6 + $0x1e4] sm:$0xf0]  ;;  %v5104_v7 = vor.u32 %v7234_v2, %v5101_v4  ;;  %v7235_v9 = vld [vmem:[#allocation6 + $0x1cc] sm:$0xf]  ;;  %v5067_v11 = vld [vmem:[#allocation6 + $0x180] sm:$0xf] }
  0x1f   :  { %v5108_v8 = vor.u32 %v7239_v6, %v5107_v5  ;;  %v5109_v10 = vld [vmem:[#allocation6 + $0x1e8] sm:$0xf0]  ;;  %v7230_v13 = vld [vmem:[#allocation6 + $0x19c] sm:$0xf0]  ;;  %v7226_v14 = vld [vmem:[#allocation6 + $0x184] sm:$0xf] }
  0x20   :  { %526 = vmatpush.bf16.msra.mxu0 %v5100_v3  ;;  %v5112_v12 = vor.u32 %v7235_v9, %v5109_v10  ;;  %v5069_v15 = vld [vmem:[#allocation6 + $0x1a0] sm:$0xf0]  ;;  %540 = vmatpush.bf16.msra.mxu1 %v5104_v7  ;;  %v5068_v16 = vor.u32 %v7230_v13, %v5067_v11  ;;  %v5075_v18 = vld [vmem:[#allocation6 + $0x188] sm:$0xf]  ;;  %v7227_v20 = vld [vmem:[#allocation6 + $0x18c] sm:$0xf] }
  0x21   :  { %554 = vmatpush.bf16.msra.mxu2 %v5108_v8  ;;  %v5072_v17 = vor.u32 %v7226_v14, %v5069_v15  ;;  %v7231_v19 = vld [vmem:[#allocation6 + $0x1a4] sm:$0xf0]  ;;  %v5077_v22 = vld [vmem:[#allocation6 + $0x1a8] sm:$0xf0]  ;;  %v5035_v23 = vld [vmem:[#allocation6 + $0x140] sm:$0xf] }
  0x22   :  { %568 = vmatpush.bf16.msra.mxu3 %v5112_v12  ;;  %v5076_v21 = vor.u32 %v7231_v19, %v5075_v18  ;;  %v7222_v24 = vld [vmem:[#allocation6 + $0x15c] sm:$0xf0]  ;;  %v5080_v25 = vor.u32 %v7227_v20, %v5077_v22  ;;  %v7218_v26 = vld [vmem:[#allocation6 + $0x144] sm:$0xf]  ;;  %v5043_v28 = vld [vmem:[#allocation6 + $0x148] sm:$0xf] }
  0x23   :  { %v5037_v27 = vld [vmem:[#allocation6 + $0x160] sm:$0xf0]  ;;  %v5036_v29 = vor.u32 %v7222_v24, %v5035_v23  ;;  %v7223_v30 = vld [vmem:[#allocation6 + $0x164] sm:$0xf0]  ;;  %v7219_v31 = vld [vmem:[#allocation6 + $0x14c] sm:$0xf] }
  0x24   :  { %527 = vmatpush.bf16.msra.mxu0 %v5068_v16  ;;  %v5045_v32 = vld [vmem:[#allocation6 + $0x168] sm:$0xf0]  ;;  %541 = vmatpush.bf16.msra.mxu1 %v5072_v17  ;;  %v5040_v33 = vor.u32 %v7218_v26, %v5037_v27  ;;  %v5044_v34 = vor.u32 %v7223_v30, %v5043_v28  ;;  %v5003_v35 = vld [vmem:[#allocation6 + $0x100] sm:$0xf]  ;;  %v7210_v37 = vld [vmem:[#allocation6 + $0x104] sm:$0xf] }
  0x25   :  { %555 = vmatpush.bf16.msra.mxu2 %v5076_v21  ;;  %v7214_v36 = vld [vmem:[#allocation6 + $0x11c] sm:$0xf0]  ;;  %v5048_v38 = vor.u32 %v7219_v31, %v5045_v32  ;;  %v5005_v39 = vld [vmem:[#allocation6 + $0x120] sm:$0xf0]  ;;  %v5011_v40 = vld [vmem:[#allocation6 + $0x108] sm:$0xf] }
  0x26   :  { %569 = vmatpush.bf16.msra.mxu3 %v5080_v25  ;;  %v7215_v41 = vld [vmem:[#allocation6 + $0x124] sm:$0xf0]  ;;  %v7211_v42 = vld [vmem:[#allocation6 + $0x10c] sm:$0xf]  ;;  %v5004_v44 = vor.u32 %v7214_v36, %v5003_v35  ;;  %v5008_v45 = vor.u32 %v7210_v37, %v5005_v39  ;;  %v4971_v47 = vld [vmem:[#allocation6 + $0xc0] sm:$0xf] }
  0x27   :  { %v5013_v43 = vld [vmem:[#allocation6 + $0x128] sm:$0xf0]  ;;  %v5012_v46 = vor.u32 %v7215_v41, %v5011_v40  ;;  %v7206_v48 = vld [vmem:[#allocation6 + $0xdc] sm:$0xf0]  ;;  %v7202_v49 = vld [vmem:[#allocation6 + $0xc4] sm:$0xf] }
  0x28   :  { %528 = vmatpush.bf16.msra.mxu0 %v5036_v29  ;;  %542 = vmatpush.bf16.msra.mxu1 %v5040_v33  ;;  %v5016_v50 = vor.u32 %v7211_v42, %v5013_v43  ;;  %v4973_v51 = vld [vmem:[#allocation6 + $0xe0] sm:$0xf0]  ;;  %v4979_v52 = vld [vmem:[#allocation6 + $0xc8] sm:$0xf]  ;;  %v7203_v54 = vld [vmem:[#allocation6 + $0xcc] sm:$0xf]  ;;  %v4972_v56 = vor.u32 %v7206_v48, %v4971_v47 }
  0x29   :  { %556 = vmatpush.bf16.msra.mxu2 %v5044_v34  ;;  %v7207_v53 = vld [vmem:[#allocation6 + $0xe4] sm:$0xf0]  ;;  %v4981_v55 = vld [vmem:[#allocation6 + $0xe8] sm:$0xf0]  ;;  %v4976_v57 = vor.u32 %v7202_v49, %v4973_v51  ;;  %v4939_v59 = vld [vmem:[#allocation6 + $0x80] sm:$0xf] }
  0x2a   :  { %570 = vmatpush.bf16.msra.mxu3 %v5048_v38  ;;  %v4980_v58 = vor.u32 %v7207_v53, %v4979_v52  ;;  %v7198_v60 = vld [vmem:[#allocation6 + $0x9c] sm:$0xf0]  ;;  %v7194_v61 = vld [vmem:[#allocation6 + $0x84] sm:$0xf]  ;;  %v4984_v62 = vor.u32 %v7203_v54, %v4981_v55  ;;  %v4947_v0 = vld [vmem:[#allocation6 + $0x88] sm:$0xf] }
  0x2b   :  { %v4941_v63 = vld [vmem:[#allocation6 + $0xa0] sm:$0xf0]  ;;  %v7199_v1 = vld [vmem:[#allocation6 + $0xa4] sm:$0xf0]  ;;  %v7195_v2 = vld [vmem:[#allocation6 + $0x8c] sm:$0xf]  ;;  %v4940_v4 = vor.u32 %v7198_v60, %v4939_v59 }
  0x2c   :  { %529 = vmatpush.bf16.msra.mxu0 %v5004_v44  ;;  %543 = vmatpush.bf16.msra.mxu1 %v5008_v45  ;;  %v4949_v3 = vld [vmem:[#allocation6 + $0xa8] sm:$0xf0]  ;;  %v4944_v5 = vor.u32 %v7194_v61, %v4941_v63  ;;  %v4948_v6 = vor.u32 %v7199_v1, %v4947_v0  ;;  %v4907_v7 = vld [vmem:[#allocation6 + $0x40] sm:$0xf]  ;;  %v7186_v9 = vld [vmem:[#allocation6 + $0x44] sm:$0xf] }
  0x2d   :  { %557 = vmatpush.bf16.msra.mxu2 %v5012_v46  ;;  %v7190_v8 = vld [vmem:[#allocation6 + $0x5c] sm:$0xf0]  ;;  %v4952_v10 = vor.u32 %v7195_v2, %v4949_v3  ;;  %v4909_v11 = vld [vmem:[#allocation6 + $0x60] sm:$0xf0]  ;;  %v4915_v12 = vld [vmem:[#allocation6 + $0x48] sm:$0xf] }
  0x2e   :  { %571 = vmatpush.bf16.msra.mxu3 %v5016_v50  ;;  %v7191_v13 = vld [vmem:[#allocation6 + $0x64] sm:$0xf0]  ;;  %v7187_v14 = vld [vmem:[#allocation6 + $0x4c] sm:$0xf]  ;;  %v4908_v16 = vor.u32 %v7190_v8, %v4907_v7  ;;  %v4875_v17 = vld [vmem:[#allocation6] sm:$0xf]  ;;  %v4912_v19 = vor.u32 %v7186_v9, %v4909_v11 }
  0x2f   :  { %v4917_v15 = vld [vmem:[#allocation6 + $0x68] sm:$0xf0]  ;;  %v7182_v18 = vld [vmem:[#allocation6 + $0x1c] sm:$0xf0]  ;;  %v4916_v20 = vor.u32 %v7191_v13, %v4915_v12  ;;  %v7178_v21 = vld [vmem:[#allocation6 + $0x4] sm:$0xf] }
  0x30   :  { %530 = vmatpush.bf16.msra.mxu0 %v4972_v56  ;;  %544 = vmatpush.bf16.msra.mxu1 %v4976_v57  ;;  %v4877_v22 = vld [vmem:[#allocation6 + $0x20] sm:$0xf0]  ;;  %v4883_v23 = vld [vmem:[#allocation6 + $0x8] sm:$0xf]  ;;  %v4920_v24 = vor.u32 %v7187_v14, %v4917_v15  ;;  %v7179_v26 = vld [vmem:[#allocation6 + $0xc] sm:$0xf]  ;;  %v4876_v31 = vor.u32 %v7182_v18, %v4875_v17 }
  0x31   :  { %558 = vmatpush.bf16.msra.mxu2 %v4980_v58  ;;  %v7183_v25 = vld [vmem:[#allocation6 + $0x24] sm:$0xf0]  ;;  %v4885_v27 = vld [vmem:[#allocation6 + $0x28] sm:$0xf0]  ;;  %v5115_v28 = vld [vmem:[#allocation6 + $0x1d0] sm:$0xf]  ;;  %v4880_v35 = vor.u32 %v7178_v21, %v4877_v22 }
  0x32   :  { %572 = vmatpush.bf16.msra.mxu3 %v4984_v62  ;;  %v7240_v29 = vld [vmem:[#allocation6 + $0x1ec] sm:$0xf0]  ;;  %v7236_v30 = vld [vmem:[#allocation6 + $0x1d4] sm:$0xf]  ;;  %v5123_v33 = vld [vmem:[#allocation6 + $0x1d8] sm:$0xf]  ;;  %v4884_v36 = vor.u32 %v7183_v25, %v4883_v23  ;;  %v4888_v39 = vor.u32 %v7179_v26, %v4885_v27 }
  0x33   :  { %v5117_v32 = vld [vmem:[#allocation6 + $0x1f0] sm:$0xf0]  ;;  %v7241_v34 = vld [vmem:[#allocation6 + $0x1f4] sm:$0xf0]  ;;  %v7237_v37 = vld [vmem:[#allocation6 + $0x1dc] sm:$0xf]  ;;  %v5116_v40 = vor.u32 %v7240_v29, %v5115_v28 }
  0x34   :  { %531 = vmatpush.bf16.msra.mxu0 %v4940_v4  ;;  %545 = vmatpush.bf16.msra.mxu1 %v4944_v5  ;;  %v5125_v38 = vld [vmem:[#allocation6 + $0x1f8] sm:$0xf0]  ;;  %v5120_v42 = vor.u32 %v7236_v30, %v5117_v32  ;;  %v5124_v43 = vor.u32 %v7241_v34, %v5123_v33  ;;  %v5083_v44 = vld [vmem:[#allocation6 + $0x190] sm:$0xf]  ;;  %v7228_v46 = vld [vmem:[#allocation6 + $0x194] sm:$0xf] }
  0x35   :  { %559 = vmatpush.bf16.msra.mxu2 %v4948_v6  ;;  %v8040_v41 = vld [vmem:[#allocation3] sm:$0xff]  ;;  %v7232_v45 = vld [vmem:[#allocation6 + $0x1ac] sm:$0xf0]  ;;  %v5128_v47 = vor.u32 %v7237_v37, %v5125_v38  ;;  %v5085_v48 = vld [vmem:[#allocation6 + $0x1b0] sm:$0xf0]  ;;  %vm4739_vm0 = vcmask 7168  }
  0x36   :  { %573 = vmatpush.bf16.msra.mxu3 %v4952_v10  ;;  %v5091_v49 = vld [vmem:[#allocation6 + $0x198] sm:$0xf]  ;;  %v7229_v51 = vld [vmem:[#allocation6 + $0x19c] sm:$0xf]  ;;  %v5084_v53 = vor.u32 %v7232_v45, %v5083_v44  ;;  %v5088_v54 = vor.u32 %v7228_v46, %v5085_v48  ;;  %v5051_v56 = vld [vmem:[#allocation6 + $0x150] sm:$0xf] }
  0x37   :  { %v7233_v50 = vld [vmem:[#allocation6 + $0x1b4] sm:$0xf0]  ;;  %v5093_v52 = vld [vmem:[#allocation6 + $0x1b8] sm:$0xf0]  ;;  %v7224_v57 = vld [vmem:[#allocation6 + $0x16c] sm:$0xf0] }
  0x38   :  { %532 = vmatpush.bf16.msra.mxu0 %v4908_v16  ;;  %546 = vmatpush.bf16.msra.mxu1 %v4912_v19  ;;  %v5092_v55 = vor.u32 %v7233_v50, %v5091_v49  ;;  %v7220_v58 = vld [vmem:[#allocation6 + $0x154] sm:$0xf]  ;;  %v5096_v59 = vor.u32 %v7229_v51, %v5093_v52  ;;  %v5059_v61 = vld [vmem:[#allocation6 + $0x158] sm:$0xf]  ;;  %v7221_v63 = vld [vmem:[#allocation6 + $0x15c] sm:$0xf]  ;;  %v5052_v1 = vor.u32 %v7224_v57, %v5051_v56 }
  0x39   :  { %560 = vmatpush.bf16.msra.mxu2 %v4916_v20  ;;  %v5053_v60 = vld [vmem:[#allocation6 + $0x170] sm:$0xf0]  ;;  %v7225_v62 = vld [vmem:[#allocation6 + $0x174] sm:$0xf0]  ;;  %v5061_v0 = vld [vmem:[#allocation6 + $0x178] sm:$0xf0] }
  0x3a   :  { %574 = vmatpush.bf16.msra.mxu3 %v4920_v24  ;;  %v5056_v2 = vor.u32 %v7220_v58, %v5053_v60  ;;  %v5060_v3 = vor.u32 %v7225_v62, %v5059_v61  ;;  %v5019_v4 = vld [vmem:[#allocation6 + $0x110] sm:$0xf]  ;;  %v7212_v6 = vld [vmem:[#allocation6 + $0x114] sm:$0xf]  ;;  %v5064_v7 = vor.u32 %v7221_v63, %v5061_v0  ;;  %v5027_v9 = vld [vmem:[#allocation6 + $0x118] sm:$0xf] }
  0x3b   :  { %v7216_v5 = vld [vmem:[#allocation6 + $0x12c] sm:$0xf0]  ;;  %v5021_v8 = vld [vmem:[#allocation6 + $0x130] sm:$0xf0]  ;;  %v7217_v10 = vld [vmem:[#allocation6 + $0x134] sm:$0xf0] }
  0x3c   :  { %533 = vmatpush.bf16.msra.mxu0 %v4876_v31  ;;  %547 = vmatpush.bf16.msra.mxu1 %v4880_v35  ;;  %v7213_v11 = vld [vmem:[#allocation6 + $0x11c] sm:$0xf]  ;;  %v5020_v13 = vor.u32 %v7216_v5, %v5019_v4  ;;  %v5024_v14 = vor.u32 %v7212_v6, %v5021_v8  ;;  %v5028_v15 = vor.u32 %v7217_v10, %v5027_v9  ;;  %v4987_v16 = vld [vmem:[#allocation6 + $0xd0] sm:$0xf]  ;;  %v7204_v18 = vld [vmem:[#allocation6 + $0xd4] sm:$0xf] }
  0x3d   :  { %561 = vmatpush.bf16.msra.mxu2 %v4884_v36  ;;  %v5029_v12 = vld [vmem:[#allocation6 + $0x138] sm:$0xf0]  ;;  %v7208_v17 = vld [vmem:[#allocation6 + $0xec] sm:$0xf0]  ;;  %v4989_v20 = vld [vmem:[#allocation6 + $0xf0] sm:$0xf0] }
  0x3e   :  { %575 = vmatpush.bf16.msra.mxu3 %v4888_v39  ;;  %v5032_v19 = vor.u32 %v7213_v11, %v5029_v12  ;;  %v4995_v21 = vld [vmem:[#allocation6 + $0xd8] sm:$0xf]  ;;  %v7205_v23 = vld [vmem:[#allocation6 + $0xdc] sm:$0xf]  ;;  %v4988_v25 = vor.u32 %v7208_v17, %v4987_v16  ;;  %v4992_v26 = vor.u32 %v7204_v18, %v4989_v20  ;;  %v4955_v28 = vld [vmem:[#allocation6 + $0x90] sm:$0xf] }
  0x3f   :  { %534 = vmatmul.bf16.vlgmr.msra.gmra.mxu0 %v8040_v41  ;;  %548 = vmatmul.bf16.vlgmr.msra.gmra.mxu1 %v8040_v41  ;;  %v7209_v22 = vld [vmem:[#allocation6 + $0xf4] sm:$0xf0]  ;;  %v4997_v24 = vld [vmem:[#allocation6 + $0xf8] sm:$0xf0]  ;;  %v7200_v29 = vld [vmem:[#allocation6 + $0xac] sm:$0xf0] }
  0x40   :  { %582 = vmatpush.bf16.msrb.mxu0 %v5116_v40  ;;  %596 = vmatpush.bf16.msrb.mxu1 %v5120_v42  ;;  %v4996_v27 = vor.u32 %v7209_v22, %v4995_v21  ;;  %v7196_v30 = vld [vmem:[#allocation6 + $0x94] sm:$0xf]  ;;  %v5000_v31 = vor.u32 %v7205_v23, %v4997_v24  ;;  %v4963_v33 = vld [vmem:[#allocation6 + $0x98] sm:$0xf]  ;;  %v7197_v35 = vld [vmem:[#allocation6 + $0x9c] sm:$0xf]  ;;  %v4956_v37 = vor.u32 %v7200_v29, %v4955_v28 }
  0x41   :  { %610 = vmatpush.bf16.msrb.mxu2 %v5124_v43  ;;  %576 = vmatmul.bf16.vlgmr.msra.gmra.mxu3 %v8040_v41  ;;  %v4957_v32 = vld [vmem:[#allocation6 + $0xb0] sm:$0xf0]  ;;  %v7201_v34 = vld [vmem:[#allocation6 + $0xb4] sm:$0xf0]  ;;  %v4965_v36 = vld [vmem:[#allocation6 + $0xb8] sm:$0xf0] }
  0x42   :  { %624 = vmatpush.bf16.msrb.mxu3 %v5128_v47  ;;  %562 = vmatmul.bf16.vlgmr.msra.gmra.mxu2 %v8040_v41  ;;  %v4960_v38 = vor.u32 %v7196_v30, %v4957_v32  ;;  %v4964_v39 = vor.u32 %v7201_v34, %v4963_v33  ;;  %v4923_v40 = vld [vmem:[#allocation6 + $0x50] sm:$0xf]  ;;  %v7188_v43 = vld [vmem:[#allocation6 + $0x54] sm:$0xf]  ;;  %v4968_v44 = vor.u32 %v7197_v35, %v4965_v36  ;;  %v4931_v46 = vld [vmem:[#allocation6 + $0x58] sm:$0xf] }
  0x43   :  { %v7192_v42 = vld [vmem:[#allocation6 + $0x6c] sm:$0xf0]  ;;  %v4925_v45 = vld [vmem:[#allocation6 + $0x70] sm:$0xf0]  ;;  %v7193_v47 = vld [vmem:[#allocation6 + $0x74] sm:$0xf0] }
  0x44   :  { %583 = vmatpush.bf16.msrb.mxu0 %v5084_v53  ;;  %597 = vmatpush.bf16.msrb.mxu1 %v5088_v54  ;;  %v7189_v48 = vld [vmem:[#allocation6 + $0x5c] sm:$0xf]  ;;  %v4924_v50 = vor.u32 %v7192_v42, %v4923_v40  ;;  %v4891_v51 = vld [vmem:[#allocation6 + $0x10] sm:$0xf]  ;;  %v4928_v52 = vor.u32 %v7188_v43, %v4925_v45  ;;  %v4932_v53 = vor.u32 %v7193_v47, %v4931_v46  ;;  %v4893_v56 = vld [vmem:[#allocation6 + $0x30] sm:$0xf0] }
  0x45   :  { %611 = vmatpush.bf16.msrb.mxu2 %v5092_v55  ;;  %v4933_v49 = vld [vmem:[#allocation6 + $0x78] sm:$0xf0]  ;;  %v7184_v54 = vld [vmem:[#allocation6 + $0x2c] sm:$0xf0]  ;;  %v7180_v55 = vld [vmem:[#allocation6 + $0x14] sm:$0xf] }
  0x46   :  { %625 = vmatpush.bf16.msrb.mxu3 %v5096_v59  ;;  %v4936_v57 = vor.u32 %v7189_v48, %v4933_v49  ;;  %v4899_v58 = vld [vmem:[#allocation6 + $0x18] sm:$0xf]  ;;  %v7181_v60 = vld [vmem:[#allocation6 + $0x1c] sm:$0xf]  ;;  %v5355_v62 = vld [vmem:[#allocation9 + $0x1c0] sm:$0xf]  ;;  %v4892_v0 = vor.u32 %v7184_v54, %v4891_v51 }
  0x47   :  { %v7185_v59 = vld [vmem:[#allocation6 + $0x34] sm:$0xf0]  ;;  %v4901_v61 = vld [vmem:[#allocation6 + $0x38] sm:$0xf0]  ;;  %v7302_v63 = vld [vmem:[#allocation9 + $0x1dc] sm:$0xf0] }
  0x48   :  { %584 = vmatpush.bf16.msrb.mxu0 %v5052_v1  ;;  %598 = vmatpush.bf16.msrb.mxu1 %v5056_v2  ;;  %v5611_v1 = vld [vmem:[#allocation9 + $0x3c0] sm:$0xf]  ;;  %v4900_v4 = vor.u32 %v7185_v59, %v4899_v58  ;;  %v4904_v5 = vor.u32 %v7181_v60, %v4901_v61  ;;  %v5356_v6 = vor.u32 %v7302_v63, %v5355_v62  ;;  %s7981_s18 = smov [#allocation14]   ;;  %s4856_s22 = sshll.u32 %s8311_s7, 4  ;;  %s4857_s22 = int_to_ptr.hbm [resolvable:$true] %s4856_s22 }
  0x49   :  { %612 = vmatpush.bf16.msrb.mxu2 %v5060_v3  ;;  %v7366_v2 = vld [vmem:[#allocation9 + $0x3dc] sm:$0xf0]  ;;  %v4896_v3 = vor.u32 %v7180_v55, %v4893_v56  ;;  %s4854_s3 = sshll.u32 %s7981_s18, 4  ;;  %s4855_s3 = int_to_ptr.vmem [resolvable:$true] %s4854_s3 }
  0x4a   :  { %626 = vmatpush.bf16.msrb.mxu3 %v5064_v7  ;;  %v5323_v7 = vld [vmem:[#allocation9 + $0x180] sm:$0xf]  ;;  %v5612_v10 = vor.u32 %v7366_v2, %v5611_v1 }
  0x4b   :  { %v5867_v8 = vld [vmem:[#allocation9 + $0x5c0] sm:$0xf] }
  0x4c   :  { %585 = vmatpush.bf16.msrb.mxu0 %v5020_v13  ;;  %599 = vmatpush.bf16.msrb.mxu1 %v5024_v14  ;;  %v7430_v9 = vld [vmem:[#allocation9 + $0x5dc] sm:$0xf0] }
  0x4d   :  { %613 = vmatpush.bf16.msrb.mxu2 %v5028_v15  ;;  %v7294_v11 = vld [vmem:[#allocation9 + $0x19c] sm:$0xf0]  ;;  %v5868_v16 = vor.u32 %v7430_v9, %v5867_v8 }
  0x4e   :  { %627 = vmatpush.bf16.msrb.mxu3 %v5032_v19  ;;  %v6123_v12 = vld [vmem:[#allocation9 + $0x7c0] sm:$0xf]  ;;  %v5324_v17 = vor.u32 %v7294_v11, %v5323_v7 }
  0x4f   :  { %v7494_v13 = vld [vmem:[#allocation9 + $0x7dc] sm:$0xf0] }
  0x50   :  { %586 = vmatpush.bf16.msrb.mxu0 %v4988_v25  ;;  %600 = vmatpush.bf16.msrb.mxu1 %v4992_v26  ;;  %v5579_v14 = vld [vmem:[#allocation9 + $0x380] sm:$0xf]  ;;  %v6124_v18 = vor.u32 %v7494_v13, %v6123_v12 }
  0x51   :  { %614 = vmatpush.bf16.msrb.mxu2 %v4996_v27  ;;  %v7358_v15 = vld [vmem:[#allocation9 + $0x39c] sm:$0xf0] }
  0x52   :  { %628 = vmatpush.bf16.msrb.mxu3 %v5000_v31  ;;  %v5291_v19 = vld [vmem:[#allocation9 + $0x140] sm:$0xf]  ;;  %v5580_v22 = vor.u32 %v7358_v15, %v5579_v14 }
  0x53   :  { %v5835_v20 = vld [vmem:[#allocation9 + $0x580] sm:$0xf] }
  0x54   :  { %587 = vmatpush.bf16.msrb.mxu0 %v4956_v37  ;;  %601 = vmatpush.bf16.msrb.mxu1 %v4960_v38  ;;  %v7422_v21 = vld [vmem:[#allocation9 + $0x59c] sm:$0xf0] }
  0x55   :  { %615 = vmatpush.bf16.msrb.mxu2 %v4964_v39  ;;  %v7286_v23 = vld [vmem:[#allocation9 + $0x15c] sm:$0xf0]  ;;  %v5836_v28 = vor.u32 %v7422_v21, %v5835_v20 }
  0x56   :  { %629 = vmatpush.bf16.msrb.mxu3 %v4968_v44  ;;  %v6091_v24 = vld [vmem:[#allocation9 + $0x780] sm:$0xf]  ;;  %v5292_v29 = vor.u32 %v7286_v23, %v5291_v19 }
  0x57   :  { %v7486_v25 = vld [vmem:[#allocation9 + $0x79c] sm:$0xf0] }
  0x58   :  { %588 = vmatpush.bf16.msrb.mxu0 %v4924_v50  ;;  %602 = vmatpush.bf16.msrb.mxu1 %v4928_v52  ;;  %v5547_v26 = vld [vmem:[#allocation9 + $0x340] sm:$0xf]  ;;  %v6092_v30 = vor.u32 %v7486_v25, %v6091_v24 }
  0x59   :  { %616 = vmatpush.bf16.msrb.mxu2 %v4932_v53  ;;  %v7350_v27 = vld [vmem:[#allocation9 + $0x35c] sm:$0xf0] }
  0x5a   :  { %630 = vmatpush.bf16.msrb.mxu3 %v4936_v57  ;;  %v5259_v31 = vld [vmem:[#allocation9 + $0x100] sm:$0xf]  ;;  %v5548_v34 = vor.u32 %v7350_v27, %v5547_v26 }
  0x5b   :  { %v5803_v32 = vld [vmem:[#allocation9 + $0x540] sm:$0xf] }
  0x5c   :  { %589 = vmatpush.bf16.msrb.mxu0 %v4892_v0  ;;  %603 = vmatpush.bf16.msrb.mxu1 %v4896_v3  ;;  %v7414_v33 = vld [vmem:[#allocation9 + $0x55c] sm:$0xf0] }
  0x5d   :  { %617 = vmatpush.bf16.msrb.mxu2 %v4900_v4  ;;  %v7278_v35 = vld [vmem:[#allocation9 + $0x11c] sm:$0xf0]  ;;  %v5804_v40 = vor.u32 %v7414_v33, %v5803_v32 }
  0x5e   :  { %631 = vmatpush.bf16.msrb.mxu3 %v4904_v5  ;;  %v6059_v36 = vld [vmem:[#allocation9 + $0x740] sm:$0xf] }
  0x5f   :  { %590 = vmatmul.bf16.vlgmr.msrb.gmra.mxu0 %v8040_v41  ;;  %604 = vmatmul.bf16.vlgmr.msrb.gmra.mxu1 %v8040_v41  ;;  %v7478_v37 = vld [vmem:[#allocation9 + $0x75c] sm:$0xf0] }
  0x60   :  { %3752 = vmatpush.bf16.msra.mxu0 %v5356_v6  ;;  %3766 = vmatpush.bf16.msra.mxu1 %v5612_v10  ;;  %v5515_v38 = vld [vmem:[#allocation9 + $0x300] sm:$0xf]  ;;  %v6060_v42 = vor.u32 %v7478_v37, %v6059_v36 }
  0x61   :  { %618 = vmatmul.bf16.vlgmr.msrb.gmra.mxu2 %v8040_v41  ;;  %632 = vmatmul.bf16.vlgmr.msrb.gmra.mxu3 %v8040_v41  ;;  %v7342_v39 = vld [vmem:[#allocation9 + $0x31c] sm:$0xf0]  ;;  %v5260_v41 = vor.u32 %v7278_v35, %v5259_v31 }
  0x62   :  { %3780 = vmatpush.bf16.msra.mxu2 %v5868_v16  ;;  %3794 = vmatpush.bf16.msra.mxu3 %v6124_v18  ;;  %v5227_v43 = vld [vmem:[#allocation9 + $0xc0] sm:$0xf]  ;;  %v5516_v46 = vor.u32 %v7342_v39, %v5515_v38 }
  0x63   :  { %v5771_v44 = vld [vmem:[#allocation9 + $0x500] sm:$0xf] }
  0x64   :  { %3753 = vmatpush.bf16.msra.mxu0 %v5324_v17  ;;  %3767 = vmatpush.bf16.msra.mxu1 %v5580_v22  ;;  %v7406_v45 = vld [vmem:[#allocation9 + $0x51c] sm:$0xf0] }
  0x65   :  { %v7270_v47 = vld [vmem:[#allocation9 + $0xdc] sm:$0xf0]  ;;  %v5772_v52 = vor.u32 %v7406_v45, %v5771_v44 }
  0x66   :  { %3781 = vmatpush.bf16.msra.mxu2 %v5836_v28  ;;  %3795 = vmatpush.bf16.msra.mxu3 %v6092_v30  ;;  %v6027_v48 = vld [vmem:[#allocation9 + $0x700] sm:$0xf]  ;;  %v5228_v53 = vor.u32 %v7270_v47, %v5227_v43 }
  0x67   :  { %v7470_v49 = vld [vmem:[#allocation9 + $0x71c] sm:$0xf0] }
  0x68   :  { %3754 = vmatpush.bf16.msra.mxu0 %v5292_v29  ;;  %3768 = vmatpush.bf16.msra.mxu1 %v5548_v34  ;;  %v5483_v50 = vld [vmem:[#allocation9 + $0x2c0] sm:$0xf]  ;;  %v6028_v54 = vor.u32 %v7470_v49, %v6027_v48 }
  0x69   :  { %v7334_v51 = vld [vmem:[#allocation9 + $0x2dc] sm:$0xf0] }
  0x6a   :  { %3782 = vmatpush.bf16.msra.mxu2 %v5804_v40  ;;  %3796 = vmatpush.bf16.msra.mxu3 %v6060_v42  ;;  %v5195_v55 = vld [vmem:[#allocation9 + $0x80] sm:$0xf]  ;;  %v5484_v58 = vor.u32 %v7334_v51, %v5483_v50 }
  0x6b   :  { %v5739_v56 = vld [vmem:[#allocation9 + $0x4c0] sm:$0xf] }
  0x6c   :  { %3755 = vmatpush.bf16.msra.mxu0 %v5260_v41  ;;  %v7398_v57 = vld [vmem:[#allocation9 + $0x4dc] sm:$0xf0]  ;;  %3769 = vmatpush.bf16.msra.mxu1 %v5516_v46 }
  0x6d   :  { %v7262_v59 = vld [vmem:[#allocation9 + $0x9c] sm:$0xf0]  ;;  %v5740_v0 = vor.u32 %v7398_v57, %v5739_v56 }
  0x6e   :  { %v5995_v60 = vld [vmem:[#allocation9 + $0x6c0] sm:$0xf]  ;;  %3783 = vmatpush.bf16.msra.mxu2 %v5772_v52  ;;  %3797 = vmatpush.bf16.msra.mxu3 %v6028_v54  ;;  %v5196_v1 = vor.u32 %v7262_v59, %v5195_v55 }
  0x6f   :  { %v7462_v61 = vld [vmem:[#allocation9 + $0x6dc] sm:$0xf0] }
  0x70   :  { %v5451_v62 = vld [vmem:[#allocation9 + $0x280] sm:$0xf]  ;;  %3756 = vmatpush.bf16.msra.mxu0 %v5228_v53  ;;  %v5996_v2 = vor.u32 %v7462_v61, %v5995_v60  ;;  %3770 = vmatpush.bf16.msra.mxu1 %v5484_v58 }
  0x71   :  { %v7326_v63 = vld [vmem:[#allocation9 + $0x29c] sm:$0xf0] }
  0x72   :  { %v5163_v3 = vld [vmem:[#allocation9 + $0x40] sm:$0xf]  ;;  %v5452_v6 = vor.u32 %v7326_v63, %v5451_v62  ;;  %3784 = vmatpush.bf16.msra.mxu2 %v5740_v0  ;;  %3798 = vmatpush.bf16.msra.mxu3 %v5996_v2 }
  0x73   :  { %v5707_v4 = vld [vmem:[#allocation9 + $0x480] sm:$0xf] }
  0x74   :  { %v7390_v5 = vld [vmem:[#allocation9 + $0x49c] sm:$0xf0]  ;;  %3757 = vmatpush.bf16.msra.mxu0 %v5196_v1  ;;  %3771 = vmatpush.bf16.msra.mxu1 %v5452_v6 }
  0x75   :  { %v7254_v7 = vld [vmem:[#allocation9 + $0x5c] sm:$0xf0]  ;;  %v5708_v12 = vor.u32 %v7390_v5, %v5707_v4 }
  0x76   :  { %v5963_v8 = vld [vmem:[#allocation9 + $0x680] sm:$0xf]  ;;  %v5164_v14 = vor.u32 %v7254_v7, %v5163_v3 }
  0x77   :  { %v7454_v9 = vld [vmem:[#allocation9 + $0x69c] sm:$0xf0]  ;;  %3785 = vmatpush.bf16.msra.mxu2 %v5708_v12 }
  0x78   :  { %v5419_v10 = vld [vmem:[#allocation9 + $0x240] sm:$0xf]  ;;  %v5964_v15 = vor.u32 %v7454_v9, %v5963_v8  ;;  %3758 = vmatpush.bf16.msra.mxu0 %v5164_v14 }
  0x79   :  { %v7318_v11 = vld [vmem:[#allocation9 + $0x25c] sm:$0xf0] }
  0x7a   :  { %v5131_v13 = vld [vmem:[#allocation9] sm:$0xf]  ;;  %v5420_v19 = vor.u32 %v7318_v11, %v5419_v10  ;;  %3799 = vmatpush.bf16.msra.mxu3 %v5964_v15 }
  0x7b   :  { %v7246_v16 = vld [vmem:[#allocation9 + $0x1c] sm:$0xf0] }
  0x7c   :  { %v5675_v17 = vld [vmem:[#allocation9 + $0x440] sm:$0xf]  ;;  %v5132_v29 = vor.u32 %v7246_v16, %v5131_v13  ;;  %3772 = vmatpush.bf16.msra.mxu1 %v5420_v19 }
  0x7d   :  { %v7382_v18 = vld [vmem:[#allocation9 + $0x45c] sm:$0xf0] }
  0x7e   :  { %v5387_v20 = vld [vmem:[#allocation9 + $0x200] sm:$0xf]  ;;  %v5676_v28 = vor.u32 %v7382_v18, %v5675_v17  ;;  %3759 = vmatpush.bf16.msra.mxu0 %v5132_v29 }
  0x7f   :  { %v5931_v21 = vld [vmem:[#allocation9 + $0x640] sm:$0xf] }
  0x80   :  { %v7446_v22 = vld [vmem:[#allocation9 + $0x65c] sm:$0xf0]  ;;  %3786 = vmatpush.bf16.msra.mxu2 %v5676_v28 }
  0x81   :  { %v7310_v23 = vld [vmem:[#allocation9 + $0x21c] sm:$0xf0]  ;;  %v5932_v30 = vor.u32 %v7446_v22, %v5931_v21 }
  0x82   :  { %v6379_v24 = vld [vmem:[#allocation9 + $0x9c0] sm:$0xf]  ;;  %v5388_v35 = vor.u32 %v7310_v23, %v5387_v20 }
  0x83   :  { %v7558_v25 = vld [vmem:[#allocation9 + $0x9dc] sm:$0xf0]  ;;  %3800 = vmatpush.bf16.msra.mxu3 %v5932_v30 }
  0x84   :  { %v6635_v26 = vld [vmem:[#allocation9 + $0xbc0] sm:$0xf]  ;;  %v6380_v36 = vor.u32 %v7558_v25, %v6379_v24  ;;  %3773 = vmatpush.bf16.msra.mxu1 %v5388_v35 }
  0x85   :  { %v7622_v27 = vld [vmem:[#allocation9 + $0xbdc] sm:$0xf0] }
  0x86   :  { %v6347_v31 = vld [vmem:[#allocation9 + $0x980] sm:$0xf]  ;;  %v6636_v40 = vor.u32 %v7622_v27, %v6635_v26  ;;  %3808 = vmatpush.bf16.msrb.mxu0 %v6380_v36 }
  0x87   :  { %v5643_v32 = vld [vmem:[#allocation9 + $0x400] sm:$0xf] }
  0x88   :  { %v7374_v33 = vld [vmem:[#allocation9 + $0x41c] sm:$0xf0]  ;;  %3822 = vmatpush.bf16.msrb.mxu1 %v6636_v40 }
  0x89   :  { %v5899_v34 = vld [vmem:[#allocation9 + $0x600] sm:$0xf]  ;;  %v5644_v46 = vor.u32 %v7374_v33, %v5643_v32 }
  0x8a   :  { %v7438_v37 = vld [vmem:[#allocation9 + $0x61c] sm:$0xf0] }
  0x8b   :  { %v6891_v38 = vld [vmem:[#allocation9 + $0xdc0] sm:$0xf]  ;;  %v5900_v47 = vor.u32 %v7438_v37, %v5899_v34  ;;  %3787 = vmatpush.bf16.msra.mxu2 %v5644_v46 }
  0x8c   :  { %v7686_v39 = vld [vmem:[#allocation9 + $0xddc] sm:$0xf0] }
  0x8d   :  { %v7550_v41 = vld [vmem:[#allocation9 + $0x99c] sm:$0xf0]  ;;  %v6892_v48 = vor.u32 %v7686_v39, %v6891_v38  ;;  %3801 = vmatpush.bf16.msra.mxu3 %v5900_v47 }
  0x8e   :  { %v7147_v42 = vld [vmem:[#allocation9 + $0xfc0] sm:$0xf]  ;;  %v6348_v49 = vor.u32 %v7550_v41, %v6347_v31 }
  0x8f   :  { %v7750_v43 = vld [vmem:[#allocation9 + $0xfdc] sm:$0xf0]  ;;  %3836 = vmatpush.bf16.msrb.mxu2 %v6892_v48 }
  0x90   :  { %v6603_v44 = vld [vmem:[#allocation9 + $0xb80] sm:$0xf]  ;;  %v7148_v50 = vor.u32 %v7750_v43, %v7147_v42  ;;  %3809 = vmatpush.bf16.msrb.mxu0 %v6348_v49 }
  0x91   :  { %v7614_v45 = vld [vmem:[#allocation9 + $0xb9c] sm:$0xf0] }
  0x92   :  { %v6315_v51 = vld [vmem:[#allocation9 + $0x940] sm:$0xf]  ;;  %v6604_v54 = vor.u32 %v7614_v45, %v6603_v44  ;;  %3850 = vmatpush.bf16.msrb.mxu3 %v7148_v50 }
  0x93   :  { %v6859_v52 = vld [vmem:[#allocation9 + $0xd80] sm:$0xf] }
  0x94   :  { %v7678_v53 = vld [vmem:[#allocation9 + $0xd9c] sm:$0xf0]  ;;  %3823 = vmatpush.bf16.msrb.mxu1 %v6604_v54 }
  0x95   :  { %v7542_v55 = vld [vmem:[#allocation9 + $0x95c] sm:$0xf0]  ;;  %v6860_v60 = vor.u32 %v7678_v53, %v6859_v52 }
  0x96   :  { %v7115_v56 = vld [vmem:[#allocation9 + $0xf80] sm:$0xf]  ;;  %v6316_v61 = vor.u32 %v7542_v55, %v6315_v51 }
  0x97   :  { %v7742_v57 = vld [vmem:[#allocation9 + $0xf9c] sm:$0xf0]  ;;  %3837 = vmatpush.bf16.msrb.mxu2 %v6860_v60 }
  0x98   :  { %v6571_v58 = vld [vmem:[#allocation9 + $0xb40] sm:$0xf]  ;;  %v7116_v62 = vor.u32 %v7742_v57, %v7115_v56  ;;  %3810 = vmatpush.bf16.msrb.mxu0 %v6316_v61 }
  0x99   :  { %v7606_v59 = vld [vmem:[#allocation9 + $0xb5c] sm:$0xf0] }
  0x9a   :  { %v6572_v63 = vor.u32 %v7606_v59, %v6571_v58  ;;  %v6283_v0 = vld [vmem:[#allocation9 + $0x900] sm:$0xf]  ;;  %3851 = vmatpush.bf16.msrb.mxu3 %v7116_v62 }
  0x9b   :  { %v7534_v1 = vld [vmem:[#allocation9 + $0x91c] sm:$0xf0] }
  0x9c   :  { %v6539_v2 = vld [vmem:[#allocation9 + $0xb00] sm:$0xf]  ;;  %v6284_v4 = vor.u32 %v7534_v1, %v6283_v0  ;;  %3824 = vmatpush.bf16.msrb.mxu1 %v6572_v63 }
  0x9d   :  { %v7598_v3 = vld [vmem:[#allocation9 + $0xb1c] sm:$0xf0] }
  0x9e   :  { %v6540_v5 = vor.u32 %v7598_v3, %v6539_v2  ;;  %3811 = vmatpush.bf16.msrb.mxu0 %v6284_v4  ;;  %v6827_v6 = vld [vmem:[#allocation9 + $0xd40] sm:$0xf]  ;;  %v8050_v2 = vld [vmem:[#allocation8] sm:$0xff] }
  0x9f   :  { %v7670_v7 = vld [vmem:[#allocation9 + $0xd5c] sm:$0xf0]  ;;  %v184_v4 = vperm.slane %v8050_v2, 0 }
  0xa0   :  { %3825 = vmatpush.bf16.msrb.mxu1 %v6540_v5  ;;  %v7083_v8 = vld [vmem:[#allocation9 + $0xf40] sm:$0xf]  ;;  %v6828_v9 = vor.u32 %v7670_v7, %v6827_v6  ;;  %v185_v6 = vperm.slane %v8050_v2, 1 }
  0xa1   :  { %v7734_v10 = vld [vmem:[#allocation9 + $0xf5c] sm:$0xf0] }
  0xa2   :  { %v7084_v11 = vor.u32 %v7734_v10, %v7083_v8  ;;  %v6251_v12 = vld [vmem:[#allocation9 + $0x8c0] sm:$0xf]  ;;  %3838 = vmatpush.bf16.msrb.mxu2 %v6828_v9 }
  0xa3   :  { %v7526_v13 = vld [vmem:[#allocation9 + $0x8dc] sm:$0xf0] }
  0xa4   :  { %v6507_v14 = vld [vmem:[#allocation9 + $0xac0] sm:$0xf]  ;;  %v6252_v15 = vor.u32 %v7526_v13, %v6251_v12  ;;  %3852 = vmatpush.bf16.msrb.mxu3 %v7084_v11 }
  0xa5   :  { %v7590_v16 = vld [vmem:[#allocation9 + $0xadc] sm:$0xf0] }
  0xa6   :  { %v6508_v17 = vor.u32 %v7590_v16, %v6507_v14  ;;  %v6795_v18 = vld [vmem:[#allocation9 + $0xd00] sm:$0xf]  ;;  %3812 = vmatpush.bf16.msrb.mxu0 %v6252_v15  ;;  %v7298_v15 = vld [vmem:[#allocation9 + $0x1c4] sm:$0xf] }
  0xa7   :  { %v7662_v19 = vld [vmem:[#allocation9 + $0xd1c] sm:$0xf0]  ;;  %v5357_v16 = vld [vmem:[#allocation9 + $0x1e0] sm:$0xf0] }
  0xa8   :  { %v6796_v20 = vor.u32 %v7662_v19, %v6795_v18  ;;  %v7051_v21 = vld [vmem:[#allocation9 + $0xf00] sm:$0xf]  ;;  %3826 = vmatpush.bf16.msrb.mxu1 %v6508_v17  ;;  %v186_v18 = vperm.slane %v8050_v2, 2 }
  0xa9   :  { %v7726_v22 = vld [vmem:[#allocation9 + $0xf1c] sm:$0xf0] }
  0xaa   :  { %v7052_v23 = vor.u32 %v7726_v22, %v7051_v21  ;;  %v6219_v24 = vld [vmem:[#allocation9 + $0x880] sm:$0xf]  ;;  %3839 = vmatpush.bf16.msrb.mxu2 %v6796_v20  ;;  %v7362_v20 = vld [vmem:[#allocation9 + $0x3c4] sm:$0xf]  ;;  %v187_v22 = vperm.slane %v8050_v2, 3 }
  0xab   :  { %v7518_v25 = vld [vmem:[#allocation9 + $0x89c] sm:$0xf0]  ;;  %v5613_v21 = vld [vmem:[#allocation9 + $0x3e0] sm:$0xf0] }
  0xac   :  { %v6475_v26 = vld [vmem:[#allocation9 + $0xa80] sm:$0xf]  ;;  %v6220_v27 = vor.u32 %v7518_v25, %v6219_v24  ;;  %3853 = vmatpush.bf16.msrb.mxu3 %v7052_v23  ;;  %v5360_v25 = vor.u32 %v7298_v15, %v5357_v16  ;;  %v5485_v15 = vld [vmem:[#allocation9 + $0x2e0] sm:$0xf0] }
  0xad   :  { %v7582_v28 = vld [vmem:[#allocation9 + $0xa9c] sm:$0xf0] }
  0xae   :  { %v6476_v29 = vor.u32 %v7582_v28, %v6475_v26  ;;  %v6763_v30 = vld [vmem:[#allocation9 + $0xcc0] sm:$0xf]  ;;  %3813 = vmatpush.bf16.msrb.mxu0 %v6220_v27  ;;  %v5616_v27 = vor.u32 %v7362_v20, %v5613_v21  ;;  %v7290_v28 = vld [vmem:[#allocation9 + $0x184] sm:$0xf] }
  0xaf   :  { %v7654_v31 = vld [vmem:[#allocation9 + $0xcdc] sm:$0xf0]  ;;  %v5773_v20 = vld [vmem:[#allocation9 + $0x520] sm:$0xf0] }
  0xb0   :  { %v7019_v32 = vld [vmem:[#allocation9 + $0xec0] sm:$0xf]  ;;  %v6764_v33 = vor.u32 %v7654_v31, %v6763_v30  ;;  %3827 = vmatpush.bf16.msrb.mxu1 %v6476_v29  ;;  %v5325_v29 = vld [vmem:[#allocation9 + $0x1a0] sm:$0xf0] }
  0xb1   :  { %v7718_v34 = vld [vmem:[#allocation9 + $0xedc] sm:$0xf0]  ;;  %v7466_v21 = vld [vmem:[#allocation9 + $0x704] sm:$0xf] }
  0xb2   :  { %v7020_v35 = vor.u32 %v7718_v34, %v7019_v32  ;;  %v6187_v36 = vld [vmem:[#allocation9 + $0x840] sm:$0xf]  ;;  %3840 = vmatpush.bf16.msrb.mxu2 %v6764_v33  ;;  %v7354_v32 = vld [vmem:[#allocation9 + $0x384] sm:$0xf] }
  0xb3   :  { %v7510_v37 = vld [vmem:[#allocation9 + $0x85c] sm:$0xf0]  ;;  %v5581_v33 = vld [vmem:[#allocation9 + $0x3a0] sm:$0xf0] }
  0xb4   :  { %v6188_v38 = vor.u32 %v7510_v37, %v6187_v36  ;;  %v6443_v39 = vld [vmem:[#allocation9 + $0xa40] sm:$0xf]  ;;  %3854 = vmatpush.bf16.msrb.mxu3 %v7020_v35 }
  0xb5   :  { %v7574_v40 = vld [vmem:[#allocation9 + $0xa5c] sm:$0xf0] }
  0xb6   :  { %v6444_v41 = vor.u32 %v7574_v40, %v6443_v39  ;;  %v6731_v42 = vld [vmem:[#allocation9 + $0xc80] sm:$0xf]  ;;  %3814 = vmatpush.bf16.msrb.mxu0 %v6188_v38  ;;  %v5328_v38 = vor.u32 %v7290_v28, %v5325_v29  ;;  %v7426_v39 = vld [vmem:[#allocation9 + $0x5c4] sm:$0xf]  ;;  %v188_v28 = vperm.slane %v8050_v2, 4 }
  0xb7   :  { %v7646_v43 = vld [vmem:[#allocation9 + $0xc9c] sm:$0xf0]  ;;  %v5869_v40 = vld [vmem:[#allocation9 + $0x5e0] sm:$0xf0] }
  0xb8   :  { %v6987_v44 = vld [vmem:[#allocation9 + $0xe80] sm:$0xf]  ;;  %v6732_v45 = vor.u32 %v7646_v43, %v6731_v42  ;;  %3828 = vmatpush.bf16.msrb.mxu1 %v6444_v41  ;;  %v7490_v41 = vld [vmem:[#allocation9 + $0x7c4] sm:$0xf]  ;;  %v5584_v43 = vor.u32 %v7354_v32, %v5581_v33  ;;  %v189_v33 = vperm.slane %v8050_v2, 5 }
  0xb9   :  { %v7710_v46 = vld [vmem:[#allocation9 + $0xe9c] sm:$0xf0]  ;;  %v5453_v32 = vld [vmem:[#allocation9 + $0x2a0] sm:$0xf0] }
  0xba   :  { %v6988_v47 = vor.u32 %v7710_v46, %v6987_v44  ;;  %v6155_v48 = vld [vmem:[#allocation9 + $0x800] sm:$0xf]  ;;  %3841 = vmatpush.bf16.msrb.mxu2 %v6732_v45  ;;  %v6125_v44 = vld [vmem:[#allocation9 + $0x7e0] sm:$0xf0] }
  0xbb   :  { %v7502_v49 = vld [vmem:[#allocation9 + $0x81c] sm:$0xf0]  ;;  %v7282_v45 = vld [vmem:[#allocation9 + $0x144] sm:$0xf] }
  0xbc   :  { %v6411_v50 = vld [vmem:[#allocation9 + $0xa00] sm:$0xf]  ;;  %v6156_v51 = vor.u32 %v7502_v49, %v6155_v48  ;;  %3855 = vmatpush.bf16.msrb.mxu3 %v6988_v47  ;;  %v535_v3 = vpop.f32.mrf.mxu0  ;;  %v549_v5 = vpop.f32.mrf.mxu1  ;;  %v5293_v46 = vld [vmem:[#allocation9 + $0x160] sm:$0xf0] }
  0xbd   :  { %v7566_v52 = vld [vmem:[#allocation9 + $0xa1c] sm:$0xf0]  ;;  %v536_v7 = vadd.f32 %v535_v3, %v184_v4  ;;  %v550_v8 = vadd.f32 %v549_v5, %v185_v6  ;;  %v7346_v49 = vld [vmem:[#allocation9 + $0x344] sm:$0xf] }
  0xbe   :  { %v6412_v53 = vor.u32 %v7566_v52, %v6411_v50  ;;  %v6699_v54 = vld [vmem:[#allocation9 + $0xc40] sm:$0xf]  ;;  %3815 = vmatpush.bf16.msrb.mxu0 %v6156_v51  ;;  %v5549_v50 = vld [vmem:[#allocation9 + $0x360] sm:$0xf0] }
  0xbf   :  { %v7638_v55 = vld [vmem:[#allocation9 + $0xc5c] sm:$0xf0]  ;;  %v638_v12 = vmax.f32 %v536_v7, 0.0  ;;  %v639_v17 = vmax.f32 %v550_v8, 0.0  ;;  %v5517_v3 = vld [vmem:[#allocation9 + $0x320] sm:$0xf0] }
  0xc0   :  { %v6955_v56 = vld [vmem:[#allocation9 + $0xe40] sm:$0xf]  ;;  %3829 = vmatpush.bf16.msrb.mxu1 %v6412_v53  ;;  %v6700_v58 = vor.u32 %v7638_v55, %v6699_v54  ;;  %v5872_v53 = vor.u32 %v7426_v39, %v5869_v40  ;;  %v6128_v55 = vor.u32 %v7490_v41, %v6125_v44  ;;  %v7410_v7 = vld [vmem:[#allocation9 + $0x544] sm:$0xf] }
  0xc1   :  { %v7702_v57 = vld [vmem:[#allocation9 + $0xe5c] sm:$0xf0]  ;;  %v5805_v8 = vld [vmem:[#allocation9 + $0x560] sm:$0xf0] }
  0xc2   :  { %v6956_v59 = vor.u32 %v7702_v57, %v6955_v56  ;;  %3842 = vmatpush.bf16.msrb.mxu2 %v6700_v58  ;;  %v6667_v60 = vld [vmem:[#allocation9 + $0xc00] sm:$0xf]  ;;  %v5296_v56 = vor.u32 %v7282_v45, %v5293_v46  ;;  %v7418_v57 = vld [vmem:[#allocation9 + $0x584] sm:$0xf]  ;;  %v5808_v16 = vor.u32 %v7410_v7, %v5805_v8  ;;  %v190_v8 = vperm.slane %v8050_v2, 6 }
  0xc3   :  { %v7630_v61 = vld [vmem:[#allocation9 + $0xc1c] sm:$0xf0]  ;;  %v5837_v58 = vld [vmem:[#allocation9 + $0x5a0] sm:$0xf0] }
  0xc4   :  { %3856 = vmatpush.bf16.msrb.mxu3 %v6956_v59  ;;  %v6668_v62 = vor.u32 %v7630_v61, %v6667_v60  ;;  %v6923_v63 = vld [vmem:[#allocation9 + $0xe00] sm:$0xf]  ;;  %v577_v10 = vpop.f32.mrf.mxu3  ;;  %v537_v11 = vpop.f32.mrf.mxu0  ;;  %v7482_v59 = vld [vmem:[#allocation9 + $0x784] sm:$0xf]  ;;  %v5552_v61 = vor.u32 %v7346_v49, %v5549_v50 }
  0xc5   :  { %v7694_v0 = vld [vmem:[#allocation9 + $0xe1c] sm:$0xf0]  ;;  %v563_v9 = vpop.f32.mrf.mxu2  ;;  %v538_v13 = vadd.f32 %v537_v11, %v184_v4  ;;  %v551_v14 = vpop.f32.mrf.mxu1  ;;  %v578_v34 = vadd.f32 %v577_v10, %v187_v22  ;;  %v5840_v4 = vor.u32 %v7418_v57, %v5837_v58  ;;  %v6061_v11 = vld [vmem:[#allocation9 + $0x760] sm:$0xf0] }
  0xc6   :  { %v6924_v1 = vor.u32 %v7694_v0, %v6923_v63  ;;  %3843 = vmatpush.bf16.msrb.mxu2 %v6668_v62  ;;  %v552_v19 = vadd.f32 %v551_v14, %v185_v6  ;;  %v564_v30 = vadd.f32 %v563_v9, %v186_v18  ;;  %v6093_v62 = vld [vmem:[#allocation9 + $0x7a0] sm:$0xf0] }
  0xc7   :  { %v646_v23 = vmax.f32 %v538_v13, 0.0  ;;  %v641_v51 = vmax.f32 %v578_v34, 0.0  ;;  %v7274_v63 = vld [vmem:[#allocation9 + $0x104] sm:$0xf]  ;;  %v6096_v5 = vor.u32 %v7482_v59, %v6093_v62 }
  0xc8   :  { %3857 = vmatpush.bf16.msrb.mxu3 %v6924_v1  ;;  %v647_v24 = vmax.f32 %v552_v19, 0.0  ;;  %v640_v47 = vmax.f32 %v564_v30, 0.0  ;;  %v5261_v0 = vld [vmem:[#allocation9 + $0x120] sm:$0xf0] }
  0xc9   :  { %v8056_v26 = vpack.c.bf16 %v646_v23, %v638_v12  ;;  %v7338_v1 = vld [vmem:[#allocation9 + $0x304] sm:$0xf]  ;;  %v5264_v6 = vor.u32 %v7274_v63, %v5261_v0 }
  0xca   :  { %v8058_v31 = vpack.c.bf16 %v647_v24, %v639_v17  ;;  %v7474_v9 = vld [vmem:[#allocation9 + $0x744] sm:$0xf]  ;;  %v5520_v10 = vor.u32 %v7338_v1, %v5517_v3 }
  0xcb   :  { %3760 = vmatmul.bf16.vlgmr.msra.gmra.mxu0 %v8056_v26  ;;  %v7266_v12 = vld [vmem:[#allocation9 + $0xc4] sm:$0xf]  ;;  %v6064_v17 = vor.u32 %v7474_v9, %v6061_v11 }
  0xcc   :  { %v579_v37 = vpop.f32.mrf.mxu3  ;;  %3774 = vmatmul.bf16.vlgmr.msra.gmra.mxu1 %v8058_v31  ;;  %3864 = vmatpush.bf16.msra.mxu0 %v5360_v25  ;;  %v5229_v13 = vld [vmem:[#allocation9 + $0xe0] sm:$0xf0] }
  0xcd   :  { %v565_v35 = vpop.f32.mrf.mxu2  ;;  %v580_v42 = vadd.f32 %v579_v37, %v187_v22  ;;  %3878 = vmatpush.bf16.msra.mxu1 %v5616_v27  ;;  %v7330_v14 = vld [vmem:[#allocation9 + $0x2c4] sm:$0xf] }
  0xce   :  { %v566_v36 = vadd.f32 %v565_v35, %v186_v18  ;;  %v5232_v18 = vor.u32 %v7266_v12, %v5229_v13  ;;  %v7402_v19 = vld [vmem:[#allocation9 + $0x504] sm:$0xf]  ;;  %v5488_v23 = vor.u32 %v7330_v14, %v5485_v15  ;;  %v191_v13 = vperm.slane %v8050_v2, 7 }
  0xcf   :  { %v649_v52 = vmax.f32 %v580_v42, 0.0  ;;  %v6029_v24 = vld [vmem:[#allocation9 + $0x720] sm:$0xf0]  ;;  %v5776_v34 = vor.u32 %v7402_v19, %v5773_v20 }
  0xd0   :  { %v648_v48 = vmax.f32 %v566_v36, 0.0  ;;  %3865 = vmatpush.bf16.msra.mxu0 %v5328_v38  ;;  %v7258_v25 = vld [vmem:[#allocation9 + $0x84] sm:$0xf]  ;;  %v6032_v35 = vor.u32 %v7466_v21, %v6029_v24 }
  0xd1   :  { %v8064_v60 = vpack.c.bf16 %v649_v52, %v641_v51  ;;  %3879 = vmatpush.bf16.msra.mxu1 %v5584_v43  ;;  %v5197_v27 = vld [vmem:[#allocation9 + $0xa0] sm:$0xf0] }
  0xd2   :  { %v8062_v54 = vpack.c.bf16 %v648_v48, %v640_v47  ;;  %v7322_v30 = vld [vmem:[#allocation9 + $0x284] sm:$0xf]  ;;  %v5200_v36 = vor.u32 %v7258_v25, %v5197_v27 }
  0xd3   :  { %3802 = vmatmul.bf16.vlgmr.msra.gmra.mxu3 %v8064_v60  ;;  %v7394_v37 = vld [vmem:[#allocation9 + $0x4c4] sm:$0xf]  ;;  %v5456_v40 = vor.u32 %v7322_v30, %v5453_v32 }
  0xd4   :  { %3788 = vmatmul.bf16.vlgmr.msra.gmra.mxu2 %v8062_v54  ;;  %3906 = vmatpush.bf16.msra.mxu3 %v6128_v55  ;;  %v5741_v38 = vld [vmem:[#allocation9 + $0x4e0] sm:$0xf0] }
  0xd5   :  { %3892 = vmatpush.bf16.msra.mxu2 %v5872_v53  ;;  %3866 = vmatpush.bf16.msra.mxu0 %v5296_v56  ;;  %v7458_v39 = vld [vmem:[#allocation9 + $0x6c4] sm:$0xf]  ;;  %v5744_v48 = vor.u32 %v7394_v37, %v5741_v38 }
  0xd6   :  { %3880 = vmatpush.bf16.msra.mxu1 %v5552_v61  ;;  %v5997_v41 = vld [vmem:[#allocation9 + $0x6e0] sm:$0xf0] }
  0xd7   :  { %v7250_v42 = vld [vmem:[#allocation9 + $0x44] sm:$0xf]  ;;  %v6000_v52 = vor.u32 %v7458_v39, %v5997_v41 }
  0xd8   :  { %3907 = vmatpush.bf16.msra.mxu3 %v6096_v5  ;;  %v5165_v43 = vld [vmem:[#allocation9 + $0x60] sm:$0xf0] }
  0xd9   :  { %3893 = vmatpush.bf16.msra.mxu2 %v5840_v4  ;;  %3867 = vmatpush.bf16.msra.mxu0 %v5264_v6  ;;  %v7314_v45 = vld [vmem:[#allocation9 + $0x244] sm:$0xf]  ;;  %v5168_v53 = vor.u32 %v7250_v42, %v5165_v43 }
  0xda   :  { %3881 = vmatpush.bf16.msra.mxu1 %v5520_v10  ;;  %v5421_v46 = vld [vmem:[#allocation9 + $0x260] sm:$0xf0] }
  0xdb   :  { %v7386_v49 = vld [vmem:[#allocation9 + $0x484] sm:$0xf]  ;;  %v5424_v61 = vor.u32 %v7314_v45, %v5421_v46 }
  0xdc   :  { %v591_v22 = vpop.f32.mrf.mxu0  ;;  %v605_v29 = vpop.f32.mrf.mxu1  ;;  %3908 = vmatpush.bf16.msra.mxu3 %v6064_v17  ;;  %v5709_v50 = vld [vmem:[#allocation9 + $0x4a0] sm:$0xf0] }
  0xdd   :  { %3894 = vmatpush.bf16.msra.mxu2 %v5808_v16  ;;  %3868 = vmatpush.bf16.msra.mxu0 %v5232_v18  ;;  %v592_v44 = vadd.f32 %v591_v22, %v188_v28  ;;  %v606_v47 = vadd.f32 %v605_v29, %v189_v33  ;;  %v7450_v55 = vld [vmem:[#allocation9 + $0x684] sm:$0xf]  ;;  %v5712_v10 = vor.u32 %v7386_v49, %v5709_v50 }
  0xde   :  { %3882 = vmatpush.bf16.msra.mxu1 %v5488_v23  ;;  %v5965_v56 = vld [vmem:[#allocation9 + $0x6a0] sm:$0xf0] }
  0xdf   :  { %v7242_v57 = vld [vmem:[#allocation9 + $0x4] sm:$0xf]  ;;  %v642_v1 = vmax.f32 %v592_v44, 0.0  ;;  %v643_v7 = vmax.f32 %v606_v47, 0.0  ;;  %v5968_v15 = vor.u32 %v7450_v55, %v5965_v56 }
  0xe0   :  { %3909 = vmatpush.bf16.msra.mxu3 %v6032_v35  ;;  %v5133_v62 = vld [vmem:[#allocation9 + $0x20] sm:$0xf0] }
  0xe1   :  { %3895 = vmatpush.bf16.msra.mxu2 %v5776_v34  ;;  %3869 = vmatpush.bf16.msra.mxu0 %v5200_v36  ;;  %v7306_v63 = vld [vmem:[#allocation9 + $0x204] sm:$0xf]  ;;  %v5136_v16 = vor.u32 %v7242_v57, %v5133_v62 }
  0xe2   :  { %3883 = vmatpush.bf16.msra.mxu1 %v5456_v40  ;;  %v5389_v0 = vld [vmem:[#allocation9 + $0x220] sm:$0xf0] }
  0xe3   :  { %v7554_v5 = vld [vmem:[#allocation9 + $0x9c4] sm:$0xf]  ;;  %v5392_v20 = vor.u32 %v7306_v63, %v5389_v0 }
  0xe4   :  { %v619_v51 = vpop.f32.mrf.mxu2  ;;  %v633_v58 = vpop.f32.mrf.mxu3  ;;  %v6381_v6 = vld [vmem:[#allocation9 + $0x9e0] sm:$0xf0]  ;;  %3910 = vmatpush.bf16.msra.mxu3 %v6000_v52 }
  0xe5   :  { %v593_v59 = vpop.f32.mrf.mxu0  ;;  %v607_v4 = vpop.f32.mrf.mxu1  ;;  %3896 = vmatpush.bf16.msra.mxu2 %v5744_v48  ;;  %v7618_v11 = vld [vmem:[#allocation9 + $0xbc4] sm:$0xf]  ;;  %3870 = vmatpush.bf16.msra.mxu0 %v5168_v53  ;;  %v6384_v24 = vor.u32 %v7554_v5, %v6381_v6  ;;  %v620_v25 = vadd.f32 %v619_v51, %v190_v8 }
  0xe6   :  { %v594_v3 = vadd.f32 %v593_v59, %v188_v28  ;;  %v608_v9 = vadd.f32 %v607_v4, %v189_v33  ;;  %v6637_v12 = vld [vmem:[#allocation9 + $0xbe0] sm:$0xf0]  ;;  %3884 = vmatpush.bf16.msra.mxu1 %v5424_v61  ;;  %v634_v33 = vadd.f32 %v633_v58, %v191_v13 }
  0xe7   :  { %v7378_v17 = vld [vmem:[#allocation9 + $0x444] sm:$0xf]  ;;  %v6640_v2 = vor.u32 %v7618_v11, %v6637_v12  ;;  %v644_v49 = vmax.f32 %v620_v25, 0.0 }
  0xe8   :  { %v650_v14 = vmax.f32 %v594_v3, 0.0  ;;  %v5677_v18 = vld [vmem:[#allocation9 + $0x460] sm:$0xf0]  ;;  %v651_v19 = vmax.f32 %v608_v9, 0.0  ;;  %3911 = vmatpush.bf16.msra.mxu3 %v5968_v15  ;;  %v645_v56 = vmax.f32 %v634_v33, 0.0 }
  0xe9   :  { %v7442_v21 = vld [vmem:[#allocation9 + $0x644] sm:$0xf]  ;;  %3897 = vmatpush.bf16.msra.mxu2 %v5712_v10  ;;  %v5680_v28 = vor.u32 %v7378_v17, %v5677_v18  ;;  %3871 = vmatpush.bf16.msra.mxu0 %v5136_v16 }
  0xea   :  { %v5933_v22 = vld [vmem:[#allocation9 + $0x660] sm:$0xf0]  ;;  %v8072_v23 = vpack.c.bf16 %v650_v14, %v642_v1  ;;  %v8074_v27 = vpack.c.bf16 %v651_v19, %v643_v7  ;;  %3885 = vmatpush.bf16.msra.mxu1 %v5392_v20 }
  0xeb   :  { %v7546_v29 = vld [vmem:[#allocation9 + $0x984] sm:$0xf]  ;;  %v5936_v35 = vor.u32 %v7442_v21, %v5933_v22 }
  0xec   :  { %v6349_v30 = vld [vmem:[#allocation9 + $0x9a0] sm:$0xf0]  ;;  %v621_v34 = vpop.f32.mrf.mxu2  ;;  %v635_v40 = vpop.f32.mrf.mxu3  ;;  %3816 = vmatmul.bf16.vlgmr.msrb.gmra.mxu0 %v8072_v23  ;;  %3830 = vmatmul.bf16.vlgmr.msrb.gmra.mxu1 %v8074_v27 }
  0xed   :  { %v7610_v32 = vld [vmem:[#allocation9 + $0xb84] sm:$0xf]  ;;  %v622_v39 = vadd.f32 %v621_v34, %v190_v8  ;;  %v636_v44 = vadd.f32 %v635_v40, %v191_v13  ;;  %3920 = vmatpush.bf16.msrb.mxu0 %v6384_v24  ;;  %v6352_v45 = vor.u32 %v7546_v29, %v6349_v30  ;;  %3898 = vmatpush.bf16.msra.mxu2 %v5680_v28 }
  0xee   :  { %v6605_v36 = vld [vmem:[#allocation9 + $0xba0] sm:$0xf0]  ;;  %3934 = vmatpush.bf16.msrb.mxu1 %v6640_v2  ;;  %3912 = vmatpush.bf16.msra.mxu3 %v5936_v35 }
  0xef   :  { %v7370_v37 = vld [vmem:[#allocation9 + $0x404] sm:$0xf]  ;;  %v652_v50 = vmax.f32 %v622_v39, 0.0  ;;  %v6608_v51 = vor.u32 %v7610_v32, %v6605_v36  ;;  %v653_v57 = vmax.f32 %v636_v44, 0.0 }
  0xf0   :  { %v5645_v38 = vld [vmem:[#allocation9 + $0x420] sm:$0xf0] }
  0xf1   :  { %v7434_v41 = vld [vmem:[#allocation9 + $0x604] sm:$0xf]  ;;  %v5648_v52 = vor.u32 %v7370_v37, %v5645_v38  ;;  %v8078_v62 = vpack.c.bf16 %v652_v50, %v644_v49  ;;  %v8080_v0 = vpack.c.bf16 %v653_v57, %v645_v56  ;;  %3921 = vmatpush.bf16.msrb.mxu0 %v6352_v45 }
  0xf2   :  { %v5901_v42 = vld [vmem:[#allocation9 + $0x620] sm:$0xf0]  ;;  %3935 = vmatpush.bf16.msrb.mxu1 %v6608_v51 }
  0xf3   :  { %v7682_v43 = vld [vmem:[#allocation9 + $0xdc4] sm:$0xf]  ;;  %v5904_v58 = vor.u32 %v7434_v41, %v5901_v42  ;;  %3899 = vmatpush.bf16.msra.mxu2 %v5648_v52  ;;  %3858 = vmatmul.bf16.vlgmr.msrb.gmra.mxu3 %v8080_v0 }
  0xf4   :  { %v6893_v46 = vld [vmem:[#allocation9 + $0xde0] sm:$0xf0]  ;;  %3844 = vmatmul.bf16.vlgmr.msrb.gmra.mxu2 %v8078_v62 }
  0xf5   :  { %v7746_v47 = vld [vmem:[#allocation9 + $0xfc4] sm:$0xf]  ;;  %v6896_v63 = vor.u32 %v7682_v43, %v6893_v46  ;;  %3913 = vmatpush.bf16.msra.mxu3 %v5904_v58 }
  0xf6   :  { %v7149_v48 = vld [vmem:[#allocation9 + $0xfe0] sm:$0xf0] }
  0xf7   :  { %v7538_v53 = vld [vmem:[#allocation9 + $0x944] sm:$0xf]  ;;  %v7152_v1 = vor.u32 %v7746_v47, %v7149_v48  ;;  %3948 = vmatpush.bf16.msrb.mxu2 %v6896_v63 }
  0xf8   :  { %v6317_v55 = vld [vmem:[#allocation9 + $0x960] sm:$0xf0] }
  0xf9   :  { %v7602_v59 = vld [vmem:[#allocation9 + $0xb44] sm:$0xf]  ;;  %v6320_v3 = vor.u32 %v7538_v53, %v6317_v55  ;;  %3962 = vmatpush.bf16.msrb.mxu3 %v7152_v1 }
  0xfa   :  { %v6573_v61 = vld [vmem:[#allocation9 + $0xb60] sm:$0xf0] }
  0xfb   :  { %v7674_v4 = vld [vmem:[#allocation9 + $0xd84] sm:$0xf]  ;;  %v6576_v7 = vor.u32 %v7602_v59, %v6573_v61  ;;  %3922 = vmatpush.bf16.msrb.mxu0 %v6320_v3 }
  0xfc   :  { %v6861_v5 = vld [vmem:[#allocation9 + $0xda0] sm:$0xf0]  ;;  %3872 = vmatmul.bf16.vlgmr.msra.gmra.mxu0 %v8056_v26  ;;  %3886 = vmatmul.bf16.vlgmr.msra.gmra.mxu1 %v8058_v31 }
  0xfd   :  { %v7738_v6 = vld [vmem:[#allocation9 + $0xf84] sm:$0xf]  ;;  %v6864_v13 = vor.u32 %v7674_v4, %v6861_v5  ;;  %3936 = vmatpush.bf16.msrb.mxu1 %v6576_v7  ;;  %v5363_v5 = vld [vmem:[#allocation9 + $0x1c8] sm:$0xf] }
  0xfe   :  { %v7117_v8 = vld [vmem:[#allocation9 + $0xfa0] sm:$0xf0]  ;;  %v7303_v7 = vld [vmem:[#allocation9 + $0x1e4] sm:$0xf0] }
  0xff   :  { %v7530_v9 = vld [vmem:[#allocation9 + $0x904] sm:$0xf]  ;;  %v7120_v14 = vor.u32 %v7738_v6, %v7117_v8  ;;  %3949 = vmatpush.bf16.msrb.mxu2 %v6864_v13  ;;  %v5619_v8 = vld [vmem:[#allocation9 + $0x3c8] sm:$0xf] }
 0x100   :  { %v6285_v10 = vld [vmem:[#allocation9 + $0x920] sm:$0xf0] }
 0x101   :  { %v7594_v11 = vld [vmem:[#allocation9 + $0xb04] sm:$0xf]  ;;  %v6288_v15 = vor.u32 %v7530_v9, %v6285_v10  ;;  %3963 = vmatpush.bf16.msrb.mxu3 %v7120_v14  ;;  %v7367_v9 = vld [vmem:[#allocation9 + $0x3e4] sm:$0xf0] }
 0x102   :  { %v6541_v12 = vld [vmem:[#allocation9 + $0xb20] sm:$0xf0] }
 0x103   :  { %v7666_v16 = vld [vmem:[#allocation9 + $0xd44] sm:$0xf]  ;;  %v6544_v18 = vor.u32 %v7594_v11, %v6541_v12  ;;  %3923 = vmatpush.bf16.msrb.mxu0 %v6288_v15  ;;  %3914 = vmatmul.bf16.vlgmr.msra.gmra.mxu3 %v8064_v60 }
 0x104   :  { %v6829_v17 = vld [vmem:[#allocation9 + $0xd60] sm:$0xf0]  ;;  %3900 = vmatmul.bf16.vlgmr.msra.gmra.mxu2 %v8062_v54 }
 0x105   :  { %v7730_v19 = vld [vmem:[#allocation9 + $0xf44] sm:$0xf]  ;;  %v6832_v2 = vor.u32 %v7666_v16, %v6829_v17  ;;  %3937 = vmatpush.bf16.msrb.mxu1 %v6544_v18  ;;  %v5364_v17 = vor.u32 %v7303_v7, %v5363_v5  ;;  %v5620_v18 = vor.u32 %v7367_v9, %v5619_v8  ;;  %v5235_v5 = vld [vmem:[#allocation9 + $0xc8] sm:$0xf] }
 0x106   :  { %v7085_v20 = vld [vmem:[#allocation9 + $0xf60] sm:$0xf0]  ;;  %v5491_v7 = vld [vmem:[#allocation9 + $0x2c8] sm:$0xf] }
 0x107   :  { %v7522_v21 = vld [vmem:[#allocation9 + $0x8c4] sm:$0xf]  ;;  %v7088_v28 = vor.u32 %v7730_v19, %v7085_v20  ;;  %3950 = vmatpush.bf16.msrb.mxu2 %v6832_v2  ;;  %v5331_v19 = vld [vmem:[#allocation9 + $0x188] sm:$0xf] }
 0x108   :  { %v6253_v22 = vld [vmem:[#allocation9 + $0x8e0] sm:$0xf0]  ;;  %v7335_v8 = vld [vmem:[#allocation9 + $0x2e4] sm:$0xf0] }
 0x109   :  { %v7586_v24 = vld [vmem:[#allocation9 + $0xac4] sm:$0xf]  ;;  %v6256_v32 = vor.u32 %v7522_v21, %v6253_v22  ;;  %3964 = vmatpush.bf16.msrb.mxu3 %v7088_v28  ;;  %v7295_v21 = vld [vmem:[#allocation9 + $0x1a4] sm:$0xf0] }
 0x10a   :  { %v6509_v25 = vld [vmem:[#allocation9 + $0xae0] sm:$0xf0]  ;;  %v5587_v22 = vld [vmem:[#allocation9 + $0x388] sm:$0xf] }
 0x10b   :  { %v7658_v29 = vld [vmem:[#allocation9 + $0xd04] sm:$0xf]  ;;  %v6512_v33 = vor.u32 %v7586_v24, %v6509_v25  ;;  %3924 = vmatpush.bf16.msrb.mxu0 %v6256_v32  ;;  %v7359_v24 = vld [vmem:[#allocation9 + $0x3a4] sm:$0xf0] }
 0x10c   :  { %v6797_v30 = vld [vmem:[#allocation9 + $0xd20] sm:$0xf0]  ;;  %v5875_v32 = vld [vmem:[#allocation9 + $0x5c8] sm:$0xf] }
 0x10d   :  { %v7722_v34 = vld [vmem:[#allocation9 + $0xf04] sm:$0xf]  ;;  %v6800_v40 = vor.u32 %v7658_v29, %v6797_v30  ;;  %3938 = vmatpush.bf16.msrb.mxu1 %v6512_v33  ;;  %v7431_v33 = vld [vmem:[#allocation9 + $0x5e4] sm:$0xf0] }
 0x10e   :  { %v7053_v35 = vld [vmem:[#allocation9 + $0xf20] sm:$0xf0] }
 0x10f   :  { %v7514_v36 = vld [vmem:[#allocation9 + $0x884] sm:$0xf]  ;;  %v7056_v41 = vor.u32 %v7722_v34, %v7053_v35  ;;  %3951 = vmatpush.bf16.msrb.mxu2 %v6800_v40  ;;  %v5332_v34 = vor.u32 %v7295_v21, %v5331_v19  ;;  %v5588_v35 = vor.u32 %v7359_v24, %v5587_v22  ;;  %v7287_v40 = vld [vmem:[#allocation9 + $0x164] sm:$0xf0] }
 0x110   :  { %v6221_v37 = vld [vmem:[#allocation9 + $0x8a0] sm:$0xf0]  ;;  %v5459_v19 = vld [vmem:[#allocation9 + $0x288] sm:$0xf] }
 0x111   :  { %v7578_v38 = vld [vmem:[#allocation9 + $0xa84] sm:$0xf]  ;;  %v6224_v44 = vor.u32 %v7514_v36, %v6221_v37  ;;  %3965 = vmatpush.bf16.msrb.mxu3 %v7056_v41  ;;  %v6131_v36 = vld [vmem:[#allocation9 + $0x7c8] sm:$0xf] }
 0x112   :  { %v6477_v39 = vld [vmem:[#allocation9 + $0xaa0] sm:$0xf0]  ;;  %v7495_v37 = vld [vmem:[#allocation9 + $0x7e4] sm:$0xf0] }
 0x113   :  { %v7650_v42 = vld [vmem:[#allocation9 + $0xcc4] sm:$0xf]  ;;  %v6480_v45 = vor.u32 %v7578_v38, %v6477_v39  ;;  %3925 = vmatpush.bf16.msrb.mxu0 %v6224_v44  ;;  %v5299_v38 = vld [vmem:[#allocation9 + $0x148] sm:$0xf]  ;;  %v5876_v44 = vor.u32 %v7431_v33, %v5875_v32 }
 0x114   :  { %v6765_v43 = vld [vmem:[#allocation9 + $0xce0] sm:$0xf0]  ;;  %v5555_v41 = vld [vmem:[#allocation9 + $0x348] sm:$0xf] }
 0x115   :  { %v7714_v46 = vld [vmem:[#allocation9 + $0xec4] sm:$0xf]  ;;  %v6768_v52 = vor.u32 %v7650_v42, %v6765_v43  ;;  %3939 = vmatpush.bf16.msrb.mxu1 %v6480_v45  ;;  %v7351_v42 = vld [vmem:[#allocation9 + $0x364] sm:$0xf0]  ;;  %v6132_v45 = vor.u32 %v7495_v37, %v6131_v36 }
 0x116   :  { %v7021_v47 = vld [vmem:[#allocation9 + $0xee0] sm:$0xf0]  ;;  %v5747_v24 = vld [vmem:[#allocation9 + $0x4c8] sm:$0xf] }
 0x117   :  { %v7506_v48 = vld [vmem:[#allocation9 + $0x844] sm:$0xf]  ;;  %v7024_v53 = vor.u32 %v7714_v46, %v7021_v47  ;;  %3952 = vmatpush.bf16.msrb.mxu2 %v6768_v52  ;;  %v5843_v46 = vld [vmem:[#allocation9 + $0x588] sm:$0xf] }
 0x118   :  { %v6189_v49 = vld [vmem:[#allocation9 + $0x860] sm:$0xf0]  ;;  %v7423_v47 = vld [vmem:[#allocation9 + $0x5a4] sm:$0xf0] }
 0x119   :  { %v7570_v50 = vld [vmem:[#allocation9 + $0xa44] sm:$0xf]  ;;  %v6192_v58 = vor.u32 %v7506_v48, %v6189_v49  ;;  %3966 = vmatpush.bf16.msrb.mxu3 %v7024_v53  ;;  %v5300_v48 = vor.u32 %v7287_v40, %v5299_v38  ;;  %v5556_v49 = vor.u32 %v7351_v42, %v5555_v41  ;;  %v5267_v52 = vld [vmem:[#allocation9 + $0x108] sm:$0xf] }
 0x11a   :  { %v6445_v51 = vld [vmem:[#allocation9 + $0xa60] sm:$0xf0]  ;;  %v7279_v53 = vld [vmem:[#allocation9 + $0x124] sm:$0xf0] }
 0x11b   :  { %v7642_v55 = vld [vmem:[#allocation9 + $0xc84] sm:$0xf]  ;;  %v6448_v59 = vor.u32 %v7570_v50, %v6445_v51  ;;  %3926 = vmatpush.bf16.msrb.mxu0 %v6192_v58  ;;  %v6099_v50 = vld [vmem:[#allocation9 + $0x788] sm:$0xf] }
 0x11c   :  { %v6733_v56 = vld [vmem:[#allocation9 + $0xca0] sm:$0xf0]  ;;  %v7487_v51 = vld [vmem:[#allocation9 + $0x7a4] sm:$0xf0] }
 0x11d   :  { %v7706_v57 = vld [vmem:[#allocation9 + $0xe84] sm:$0xf]  ;;  %v6736_v6 = vor.u32 %v7642_v55, %v6733_v56  ;;  %3940 = vmatpush.bf16.msrb.mxu1 %v6448_v59  ;;  %v5523_v55 = vld [vmem:[#allocation9 + $0x308] sm:$0xf]  ;;  %v6100_v58 = vor.u32 %v7487_v51, %v6099_v50 }
 0x11e   :  { %v6989_v61 = vld [vmem:[#allocation9 + $0xea0] sm:$0xf0]  ;;  %v7343_v56 = vld [vmem:[#allocation9 + $0x324] sm:$0xf0] }
 0x11f   :  { %v7498_v63 = vld [vmem:[#allocation9 + $0x804] sm:$0xf]  ;;  %v6992_v10 = vor.u32 %v7706_v57, %v6989_v61  ;;  %3953 = vmatpush.bf16.msrb.mxu2 %v6736_v6  ;;  %v5844_v57 = vor.u32 %v7423_v47, %v5843_v46  ;;  %v5811_v59 = vld [vmem:[#allocation9 + $0x548] sm:$0xf] }
 0x120   :  { %v6157_v1 = vld [vmem:[#allocation9 + $0x820] sm:$0xf0]  ;;  %v7415_v61 = vld [vmem:[#allocation9 + $0x564] sm:$0xf0] }
 0x121   :  { %v7562_v3 = vld [vmem:[#allocation9 + $0xa04] sm:$0xf]  ;;  %v6160_v13 = vor.u32 %v7498_v63, %v6157_v1  ;;  %3967 = vmatpush.bf16.msrb.mxu3 %v6992_v10  ;;  %v5268_v63 = vor.u32 %v7279_v53, %v5267_v52  ;;  %v5524_v1 = vor.u32 %v7343_v56, %v5523_v55  ;;  %v7271_v6 = vld [vmem:[#allocation9 + $0xe4] sm:$0xf0]  ;;  %v5812_v9 = vor.u32 %v7415_v61, %v5811_v59 }
 0x122   :  { %v6413_v4 = vld [vmem:[#allocation9 + $0xa20] sm:$0xf0]  ;;  %v5171_v32 = vld [vmem:[#allocation9 + $0x48] sm:$0xf] }
 0x123   :  { %v7634_v11 = vld [vmem:[#allocation9 + $0xc44] sm:$0xf]  ;;  %v6416_v14 = vor.u32 %v7562_v3, %v6413_v4  ;;  %3927 = vmatpush.bf16.msrb.mxu0 %v6160_v13  ;;  %v6067_v3 = vld [vmem:[#allocation9 + $0x748] sm:$0xf]  ;;  %v5236_v13 = vor.u32 %v7271_v6, %v5235_v5 }
 0x124   :  { %v6701_v12 = vld [vmem:[#allocation9 + $0xc60] sm:$0xf0]  ;;  %v7479_v4 = vld [vmem:[#allocation9 + $0x764] sm:$0xf0] }
 0x125   :  { %v7698_v15 = vld [vmem:[#allocation9 + $0xe44] sm:$0xf]  ;;  %v6704_v20 = vor.u32 %v7634_v11, %v6701_v12  ;;  %3941 = vmatpush.bf16.msrb.mxu1 %v6416_v14  ;;  %v6068_v10 = vor.u32 %v7479_v4, %v6067_v3  ;;  %v5779_v11 = vld [vmem:[#allocation9 + $0x508] sm:$0xf]  ;;  %v5492_v14 = vor.u32 %v7335_v8, %v5491_v7 }
 0x126   :  { %v6957_v16 = vld [vmem:[#allocation9 + $0xe60] sm:$0xf0]  ;;  %3928 = vmatmul.bf16.vlgmr.msrb.gmra.mxu0 %v8072_v23  ;;  %v7407_v12 = vld [vmem:[#allocation9 + $0x524] sm:$0xf0] }
 0x127   :  { %v6960_v25 = vor.u32 %v7698_v15, %v6957_v16  ;;  %v7626_v2 = vld [vmem:[#allocation9 + $0xc04] sm:$0xf]  ;;  %3976 = vmatpush.bf16.msra.mxu0 %v5364_v17  ;;  %3954 = vmatpush.bf16.msrb.mxu2 %v6704_v20  ;;  %v6035_v15 = vld [vmem:[#allocation9 + $0x708] sm:$0xf]  ;;  %v5780_v21 = vor.u32 %v7407_v12, %v5779_v11 }
 0x128   :  { %v6669_v28 = vld [vmem:[#allocation9 + $0xc20] sm:$0xf0]  ;;  %3942 = vmatmul.bf16.vlgmr.msrb.gmra.mxu1 %v8074_v27  ;;  %v7471_v16 = vld [vmem:[#allocation9 + $0x724] sm:$0xf0] }
 0x129   :  { %v7690_v29 = vld [vmem:[#allocation9 + $0xe04] sm:$0xf]  ;;  %3990 = vmatpush.bf16.msra.mxu1 %v5620_v18  ;;  %v6672_v39 = vor.u32 %v7626_v2, %v6669_v28  ;;  %3968 = vmatpush.bf16.msrb.mxu3 %v6960_v25  ;;  %v5203_v17 = vld [vmem:[#allocation9 + $0x88] sm:$0xf]  ;;  %v6036_v22 = vor.u32 %v7471_v16, %v6035_v15 }
 0x12a   :  { %v6925_v30 = vld [vmem:[#allocation9 + $0xe20] sm:$0xf0]  ;;  %v7263_v18 = vld [vmem:[#allocation9 + $0xa4] sm:$0xf0] }
 0x12b   :  { %v6928_v43 = vor.u32 %v7690_v29, %v6925_v30  ;;  %3977 = vmatpush.bf16.msra.mxu0 %v5332_v34  ;;  %3955 = vmatpush.bf16.msrb.mxu2 %v6672_v39  ;;  %v7327_v20 = vld [vmem:[#allocation9 + $0x2a4] sm:$0xf0]  ;;  %v5204_v2 = vor.u32 %v7263_v18, %v5203_v17 }
 0x12c   :  { %v7399_v25 = vld [vmem:[#allocation9 + $0x4e4] sm:$0xf0]  ;;  %v5460_v28 = vor.u32 %v7327_v20, %v5459_v19 }
 0x12d   :  { %3991 = vmatpush.bf16.msra.mxu1 %v5588_v35  ;;  %3969 = vmatpush.bf16.msrb.mxu3 %v6928_v43  ;;  %v6003_v29 = vld [vmem:[#allocation9 + $0x6c8] sm:$0xf]  ;;  %v5748_v36 = vor.u32 %v7399_v25, %v5747_v24 }
 0x12e   :  { %3956 = vmatmul.bf16.vlgmr.msrb.gmra.mxu2 %v8078_v62  ;;  %v7463_v30 = vld [vmem:[#allocation9 + $0x6e4] sm:$0xf0] }
 0x12f   :  { %4004 = vmatpush.bf16.msra.mxu2 %v5876_v44  ;;  %3978 = vmatpush.bf16.msra.mxu0 %v5300_v48  ;;  %v7255_v33 = vld [vmem:[#allocation9 + $0x64] sm:$0xf0]  ;;  %v6004_v37 = vor.u32 %v7463_v30, %v6003_v29 }
 0x130   :  { %3970 = vmatmul.bf16.vlgmr.msrb.gmra.mxu3 %v8080_v0  ;;  %v5427_v34 = vld [vmem:[#allocation9 + $0x248] sm:$0xf]  ;;  %v5172_v41 = vor.u32 %v7255_v33, %v5171_v32 }
 0x131   :  { %4018 = vmatpush.bf16.msra.mxu3 %v6132_v45  ;;  %3992 = vmatpush.bf16.msra.mxu1 %v5556_v49  ;;  %v7319_v35 = vld [vmem:[#allocation9 + $0x264] sm:$0xf0] }
 0x132   :  { %v5715_v38 = vld [vmem:[#allocation9 + $0x488] sm:$0xf]  ;;  %v5428_v42 = vor.u32 %v7319_v35, %v5427_v34 }
 0x133   :  { %4005 = vmatpush.bf16.msra.mxu2 %v5844_v57  ;;  %3979 = vmatpush.bf16.msra.mxu0 %v5268_v63  ;;  %v7391_v39 = vld [vmem:[#allocation9 + $0x4a4] sm:$0xf0] }
 0x134   :  { %v5971_v40 = vld [vmem:[#allocation9 + $0x688] sm:$0xf]  ;;  %v5716_v49 = vor.u32 %v7391_v39, %v5715_v38 }
 0x135   :  { %4019 = vmatpush.bf16.msra.mxu3 %v6100_v58  ;;  %3993 = vmatpush.bf16.msra.mxu1 %v5524_v1  ;;  %v7455_v43 = vld [vmem:[#allocation9 + $0x6a4] sm:$0xf0] }
 0x136   :  { %v5139_v44 = vld [vmem:[#allocation9 + $0x8] sm:$0xf]  ;;  %v5972_v53 = vor.u32 %v7455_v43, %v5971_v40 }
 0x137   :  { %4006 = vmatpush.bf16.msra.mxu2 %v5812_v9  ;;  %3980 = vmatpush.bf16.msra.mxu0 %v5236_v13  ;;  %v7247_v45 = vld [vmem:[#allocation9 + $0x24] sm:$0xf0] }
 0x138   :  { %v5395_v46 = vld [vmem:[#allocation9 + $0x208] sm:$0xf]  ;;  %v5140_v57 = vor.u32 %v7247_v45, %v5139_v44 }
 0x139   :  { %4020 = vmatpush.bf16.msra.mxu3 %v6068_v10  ;;  %3994 = vmatpush.bf16.msra.mxu1 %v5492_v14  ;;  %v7311_v47 = vld [vmem:[#allocation9 + $0x224] sm:$0xf0] }
 0x13a   :  { %v6387_v48 = vld [vmem:[#allocation9 + $0x9c8] sm:$0xf]  ;;  %v5396_v58 = vor.u32 %v7311_v47, %v5395_v46 }
 0x13b   :  { %4007 = vmatpush.bf16.msra.mxu2 %v5780_v21  ;;  %3981 = vmatpush.bf16.msra.mxu0 %v5204_v2  ;;  %v7559_v50 = vld [vmem:[#allocation9 + $0x9e4] sm:$0xf0] }
 0x13c   :  { %v6643_v51 = vld [vmem:[#allocation9 + $0xbc8] sm:$0xf]  ;;  %v6388_v63 = vor.u32 %v7559_v50, %v6387_v48 }
 0x13d   :  { %4021 = vmatpush.bf16.msra.mxu3 %v6036_v22  ;;  %3995 = vmatpush.bf16.msra.mxu1 %v5460_v28  ;;  %v7623_v52 = vld [vmem:[#allocation9 + $0xbe4] sm:$0xf0] }
 0x13e   :  { %v5683_v55 = vld [vmem:[#allocation9 + $0x448] sm:$0xf]  ;;  %v6644_v1 = vor.u32 %v7623_v52, %v6643_v51 }
 0x13f   :  { %4008 = vmatpush.bf16.msra.mxu2 %v5748_v36  ;;  %v7383_v56 = vld [vmem:[#allocation9 + $0x464] sm:$0xf0]  ;;  %3982 = vmatpush.bf16.msra.mxu0 %v5172_v41 }
 0x140   :  { %v5939_v59 = vld [vmem:[#allocation9 + $0x648] sm:$0xf]  ;;  %v5684_v4 = vor.u32 %v7383_v56, %v5683_v55 }
 0x141   :  { %4022 = vmatpush.bf16.msra.mxu3 %v6004_v37  ;;  %3996 = vmatpush.bf16.msra.mxu1 %v5428_v42  ;;  %v7447_v61 = vld [vmem:[#allocation9 + $0x664] sm:$0xf0] }
 0x142   :  { %v6355_v3 = vld [vmem:[#allocation9 + $0x988] sm:$0xf]  ;;  %v5940_v8 = vor.u32 %v7447_v61, %v5939_v59 }
 0x143   :  { %4009 = vmatpush.bf16.msra.mxu2 %v5716_v49  ;;  %v7551_v5 = vld [vmem:[#allocation9 + $0x9a4] sm:$0xf0]  ;;  %3983 = vmatpush.bf16.msra.mxu0 %v5140_v57 }
 0x144   :  { %v6611_v6 = vld [vmem:[#allocation9 + $0xb88] sm:$0xf]  ;;  %v6356_v15 = vor.u32 %v7551_v5, %v6355_v3 }
 0x145   :  { %v7615_v7 = vld [vmem:[#allocation9 + $0xba4] sm:$0xf0]  ;;  %4023 = vmatpush.bf16.msra.mxu3 %v5972_v53  ;;  %3997 = vmatpush.bf16.msra.mxu1 %v5396_v58 }
 0x146   :  { %v5651_v9 = vld [vmem:[#allocation9 + $0x408] sm:$0xf]  ;;  %v6612_v16 = vor.u32 %v7615_v7, %v6611_v6  ;;  %3984 = vmatmul.bf16.vlgmr.msra.gmra.mxu0 %v8056_v26 }
 0x147   :  { %v7375_v10 = vld [vmem:[#allocation9 + $0x424] sm:$0xf0]  ;;  %4032 = vmatpush.bf16.msrb.mxu0 %v6388_v63  ;;  %4010 = vmatpush.bf16.msra.mxu2 %v5684_v4 }
 0x148   :  { %v5907_v11 = vld [vmem:[#allocation9 + $0x608] sm:$0xf]  ;;  %v5652_v19 = vor.u32 %v7375_v10, %v5651_v9  ;;  %3998 = vmatmul.bf16.vlgmr.msra.gmra.mxu1 %v8058_v31 }
 0x149   :  { %v7439_v12 = vld [vmem:[#allocation9 + $0x624] sm:$0xf0]  ;;  %4046 = vmatpush.bf16.msrb.mxu1 %v6644_v1  ;;  %4024 = vmatpush.bf16.msra.mxu3 %v5940_v8 }
 0x14a   :  { %v6899_v13 = vld [vmem:[#allocation9 + $0xdc8] sm:$0xf]  ;;  %v5908_v22 = vor.u32 %v7439_v12, %v5907_v11 }
 0x14b   :  { %v7687_v14 = vld [vmem:[#allocation9 + $0xde4] sm:$0xf0]  ;;  %4033 = vmatpush.bf16.msrb.mxu0 %v6356_v15  ;;  %4011 = vmatpush.bf16.msra.mxu2 %v5652_v19 }
 0x14c   :  { %v7155_v17 = vld [vmem:[#allocation9 + $0xfc8] sm:$0xf]  ;;  %v6900_v24 = vor.u32 %v7687_v14, %v6899_v13 }
 0x14d   :  { %v7751_v18 = vld [vmem:[#allocation9 + $0xfe4] sm:$0xf0]  ;;  %4047 = vmatpush.bf16.msrb.mxu1 %v6612_v16  ;;  %4025 = vmatpush.bf16.msra.mxu3 %v5908_v22 }
 0x14e   :  { %v6323_v20 = vld [vmem:[#allocation9 + $0x948] sm:$0xf]  ;;  %v7156_v28 = vor.u32 %v7751_v18, %v7155_v17  ;;  %4012 = vmatmul.bf16.vlgmr.msra.gmra.mxu2 %v8062_v54 }
 0x14f   :  { %v7543_v21 = vld [vmem:[#allocation9 + $0x964] sm:$0xf0]  ;;  %4060 = vmatpush.bf16.msrb.mxu2 %v6900_v24 }
 0x150   :  { %v6579_v25 = vld [vmem:[#allocation9 + $0xb48] sm:$0xf]  ;;  %v6324_v32 = vor.u32 %v7543_v21, %v6323_v20  ;;  %4026 = vmatmul.bf16.vlgmr.msra.gmra.mxu3 %v8064_v60 }
 0x151   :  { %v7607_v2 = vld [vmem:[#allocation9 + $0xb64] sm:$0xf0]  ;;  %4074 = vmatpush.bf16.msrb.mxu3 %v7156_v28 }
 0x152   :  { %v6867_v29 = vld [vmem:[#allocation9 + $0xd88] sm:$0xf]  ;;  %v6580_v35 = vor.u32 %v7607_v2, %v6579_v25  ;;  %4034 = vmatpush.bf16.msrb.mxu0 %v6324_v32 }
 0x153   :  { %v7679_v30 = vld [vmem:[#allocation9 + $0xda4] sm:$0xf0] }
 0x154   :  { %v7123_v33 = vld [vmem:[#allocation9 + $0xf88] sm:$0xf]  ;;  %v6868_v38 = vor.u32 %v7679_v30, %v6867_v29  ;;  %4048 = vmatpush.bf16.msrb.mxu1 %v6580_v35  ;;  %v7363_v35 = vld [vmem:[#allocation9 + $0x3cc] sm:$0xf] }
 0x155   :  { %v7743_v34 = vld [vmem:[#allocation9 + $0xfa4] sm:$0xf0] }
 0x156   :  { %v6291_v36 = vld [vmem:[#allocation9 + $0x908] sm:$0xf]  ;;  %v7124_v41 = vor.u32 %v7743_v34, %v7123_v33  ;;  %4061 = vmatpush.bf16.msrb.mxu2 %v6868_v38  ;;  %v7299_v33 = vld [vmem:[#allocation9 + $0x1cc] sm:$0xf] }
 0x157   :  { %v7535_v37 = vld [vmem:[#allocation9 + $0x924] sm:$0xf0]  ;;  %v5365_v34 = vld [vmem:[#allocation9 + $0x1e8] sm:$0xf0] }
 0x158   :  { %v6547_v39 = vld [vmem:[#allocation9 + $0xb08] sm:$0xf]  ;;  %v6292_v44 = vor.u32 %v7535_v37, %v6291_v36  ;;  %4075 = vmatpush.bf16.msrb.mxu3 %v7124_v41  ;;  %v5621_v37 = vld [vmem:[#allocation9 + $0x3e8] sm:$0xf0] }
 0x159   :  { %v7599_v40 = vld [vmem:[#allocation9 + $0xb24] sm:$0xf0] }
 0x15a   :  { %v6835_v42 = vld [vmem:[#allocation9 + $0xd48] sm:$0xf]  ;;  %v6548_v47 = vor.u32 %v7599_v40, %v6547_v39  ;;  %4035 = vmatpush.bf16.msrb.mxu0 %v6292_v44  ;;  %v5368_v44 = vor.u32 %v7299_v33, %v5365_v34  ;;  %v7475_v34 = vld [vmem:[#allocation9 + $0x74c] sm:$0xf] }
 0x15b   :  { %v7671_v43 = vld [vmem:[#allocation9 + $0xd64] sm:$0xf0] }
 0x15c   :  { %v7091_v45 = vld [vmem:[#allocation9 + $0xf48] sm:$0xf]  ;;  %v6836_v50 = vor.u32 %v7671_v43, %v6835_v42  ;;  %4049 = vmatpush.bf16.msrb.mxu1 %v6548_v47 }
 0x15d   :  { %v7735_v46 = vld [vmem:[#allocation9 + $0xf64] sm:$0xf0] }
 0x15e   :  { %v6259_v48 = vld [vmem:[#allocation9 + $0x8c8] sm:$0xf]  ;;  %v7092_v53 = vor.u32 %v7735_v46, %v7091_v45  ;;  %4062 = vmatpush.bf16.msrb.mxu2 %v6836_v50  ;;  %v7291_v45 = vld [vmem:[#allocation9 + $0x18c] sm:$0xf]  ;;  %v5624_v46 = vor.u32 %v7363_v35, %v5621_v37 }
 0x15f   :  { %v7527_v49 = vld [vmem:[#allocation9 + $0x8e4] sm:$0xf0]  ;;  %v5589_v50 = vld [vmem:[#allocation9 + $0x3a8] sm:$0xf0] }
 0x160   :  { %v6515_v51 = vld [vmem:[#allocation9 + $0xac8] sm:$0xf]  ;;  %v6260_v57 = vor.u32 %v7527_v49, %v6259_v48  ;;  %4076 = vmatpush.bf16.msrb.mxu3 %v7092_v53  ;;  %v5333_v48 = vld [vmem:[#allocation9 + $0x1a8] sm:$0xf0] }
 0x161   :  { %v7591_v52 = vld [vmem:[#allocation9 + $0xae4] sm:$0xf0]  ;;  %v7355_v49 = vld [vmem:[#allocation9 + $0x38c] sm:$0xf] }
 0x162   :  { %v6803_v55 = vld [vmem:[#allocation9 + $0xd08] sm:$0xf]  ;;  %v6516_v61 = vor.u32 %v7591_v52, %v6515_v51  ;;  %4036 = vmatpush.bf16.msrb.mxu0 %v6260_v57  ;;  %v7427_v57 = vld [vmem:[#allocation9 + $0x5cc] sm:$0xf] }
 0x163   :  { %v7663_v56 = vld [vmem:[#allocation9 + $0xd24] sm:$0xf0]  ;;  %v6069_v35 = vld [vmem:[#allocation9 + $0x768] sm:$0xf0] }
 0x164   :  { %v7059_v58 = vld [vmem:[#allocation9 + $0xf08] sm:$0xf]  ;;  %v6804_v3 = vor.u32 %v7663_v56, %v6803_v55  ;;  %4050 = vmatpush.bf16.msrb.mxu1 %v6516_v61  ;;  %v7491_v61 = vld [vmem:[#allocation9 + $0x7cc] sm:$0xf] }
 0x165   :  { %v7727_v59 = vld [vmem:[#allocation9 + $0xf24] sm:$0xf0] }
 0x166   :  { %v6227_v63 = vld [vmem:[#allocation9 + $0x888] sm:$0xf]  ;;  %v7060_v6 = vor.u32 %v7727_v59, %v7059_v58  ;;  %4063 = vmatpush.bf16.msrb.mxu2 %v6804_v3  ;;  %v5877_v58 = vld [vmem:[#allocation9 + $0x5e8] sm:$0xf0]  ;;  %v5336_v59 = vor.u32 %v7291_v45, %v5333_v48  ;;  %v5592_v3 = vor.u32 %v7355_v49, %v5589_v50 }
 0x167   :  { %v7519_v1 = vld [vmem:[#allocation9 + $0x8a4] sm:$0xf0]  ;;  %v5781_v45 = vld [vmem:[#allocation9 + $0x528] sm:$0xf0] }
 0x168   :  { %v6483_v4 = vld [vmem:[#allocation9 + $0xa88] sm:$0xf]  ;;  %v6228_v9 = vor.u32 %v7519_v1, %v6227_v63  ;;  %4077 = vmatpush.bf16.msrb.mxu3 %v7060_v6  ;;  %v6133_v63 = vld [vmem:[#allocation9 + $0x7e8] sm:$0xf0]  ;;  %v8096_v1 = vld [vmem:[#allocation11] sm:$0xff] }
 0x169   :  { %v7583_v5 = vld [vmem:[#allocation9 + $0xaa4] sm:$0xf0]  ;;  %v5301_v6 = vld [vmem:[#allocation9 + $0x168] sm:$0xf0] }
 0x16a   :  { %v6771_v7 = vld [vmem:[#allocation9 + $0xcc8] sm:$0xf]  ;;  %v6484_v12 = vor.u32 %v7583_v5, %v6483_v4  ;;  %4037 = vmatpush.bf16.msrb.mxu0 %v6228_v9  ;;  %v7283_v5 = vld [vmem:[#allocation9 + $0x14c] sm:$0xf] }
 0x16b   :  { %v7655_v8 = vld [vmem:[#allocation9 + $0xce4] sm:$0xf0]  ;;  %v7347_v9 = vld [vmem:[#allocation9 + $0x34c] sm:$0xf] }
 0x16c   :  { %v7027_v10 = vld [vmem:[#allocation9 + $0xec8] sm:$0xf]  ;;  %v6772_v15 = vor.u32 %v7655_v8, %v6771_v7  ;;  %4051 = vmatpush.bf16.msrb.mxu1 %v6484_v12  ;;  %v5880_v8 = vor.u32 %v7427_v57, %v5877_v58  ;;  %v1176_v12 = vperm.slane %v8096_v1, 0  ;;  %v6037_v48 = vld [vmem:[#allocation9 + $0x728] sm:$0xf0] }
 0x16d   :  { %v7719_v11 = vld [vmem:[#allocation9 + $0xee4] sm:$0xf0]  ;;  %v7259_v50 = vld [vmem:[#allocation9 + $0x8c] sm:$0xf] }
 0x16e   :  { %v6195_v13 = vld [vmem:[#allocation9 + $0x848] sm:$0xf]  ;;  %v7028_v18 = vor.u32 %v7719_v11, %v7027_v10  ;;  %4064 = vmatpush.bf16.msrb.mxu2 %v6772_v15  ;;  %v5557_v10 = vld [vmem:[#allocation9 + $0x368] sm:$0xf0]  ;;  %v6136_v11 = vor.u32 %v7491_v61, %v6133_v63  ;;  %v5304_v15 = vor.u32 %v7283_v5, %v5301_v6 }
 0x16f   :  { %v7511_v14 = vld [vmem:[#allocation9 + $0x864] sm:$0xf0]  ;;  %v7395_v57 = vld [vmem:[#allocation9 + $0x4cc] sm:$0xf] }
 0x170   :  { %v6451_v16 = vld [vmem:[#allocation9 + $0xa48] sm:$0xf]  ;;  %v6196_v21 = vor.u32 %v7511_v14, %v6195_v13  ;;  %4078 = vmatpush.bf16.msrb.mxu3 %v7028_v18  ;;  %v7419_v13 = vld [vmem:[#allocation9 + $0x58c] sm:$0xf]  ;;  %v5560_v18 = vor.u32 %v7347_v9, %v5557_v10  ;;  %v3789_v9 = vpop.f32.mrf.mxu2 }
 0x171   :  { %v7575_v17 = vld [vmem:[#allocation9 + $0xa64] sm:$0xf0]  ;;  %v5845_v14 = vld [vmem:[#allocation9 + $0x5a8] sm:$0xf0] }
 0x172   :  { %v6739_v19 = vld [vmem:[#allocation9 + $0xc88] sm:$0xf]  ;;  %v6452_v2 = vor.u32 %v7575_v17, %v6451_v16  ;;  %4038 = vmatpush.bf16.msrb.mxu0 %v6196_v21  ;;  %v7483_v16 = vld [vmem:[#allocation9 + $0x78c] sm:$0xf]  ;;  %v3761_v21 = vpop.f32.mrf.mxu0 }
 0x173   :  { %v7647_v20 = vld [vmem:[#allocation9 + $0xca4] sm:$0xf0]  ;;  %v6101_v17 = vld [vmem:[#allocation9 + $0x7a8] sm:$0xf0] }
 0x174   :  { %v6995_v22 = vld [vmem:[#allocation9 + $0xe88] sm:$0xf]  ;;  %v6740_v32 = vor.u32 %v7647_v20, %v6739_v19  ;;  %4052 = vmatpush.bf16.msrb.mxu1 %v6452_v2  ;;  %v7275_v19 = vld [vmem:[#allocation9 + $0x10c] sm:$0xf]  ;;  %v3762_v2 = vadd.f32 %v3761_v21, %v1176_v12 }
 0x175   :  { %v7711_v24 = vld [vmem:[#allocation9 + $0xea4] sm:$0xf0]  ;;  %v5269_v20 = vld [vmem:[#allocation9 + $0x128] sm:$0xf0] }
 0x176   :  { %v6163_v25 = vld [vmem:[#allocation9 + $0x808] sm:$0xf]  ;;  %v6996_v36 = vor.u32 %v7711_v24, %v6995_v22  ;;  %4065 = vmatpush.bf16.msrb.mxu2 %v6740_v32  ;;  %v5848_v22 = vor.u32 %v7419_v13, %v5845_v14  ;;  %v7339_v24 = vld [vmem:[#allocation9 + $0x30c] sm:$0xf]  ;;  %v3775_v32 = vpop.f32.mrf.mxu1  ;;  %v5272_v33 = vor.u32 %v7275_v19, %v5269_v20  ;;  %v3803_v19 = vpop.f32.mrf.mxu3 }
 0x177   :  { %v7503_v28 = vld [vmem:[#allocation9 + $0x824] sm:$0xf0]  ;;  %v5749_v58 = vld [vmem:[#allocation9 + $0x4e8] sm:$0xf0] }
 0x178   :  { %v6419_v29 = vld [vmem:[#allocation9 + $0xa08] sm:$0xf]  ;;  %v6164_v40 = vor.u32 %v7503_v28, %v6163_v25  ;;  %4079 = vmatpush.bf16.msrb.mxu3 %v6996_v36  ;;  %v5525_v25 = vld [vmem:[#allocation9 + $0x328] sm:$0xf0]  ;;  %v6104_v28 = vor.u32 %v7483_v16, %v6101_v17  ;;  %v3776_v36 = vadd.f32 %v3775_v32, %v3762_v2  ;;  %v5752_v6 = vor.u32 %v7395_v57, %v5749_v58 }
 0x179   :  { %v7567_v30 = vld [vmem:[#allocation9 + $0xa24] sm:$0xf0]  ;;  %v5528_v37 = vor.u32 %v7339_v24, %v5525_v25  ;;  %v7459_v61 = vld [vmem:[#allocation9 + $0x6cc] sm:$0xf] }
 0x17a   :  { %v6707_v38 = vld [vmem:[#allocation9 + $0xc48] sm:$0xf]  ;;  %v6420_v43 = vor.u32 %v7567_v30, %v6419_v29  ;;  %4039 = vmatpush.bf16.msrb.mxu0 %v6164_v40  ;;  %v7411_v29 = vld [vmem:[#allocation9 + $0x54c] sm:$0xf]  ;;  %v3790_v14 = vadd.f32 %v3789_v9, %v3776_v36 }
 0x17b   :  { %v7639_v39 = vld [vmem:[#allocation9 + $0xc64] sm:$0xf0]  ;;  %v5813_v30 = vld [vmem:[#allocation9 + $0x568] sm:$0xf0] }
 0x17c   :  { %v6963_v41 = vld [vmem:[#allocation9 + $0xe48] sm:$0xf]  ;;  %v6708_v47 = vor.u32 %v7639_v39, %v6707_v38  ;;  %4053 = vmatpush.bf16.msrb.mxu1 %v6420_v43  ;;  %v7267_v38 = vld [vmem:[#allocation9 + $0xcc] sm:$0xf]  ;;  %v5816_v40 = vor.u32 %v7411_v29, %v5813_v30  ;;  %v6072_v43 = vor.u32 %v7475_v34, %v6069_v35  ;;  %v8105_v25 = vadd.f32 %v3803_v19, %v3790_v14 }
 0x17d   :  { %v7703_v42 = vld [vmem:[#allocation9 + $0xe64] sm:$0xf0]  ;;  %4040 = vmatmul.bf16.vlgmr.msrb.gmra.mxu0 %v8072_v23  ;;  %v5237_v39 = vld [vmem:[#allocation9 + $0xe8] sm:$0xf0] }
 0x17e   :  { %v6964_v51 = vor.u32 %v7703_v42, %v6963_v41  ;;  %v6675_v52 = vld [vmem:[#allocation9 + $0xc08] sm:$0xf]  ;;  %4088 = vmatpush.bf16.msra.mxu0 %v5368_v44  ;;  %4066 = vmatpush.bf16.msrb.mxu2 %v6708_v47  ;;  %v7331_v41 = vld [vmem:[#allocation9 + $0x2cc] sm:$0xf] }
 0x17f   :  { %v7631_v53 = vld [vmem:[#allocation9 + $0xc24] sm:$0xf0]  ;;  %4054 = vmatmul.bf16.vlgmr.msrb.gmra.mxu1 %v8074_v27  ;;  %v5493_v42 = vld [vmem:[#allocation9 + $0x2e8] sm:$0xf0] }
 0x180   :  { %v6931_v55 = vld [vmem:[#allocation9 + $0xe08] sm:$0xf]  ;;  %4102 = vmatpush.bf16.msra.mxu1 %v5624_v46  ;;  %v6676_v4 = vor.u32 %v7631_v53, %v6675_v52  ;;  %4080 = vmatpush.bf16.msrb.mxu3 %v6964_v51  ;;  %v7403_v44 = vld [vmem:[#allocation9 + $0x50c] sm:$0xf]  ;;  %v5240_v46 = vor.u32 %v7267_v38, %v5237_v39  ;;  %v5496_v49 = vor.u32 %v7331_v41, %v5493_v42 }
 0x181   :  { %v7695_v56 = vld [vmem:[#allocation9 + $0xe24] sm:$0xf0]  ;;  %v7467_v47 = vld [vmem:[#allocation9 + $0x70c] sm:$0xf]  ;;  %v5784_v52 = vor.u32 %v7403_v44, %v5781_v45 }
 0x182   :  { %v6932_v7 = vor.u32 %v7695_v56, %v6931_v55  ;;  %4089 = vmatpush.bf16.msra.mxu0 %v5336_v59  ;;  %4067 = vmatpush.bf16.msrb.mxu2 %v6676_v4  ;;  %v5205_v51 = vld [vmem:[#allocation9 + $0xa8] sm:$0xf0]  ;;  %v6040_v56 = vor.u32 %v7467_v47, %v6037_v48 }
 0x183   :  { %v7323_v53 = vld [vmem:[#allocation9 + $0x28c] sm:$0xf]  ;;  %v5208_v59 = vor.u32 %v7259_v50, %v5205_v51  ;;  %v8107_v51 = vpop.f32.mrf.mxu0 }
 0x184   :  { %4103 = vmatpush.bf16.msra.mxu1 %v5592_v3  ;;  %4081 = vmatpush.bf16.msrb.mxu3 %v6932_v7  ;;  %v5461_v55 = vld [vmem:[#allocation9 + $0x2a8] sm:$0xf0] }
 0x185   :  { %4068 = vmatmul.bf16.vlgmr.msrb.gmra.mxu2 %v8078_v62  ;;  %v6005_v63 = vld [vmem:[#allocation9 + $0x6e8] sm:$0xf0]  ;;  %v5464_v3 = vor.u32 %v7323_v53, %v5461_v55 }
 0x186   :  { %4116 = vmatpush.bf16.msra.mxu2 %v5880_v8  ;;  %4090 = vmatpush.bf16.msra.mxu0 %v5304_v15  ;;  %v7251_v4 = vld [vmem:[#allocation9 + $0x4c] sm:$0xf]  ;;  %v6008_v10 = vor.u32 %v7459_v61, %v6005_v63 }
 0x187   :  { %4082 = vmatmul.bf16.vlgmr.msrb.gmra.mxu3 %v8080_v0  ;;  %v5173_v5 = vld [vmem:[#allocation9 + $0x68] sm:$0xf0] }
 0x188   :  { %4130 = vmatpush.bf16.msra.mxu3 %v6136_v11  ;;  %4104 = vmatpush.bf16.msra.mxu1 %v5560_v18  ;;  %v7315_v7 = vld [vmem:[#allocation9 + $0x24c] sm:$0xf]  ;;  %v5176_v15 = vor.u32 %v7251_v4, %v5173_v5 }
 0x189   :  { %v5429_v8 = vld [vmem:[#allocation9 + $0x268] sm:$0xf0] }
 0x18a   :  { %4117 = vmatpush.bf16.msra.mxu2 %v5848_v22  ;;  %4091 = vmatpush.bf16.msra.mxu0 %v5272_v33  ;;  %v7387_v11 = vld [vmem:[#allocation9 + $0x48c] sm:$0xf]  ;;  %v5432_v20 = vor.u32 %v7315_v7, %v5429_v8 }
 0x18b   :  { %v5717_v13 = vld [vmem:[#allocation9 + $0x4a8] sm:$0xf0] }
 0x18c   :  { %4131 = vmatpush.bf16.msra.mxu3 %v6104_v28  ;;  %4105 = vmatpush.bf16.msra.mxu1 %v5528_v37  ;;  %v7451_v16 = vld [vmem:[#allocation9 + $0x68c] sm:$0xf]  ;;  %v5720_v2 = vor.u32 %v7387_v11, %v5717_v13 }
 0x18d   :  { %v5973_v17 = vld [vmem:[#allocation9 + $0x6a8] sm:$0xf0] }
 0x18e   :  { %4118 = vmatpush.bf16.msra.mxu2 %v5816_v40  ;;  %4092 = vmatpush.bf16.msra.mxu0 %v5240_v46  ;;  %v7243_v18 = vld [vmem:[#allocation9 + $0xc] sm:$0xf]  ;;  %v5976_v32 = vor.u32 %v7451_v16, %v5973_v17 }
 0x18f   :  { %v5141_v21 = vld [vmem:[#allocation9 + $0x28] sm:$0xf0] }
 0x190   :  { %4132 = vmatpush.bf16.msra.mxu3 %v6072_v43  ;;  %4106 = vmatpush.bf16.msra.mxu1 %v5496_v49  ;;  %v7307_v22 = vld [vmem:[#allocation9 + $0x20c] sm:$0xf]  ;;  %v5144_v36 = vor.u32 %v7243_v18, %v5141_v21 }
 0x191   :  { %v5397_v24 = vld [vmem:[#allocation9 + $0x228] sm:$0xf0] }
 0x192   :  { %4119 = vmatpush.bf16.msra.mxu2 %v5784_v52  ;;  %4093 = vmatpush.bf16.msra.mxu0 %v5208_v59  ;;  %v7555_v28 = vld [vmem:[#allocation9 + $0x9cc] sm:$0xf]  ;;  %v5400_v39 = vor.u32 %v7307_v22, %v5397_v24  ;;  %v3817_v22 = vpop.f32.mrf.mxu0 }
 0x193   :  { %v6389_v29 = vld [vmem:[#allocation9 + $0x9e8] sm:$0xf0] }
 0x194   :  { %4133 = vmatpush.bf16.msra.mxu3 %v6040_v56  ;;  %4107 = vmatpush.bf16.msra.mxu1 %v5464_v3  ;;  %v7619_v30 = vld [vmem:[#allocation9 + $0xbcc] sm:$0xf]  ;;  %v6392_v40 = vor.u32 %v7555_v28, %v6389_v29  ;;  %v8109_v56 = vpop.f32.mrf.mxu1  ;;  %v3818_v29 = vadd.f32 %v3817_v22, %v8105_v25  ;;  %v8116_v25 = vpop.f32.mrf.mxu2 }
 0x195   :  { %v6645_v33 = vld [vmem:[#allocation9 + $0xbe8] sm:$0xf0] }
 0x196   :  { %4120 = vmatpush.bf16.msra.mxu2 %v5752_v6  ;;  %v7379_v34 = vld [vmem:[#allocation9 + $0x44c] sm:$0xf]  ;;  %4094 = vmatpush.bf16.msra.mxu0 %v5176_v15  ;;  %v6648_v42 = vor.u32 %v7619_v30, %v6645_v33 }
 0x197   :  { %v5685_v35 = vld [vmem:[#allocation9 + $0x468] sm:$0xf0] }
 0x198   :  { %4134 = vmatpush.bf16.msra.mxu3 %v6008_v10  ;;  %v7443_v37 = vld [vmem:[#allocation9 + $0x64c] sm:$0xf]  ;;  %4108 = vmatpush.bf16.msra.mxu1 %v5432_v20  ;;  %v5688_v43 = vor.u32 %v7379_v34, %v5685_v35 }
 0x199   :  { %v5941_v38 = vld [vmem:[#allocation9 + $0x668] sm:$0xf0] }
 0x19a   :  { %v7547_v41 = vld [vmem:[#allocation9 + $0x98c] sm:$0xf]  ;;  %4121 = vmatpush.bf16.msra.mxu2 %v5720_v2  ;;  %v5944_v47 = vor.u32 %v7443_v37, %v5941_v38  ;;  %4095 = vmatpush.bf16.msra.mxu0 %v5144_v36 }
 0x19b   :  { %v6357_v44 = vld [vmem:[#allocation9 + $0x9a8] sm:$0xf0] }
 0x19c   :  { %v7611_v45 = vld [vmem:[#allocation9 + $0xb8c] sm:$0xf]  ;;  %4135 = vmatpush.bf16.msra.mxu3 %v5976_v32  ;;  %4109 = vmatpush.bf16.msra.mxu1 %v5400_v39  ;;  %v6360_v57 = vor.u32 %v7547_v41, %v6357_v44  ;;  %v3831_v30 = vpop.f32.mrf.mxu1 }
 0x19d   :  { %v6613_v46 = vld [vmem:[#allocation9 + $0xba8] sm:$0xf0]  ;;  %4096 = vmatmul.bf16.vlgmr.msra.gmra.mxu0 %v8056_v26  ;;  %v3832_v38 = vadd.f32 %v3831_v30, %v3818_v29 }
 0x19e   :  { %v7371_v48 = vld [vmem:[#allocation9 + $0x40c] sm:$0xf]  ;;  %4144 = vmatpush.bf16.msrb.mxu0 %v6392_v40  ;;  %4122 = vmatpush.bf16.msra.mxu2 %v5688_v43  ;;  %v6616_v61 = vor.u32 %v7611_v45, %v6613_v46 }
 0x19f   :  { %v5653_v49 = vld [vmem:[#allocation9 + $0x428] sm:$0xf0]  ;;  %4110 = vmatmul.bf16.vlgmr.msra.gmra.mxu1 %v8058_v31 }
 0x1a0   :  { %v7435_v50 = vld [vmem:[#allocation9 + $0x60c] sm:$0xf]  ;;  %4158 = vmatpush.bf16.msrb.mxu1 %v6648_v42  ;;  %v5656_v63 = vor.u32 %v7371_v48, %v5653_v49  ;;  %4136 = vmatpush.bf16.msra.mxu3 %v5944_v47  ;;  %v8118_v48 = vpop.f32.mrf.mxu3 }
 0x1a1   :  { %v5909_v52 = vld [vmem:[#allocation9 + $0x628] sm:$0xf0] }
 0x1a2   :  { %v7683_v53 = vld [vmem:[#allocation9 + $0xdcc] sm:$0xf]  ;;  %v5912_v5 = vor.u32 %v7435_v50, %v5909_v52  ;;  %4145 = vmatpush.bf16.msrb.mxu0 %v6360_v57  ;;  %4123 = vmatpush.bf16.msra.mxu2 %v5656_v63 }
 0x1a3   :  { %v6901_v55 = vld [vmem:[#allocation9 + $0xde8] sm:$0xf0] }
 0x1a4   :  { %v7747_v58 = vld [vmem:[#allocation9 + $0xfcc] sm:$0xf]  ;;  %v6904_v6 = vor.u32 %v7683_v53, %v6901_v55  ;;  %4159 = vmatpush.bf16.msrb.mxu1 %v6616_v61  ;;  %4137 = vmatpush.bf16.msra.mxu3 %v5912_v5 }
 0x1a5   :  { %v7157_v59 = vld [vmem:[#allocation9 + $0xfe8] sm:$0xf0]  ;;  %4124 = vmatmul.bf16.vlgmr.msra.gmra.mxu2 %v8062_v54 }
 0x1a6   :  { %v7539_v3 = vld [vmem:[#allocation9 + $0x94c] sm:$0xf]  ;;  %v7160_v9 = vor.u32 %v7747_v58, %v7157_v59  ;;  %4172 = vmatpush.bf16.msrb.mxu2 %v6904_v6  ;;  %v8120_v58 = vpop.f32.mrf.mxu0 }
 0x1a7   :  { %v6325_v4 = vld [vmem:[#allocation9 + $0x968] sm:$0xf0]  ;;  %4138 = vmatmul.bf16.vlgmr.msra.gmra.mxu3 %v8064_v60 }
 0x1a8   :  { %v7603_v7 = vld [vmem:[#allocation9 + $0xb4c] sm:$0xf]  ;;  %v6328_v13 = vor.u32 %v7539_v3, %v6325_v4  ;;  %4186 = vmatpush.bf16.msrb.mxu3 %v7160_v9  ;;  %v8122_v3 = vpop.f32.mrf.mxu1 }
 0x1a9   :  { %v6581_v8 = vld [vmem:[#allocation9 + $0xb68] sm:$0xf0] }
 0x1aa   :  { %v7675_v10 = vld [vmem:[#allocation9 + $0xd8c] sm:$0xf]  ;;  %v6584_v16 = vor.u32 %v7603_v7, %v6581_v8  ;;  %4146 = vmatpush.bf16.msrb.mxu0 %v6328_v13 }
 0x1ab   :  { %v6869_v11 = vld [vmem:[#allocation9 + $0xda8] sm:$0xf0] }
 0x1ac   :  { %v7739_v14 = vld [vmem:[#allocation9 + $0xf8c] sm:$0xf]  ;;  %v6872_v19 = vor.u32 %v7675_v10, %v6869_v11  ;;  %4160 = vmatpush.bf16.msrb.mxu1 %v6584_v16 }
 0x1ad   :  { %v7125_v15 = vld [vmem:[#allocation9 + $0xfa8] sm:$0xf0] }
 0x1ae   :  { %v7531_v17 = vld [vmem:[#allocation9 + $0x90c] sm:$0xf]  ;;  %v7128_v24 = vor.u32 %v7739_v14, %v7125_v15  ;;  %4173 = vmatpush.bf16.msrb.mxu2 %v6872_v19 }
 0x1af   :  { %v6293_v18 = vld [vmem:[#allocation9 + $0x928] sm:$0xf0] }
 0x1b0   :  { %v7595_v20 = vld [vmem:[#allocation9 + $0xb0c] sm:$0xf]  ;;  %v6296_v32 = vor.u32 %v7531_v17, %v6293_v18  ;;  %4187 = vmatpush.bf16.msrb.mxu3 %v7128_v24  ;;  %v3845_v18 = vpop.f32.mrf.mxu2 }
 0x1b1   :  { %v6549_v21 = vld [vmem:[#allocation9 + $0xb28] sm:$0xf0]  ;;  %v3846_v24 = vadd.f32 %v3845_v18, %v3832_v38 }
 0x1b2   :  { %v7667_v2 = vld [vmem:[#allocation9 + $0xd4c] sm:$0xf]  ;;  %v6552_v35 = vor.u32 %v7595_v20, %v6549_v21  ;;  %4147 = vmatpush.bf16.msrb.mxu0 %v6296_v32  ;;  %v1177_v20 = vperm.slane %v8096_v1, 1 }
 0x1b3   :  { %v6837_v28 = vld [vmem:[#allocation9 + $0xd68] sm:$0xf0] }
 0x1b4   :  { %v7731_v33 = vld [vmem:[#allocation9 + $0xf4c] sm:$0xf]  ;;  %v6840_v39 = vor.u32 %v7667_v2, %v6837_v28  ;;  %4161 = vmatpush.bf16.msrb.mxu1 %v6552_v35  ;;  %v3859_v2 = vpop.f32.mrf.mxu3  ;;  %v7304_v35 = vld [vmem:[#allocation9 + $0x1ec] sm:$0xf0] }
 0x1b5   :  { %v7093_v34 = vld [vmem:[#allocation9 + $0xf68] sm:$0xf0] }
 0x1b6   :  { %v7523_v36 = vld [vmem:[#allocation9 + $0x8cc] sm:$0xf]  ;;  %v7096_v42 = vor.u32 %v7731_v33, %v7093_v34  ;;  %4174 = vmatpush.bf16.msrb.mxu2 %v6840_v39  ;;  %v5371_v34 = vld [vmem:[#allocation9 + $0x1d0] sm:$0xf]  ;;  %v3873_v39 = vpop.f32.mrf.mxu0 }
 0x1b7   :  { %v6261_v37 = vld [vmem:[#allocation9 + $0x8e8] sm:$0xf0]  ;;  %v3874_v38 = vadd.f32 %v3873_v39, %v1177_v20  ;;  %v7488_v39 = vld [vmem:[#allocation9 + $0x7ac] sm:$0xf0] }
 0x1b8   :  { %v7587_v40 = vld [vmem:[#allocation9 + $0xacc] sm:$0xf]  ;;  %v6264_v45 = vor.u32 %v7523_v36, %v6261_v37  ;;  %4188 = vmatpush.bf16.msrb.mxu3 %v7096_v42  ;;  %v5627_v36 = vld [vmem:[#allocation9 + $0x3d0] sm:$0xf]  ;;  %v8125_v37 = vadd.f32 %v3859_v2, %v3846_v24 }
 0x1b9   :  { %v6517_v41 = vld [vmem:[#allocation9 + $0xae8] sm:$0xf0] }
 0x1ba   :  { %v7659_v43 = vld [vmem:[#allocation9 + $0xd0c] sm:$0xf]  ;;  %v6520_v49 = vor.u32 %v7587_v40, %v6517_v41  ;;  %4148 = vmatpush.bf16.msrb.mxu0 %v6264_v45  ;;  %v7368_v41 = vld [vmem:[#allocation9 + $0x3ec] sm:$0xf0] }
 0x1bb   :  { %v6805_v44 = vld [vmem:[#allocation9 + $0xd28] sm:$0xf0] }
 0x1bc   :  { %v7723_v46 = vld [vmem:[#allocation9 + $0xf0c] sm:$0xf]  ;;  %v6808_v53 = vor.u32 %v7659_v43, %v6805_v44  ;;  %4162 = vmatpush.bf16.msrb.mxu1 %v6520_v49  ;;  %v3887_v44 = vpop.f32.mrf.mxu1 }
 0x1bd   :  { %v7061_v47 = vld [vmem:[#allocation9 + $0xf28] sm:$0xf0] }
 0x1be   :  { %v7515_v50 = vld [vmem:[#allocation9 + $0x88c] sm:$0xf]  ;;  %v7064_v59 = vor.u32 %v7723_v46, %v7061_v47  ;;  %4175 = vmatpush.bf16.msrb.mxu2 %v6808_v53  ;;  %v3888_v53 = vadd.f32 %v3887_v44, %v3874_v38  ;;  %v5531_v38 = vld [vmem:[#allocation9 + $0x310] sm:$0xf] }
 0x1bf   :  { %v6229_v52 = vld [vmem:[#allocation9 + $0x8a8] sm:$0xf0]  ;;  %v7344_v44 = vld [vmem:[#allocation9 + $0x32c] sm:$0xf0] }
 0x1c0   :  { %v7579_v55 = vld [vmem:[#allocation9 + $0xa8c] sm:$0xf]  ;;  %v6232_v4 = vor.u32 %v7515_v50, %v6229_v52  ;;  %4189 = vmatpush.bf16.msrb.mxu3 %v7064_v59  ;;  %v5372_v50 = vor.u32 %v7304_v35, %v5371_v34  ;;  %v5339_v52 = vld [vmem:[#allocation9 + $0x190] sm:$0xf] }
 0x1c1   :  { %v6485_v57 = vld [vmem:[#allocation9 + $0xaa8] sm:$0xf0]  ;;  %v7296_v59 = vld [vmem:[#allocation9 + $0x1ac] sm:$0xf0] }
 0x1c2   :  { %v7651_v61 = vld [vmem:[#allocation9 + $0xccc] sm:$0xf]  ;;  %v6488_v7 = vor.u32 %v7579_v55, %v6485_v57  ;;  %4149 = vmatpush.bf16.msrb.mxu0 %v6232_v4  ;;  %v5628_v55 = vor.u32 %v7368_v41, %v5627_v36  ;;  %v7424_v34 = vld [vmem:[#allocation9 + $0x5ac] sm:$0xf0] }
 0x1c3   :  { %v6773_v63 = vld [vmem:[#allocation9 + $0xce8] sm:$0xf0]  ;;  %v6107_v36 = vld [vmem:[#allocation9 + $0x790] sm:$0xf] }
 0x1c4   :  { %v7715_v5 = vld [vmem:[#allocation9 + $0xecc] sm:$0xf]  ;;  %v6776_v10 = vor.u32 %v7651_v61, %v6773_v63  ;;  %4163 = vmatpush.bf16.msrb.mxu1 %v6488_v7  ;;  %v5595_v61 = vld [vmem:[#allocation9 + $0x390] sm:$0xf] }
 0x1c5   :  { %v7029_v6 = vld [vmem:[#allocation9 + $0xee8] sm:$0xf0]  ;;  %v7360_v63 = vld [vmem:[#allocation9 + $0x3ac] sm:$0xf0] }
 0x1c6   :  { %v7507_v8 = vld [vmem:[#allocation9 + $0x84c] sm:$0xf]  ;;  %v7032_v14 = vor.u32 %v7715_v5, %v7029_v6  ;;  %4176 = vmatpush.bf16.msrb.mxu2 %v6776_v10  ;;  %v5883_v10 = vld [vmem:[#allocation9 + $0x5d0] sm:$0xf] }
 0x1c7   :  { %v6197_v9 = vld [vmem:[#allocation9 + $0x868] sm:$0xf0]  ;;  %v5275_v41 = vld [vmem:[#allocation9 + $0x110] sm:$0xf] }
 0x1c8   :  { %v7571_v11 = vld [vmem:[#allocation9 + $0xa4c] sm:$0xf]  ;;  %v6200_v19 = vor.u32 %v7507_v8, %v6197_v9  ;;  %4190 = vmatpush.bf16.msrb.mxu3 %v7032_v14  ;;  %v8129_v8 = vpop.f32.mrf.mxu2  ;;  %v5340_v14 = vor.u32 %v7296_v59, %v5339_v52  ;;  %v7480_v59 = vld [vmem:[#allocation9 + $0x76c] sm:$0xf0] }
 0x1c9   :  { %v6453_v13 = vld [vmem:[#allocation9 + $0xa68] sm:$0xf0] }
 0x1ca   :  { %v7643_v15 = vld [vmem:[#allocation9 + $0xc8c] sm:$0xf]  ;;  %v6456_v28 = vor.u32 %v7571_v11, %v6453_v13  ;;  %4150 = vmatpush.bf16.msrb.mxu0 %v6200_v19  ;;  %v7432_v11 = vld [vmem:[#allocation9 + $0x5ec] sm:$0xf0]  ;;  %v8131_v13 = vpop.f32.mrf.mxu3 }
 0x1cb   :  { %v6741_v16 = vld [vmem:[#allocation9 + $0xca8] sm:$0xf0]  ;;  %v5307_v19 = vld [vmem:[#allocation9 + $0x150] sm:$0xf]  ;;  %v5884_v2 = vor.u32 %v7432_v11, %v5883_v10 }
 0x1cc   :  { %v7707_v17 = vld [vmem:[#allocation9 + $0xe8c] sm:$0xf]  ;;  %v6744_v33 = vor.u32 %v7643_v15, %v6741_v16  ;;  %4164 = vmatpush.bf16.msrb.mxu1 %v6456_v28  ;;  %v6139_v15 = vld [vmem:[#allocation9 + $0x7d0] sm:$0xf] }
 0x1cd   :  { %v6997_v21 = vld [vmem:[#allocation9 + $0xea8] sm:$0xf0]  ;;  %v7496_v16 = vld [vmem:[#allocation9 + $0x7ec] sm:$0xf0] }
 0x1ce   :  { %v7499_v22 = vld [vmem:[#allocation9 + $0x80c] sm:$0xf]  ;;  %v7000_v40 = vor.u32 %v7707_v17, %v6997_v21  ;;  %4177 = vmatpush.bf16.msrb.mxu2 %v6744_v33  ;;  %v5596_v17 = vor.u32 %v7360_v63, %v5595_v61  ;;  %v7288_v21 = vld [vmem:[#allocation9 + $0x16c] sm:$0xf0]  ;;  %v5532_v61 = vor.u32 %v7344_v44, %v5531_v38 }
 0x1cf   :  { %v6165_v29 = vld [vmem:[#allocation9 + $0x828] sm:$0xf0]  ;;  %v5563_v28 = vld [vmem:[#allocation9 + $0x350] sm:$0xf]  ;;  %v5308_v35 = vor.u32 %v7288_v21, %v5307_v19 }
 0x1d0   :  { %v7563_v30 = vld [vmem:[#allocation9 + $0xa0c] sm:$0xf]  ;;  %v6168_v45 = vor.u32 %v7499_v22, %v6165_v29  ;;  %4191 = vmatpush.bf16.msrb.mxu3 %v7000_v40  ;;  %v8134_v22 = vpop.f32.mrf.mxu0  ;;  %v7352_v29 = vld [vmem:[#allocation9 + $0x36c] sm:$0xf0] }
 0x1d1   :  { %v6421_v32 = vld [vmem:[#allocation9 + $0xa28] sm:$0xf0]  ;;  %v5851_v33 = vld [vmem:[#allocation9 + $0x590] sm:$0xf]  ;;  %v5564_v40 = vor.u32 %v7352_v29, %v5563_v28 }
 0x1d2   :  { %v7635_v42 = vld [vmem:[#allocation9 + $0xc4c] sm:$0xf]  ;;  %v6424_v49 = vor.u32 %v7563_v30, %v6421_v32  ;;  %4151 = vmatpush.bf16.msrb.mxu0 %v6168_v45  ;;  %v8137_v30 = vpop.f32.mrf.mxu1  ;;  %v6140_v32 = vor.u32 %v7496_v16, %v6139_v15  ;;  %v3901_v45 = vpop.f32.mrf.mxu2  ;;  %v5243_v63 = vld [vmem:[#allocation9 + $0xd0] sm:$0xf] }
 0x1d3   :  { %v6709_v43 = vld [vmem:[#allocation9 + $0xc68] sm:$0xf0]  ;;  %v3915_v52 = vpop.f32.mrf.mxu3  ;;  %v5787_v11 = vld [vmem:[#allocation9 + $0x510] sm:$0xf] }
 0x1d4   :  { %v7699_v46 = vld [vmem:[#allocation9 + $0xe4c] sm:$0xf]  ;;  %v6712_v57 = vor.u32 %v7635_v42, %v6709_v43  ;;  %4165 = vmatpush.bf16.msrb.mxu1 %v6424_v49  ;;  %v7280_v42 = vld [vmem:[#allocation9 + $0x12c] sm:$0xf0]  ;;  %v5852_v43 = vor.u32 %v7424_v34, %v5851_v33 }
 0x1d5   :  { %v6965_v47 = vld [vmem:[#allocation9 + $0xe68] sm:$0xf0]  ;;  %4152 = vmatmul.bf16.vlgmr.msrb.gmra.mxu0 %v8072_v23  ;;  %v7416_v49 = vld [vmem:[#allocation9 + $0x56c] sm:$0xf0] }
 0x1d6   :  { %v6968_v4 = vor.u32 %v7699_v46, %v6965_v47  ;;  %v7627_v5 = vld [vmem:[#allocation9 + $0xc0c] sm:$0xf]  ;;  %4200 = vmatpush.bf16.msra.mxu0 %v5372_v50  ;;  %4178 = vmatpush.bf16.msrb.mxu2 %v6712_v57  ;;  %v6108_v46 = vor.u32 %v7488_v39, %v6107_v36  ;;  %v5819_v47 = vld [vmem:[#allocation9 + $0x550] sm:$0xf]  ;;  %v3902_v50 = vadd.f32 %v3901_v45, %v3888_v53 }
 0x1d7   :  { %v6677_v6 = vld [vmem:[#allocation9 + $0xc28] sm:$0xf0]  ;;  %4166 = vmatmul.bf16.vlgmr.msrb.gmra.mxu1 %v8074_v27  ;;  %v6075_v57 = vld [vmem:[#allocation9 + $0x750] sm:$0xf] }
 0x1d8   :  { %v7691_v7 = vld [vmem:[#allocation9 + $0xe0c] sm:$0xf]  ;;  %4214 = vmatpush.bf16.msra.mxu1 %v5628_v55  ;;  %v6680_v18 = vor.u32 %v7627_v5, %v6677_v6  ;;  %4192 = vmatpush.bf16.msrb.mxu3 %v6968_v4  ;;  %v5276_v55 = vor.u32 %v7280_v42, %v5275_v41  ;;  %v7272_v4 = vld [vmem:[#allocation9 + $0xec] sm:$0xf0]  ;;  %v3916_v5 = vadd.f32 %v3915_v52, %v3902_v50  ;;  %v3929_v53 = vpop.f32.mrf.mxu0 }
 0x1d9   :  { %v6933_v9 = vld [vmem:[#allocation9 + $0xe28] sm:$0xf0]  ;;  %v5820_v6 = vor.u32 %v7416_v49, %v5819_v47  ;;  %v6076_v10 = vor.u32 %v7480_v59, %v6075_v57  ;;  %v5244_v16 = vor.u32 %v7272_v4, %v5243_v63  ;;  %v7328_v33 = vld [vmem:[#allocation9 + $0x2ac] sm:$0xf0] }
 0x1da   :  { %v6936_v24 = vor.u32 %v7691_v7, %v6933_v9  ;;  %4201 = vmatpush.bf16.msra.mxu0 %v5340_v14  ;;  %4179 = vmatpush.bf16.msrb.mxu2 %v6680_v18  ;;  %v5499_v7 = vld [vmem:[#allocation9 + $0x2d0] sm:$0xf]  ;;  %v3930_v15 = vadd.f32 %v3929_v53, %v3916_v5  ;;  %v3943_v19 = vpop.f32.mrf.mxu1  ;;  %v8141_v34 = vpop.f32.mrf.mxu2  ;;  %v8145_v50 = vld [vmem:[#allocation12] sm:$0xff] }
 0x1db   :  { %v7336_v9 = vld [vmem:[#allocation9 + $0x2ec] sm:$0xf0] }
 0x1dc   :  { %4215 = vmatpush.bf16.msra.mxu1 %v5596_v17  ;;  %4193 = vmatpush.bf16.msrb.mxu3 %v6936_v24  ;;  %v7408_v14 = vld [vmem:[#allocation9 + $0x52c] sm:$0xf0]  ;;  %v5500_v21 = vor.u32 %v7336_v9, %v5499_v7  ;;  %v3944_v28 = vadd.f32 %v3943_v19, %v3930_v15  ;;  %v4648_v19 = vmax.f32 %v8125_v37, 0.0 }
 0x1dd   :  { %4180 = vmatmul.bf16.vlgmr.msrb.gmra.mxu2 %v8078_v62  ;;  %v6043_v17 = vld [vmem:[#allocation9 + $0x710] sm:$0xf]  ;;  %v5788_v29 = vor.u32 %v7408_v14, %v5787_v11 }
 0x1de   :  { %4228 = vmatpush.bf16.msra.mxu2 %v5884_v2  ;;  %4202 = vmatpush.bf16.msra.mxu0 %v5308_v35  ;;  %v7472_v18 = vld [vmem:[#allocation9 + $0x72c] sm:$0xf0] }
 0x1df   :  { %4194 = vmatmul.bf16.vlgmr.msrb.gmra.mxu3 %v8080_v0  ;;  %v5211_v24 = vld [vmem:[#allocation9 + $0x90] sm:$0xf]  ;;  %v6044_v35 = vor.u32 %v7472_v18, %v6043_v17 }
 0x1e0   :  { %4242 = vmatpush.bf16.msra.mxu3 %v6140_v32  ;;  %4216 = vmatpush.bf16.msra.mxu1 %v5564_v40  ;;  %v7264_v2 = vld [vmem:[#allocation9 + $0xac] sm:$0xf0]  ;;  %v8143_v40 = vpop.f32.mrf.mxu3 }
 0x1e1   :  { %v5467_v32 = vld [vmem:[#allocation9 + $0x290] sm:$0xf]  ;;  %v5212_v41 = vor.u32 %v7264_v2, %v5211_v24 }
 0x1e2   :  { %4229 = vmatpush.bf16.msra.mxu2 %v5852_v43  ;;  %4203 = vmatpush.bf16.msra.mxu0 %v5276_v55  ;;  %v5755_v36 = vld [vmem:[#allocation9 + $0x4d0] sm:$0xf]  ;;  %v5468_v38 = vor.u32 %v7328_v33, %v5467_v32  ;;  %v3957_v24 = vpop.f32.mrf.mxu2 }
 0x1e3   :  { %v7400_v39 = vld [vmem:[#allocation9 + $0x4ec] sm:$0xf0]  ;;  %v3958_v33 = vadd.f32 %v3957_v24, %v3944_v28 }
 0x1e4   :  { %4243 = vmatpush.bf16.msra.mxu3 %v6108_v46  ;;  %4217 = vmatpush.bf16.msra.mxu1 %v5532_v61  ;;  %v6011_v42 = vld [vmem:[#allocation9 + $0x6d0] sm:$0xf]  ;;  %v5756_v46 = vor.u32 %v7400_v39, %v5755_v36 }
 0x1e5   :  { %v7464_v43 = vld [vmem:[#allocation9 + $0x6ec] sm:$0xf0] }
 0x1e6   :  { %4230 = vmatpush.bf16.msra.mxu2 %v5820_v6  ;;  %4204 = vmatpush.bf16.msra.mxu0 %v5244_v16  ;;  %v5179_v44 = vld [vmem:[#allocation9 + $0x50] sm:$0xf]  ;;  %v6012_v52 = vor.u32 %v7464_v43, %v6011_v42 }
 0x1e7   :  { %v7256_v45 = vld [vmem:[#allocation9 + $0x6c] sm:$0xf0] }
 0x1e8   :  { %4244 = vmatpush.bf16.msra.mxu3 %v6076_v10  ;;  %4218 = vmatpush.bf16.msra.mxu1 %v5500_v21  ;;  %v5435_v47 = vld [vmem:[#allocation9 + $0x250] sm:$0xf]  ;;  %v5180_v59 = vor.u32 %v7256_v45, %v5179_v44  ;;  %v8312_v21 = vperm.slane %v8145_v50, 0  ;;  %v3971_v42 = vpop.f32.mrf.mxu3 }
 0x1e9   :  { %v7320_v49 = vld [vmem:[#allocation9 + $0x26c] sm:$0xf0] }
 0x1ea   :  { %4231 = vmatpush.bf16.msra.mxu2 %v5788_v29  ;;  %v5723_v55 = vld [vmem:[#allocation9 + $0x490] sm:$0xf]  ;;  %4205 = vmatpush.bf16.msra.mxu0 %v5212_v41  ;;  %v5436_v5 = vor.u32 %v7320_v49, %v5435_v47 }
 0x1eb   :  { %v7392_v57 = vld [vmem:[#allocation9 + $0x4ac] sm:$0xf0] }
 0x1ec   :  { %4245 = vmatpush.bf16.msra.mxu3 %v6044_v35  ;;  %v5979_v61 = vld [vmem:[#allocation9 + $0x690] sm:$0xf]  ;;  %4219 = vmatpush.bf16.msra.mxu1 %v5468_v38  ;;  %v5724_v53 = vor.u32 %v7392_v57, %v5723_v55  ;;  %v4667_v35 = vperm.slane %v8145_v50, 1 }
 0x1ed   :  { %v7456_v63 = vld [vmem:[#allocation9 + $0x6ac] sm:$0xf0] }
 0x1ee   :  { %v5147_v4 = vld [vmem:[#allocation9 + $0x10] sm:$0xf]  ;;  %4232 = vmatpush.bf16.msra.mxu2 %v5756_v46  ;;  %v5980_v15 = vor.u32 %v7456_v63, %v5979_v61  ;;  %4206 = vmatpush.bf16.msra.mxu0 %v5180_v59  ;;  %v3972_v46 = vadd.f32 %v3971_v42, %v3958_v33 }
 0x1ef   :  { %v7248_v6 = vld [vmem:[#allocation9 + $0x2c] sm:$0xf0] }
 0x1f0   :  { %v5403_v7 = vld [vmem:[#allocation9 + $0x210] sm:$0xf]  ;;  %4246 = vmatpush.bf16.msra.mxu3 %v6012_v52  ;;  %v5148_v2 = vor.u32 %v7248_v6, %v5147_v4  ;;  %4220 = vmatpush.bf16.msra.mxu1 %v5436_v5  ;;  %v4649_v61 = vmax.f32 %v3972_v46, 0.0  ;;  %v4682_v6 = vmul.f32 %v8312_v21, %v4648_v19  ;;  %v7684_v21 = vld [vmem:[#allocation9 + $0xdd4] sm:$0xf] }
 0x1f1   :  { %v7312_v9 = vld [vmem:[#allocation9 + $0x22c] sm:$0xf0] }
 0x1f2   :  { %v6395_v10 = vld [vmem:[#allocation9 + $0x9d0] sm:$0xf]  ;;  %v5404_v36 = vor.u32 %v7312_v9, %v5403_v7  ;;  %4233 = vmatpush.bf16.msra.mxu2 %v5724_v53  ;;  %4207 = vmatpush.bf16.msra.mxu0 %v5148_v2 }
 0x1f3   :  { %v7560_v11 = vld [vmem:[#allocation9 + $0x9ec] sm:$0xf0] }
 0x1f4   :  { %v6651_v14 = vld [vmem:[#allocation9 + $0xbd0] sm:$0xf]  ;;  %v6396_v39 = vor.u32 %v7560_v11, %v6395_v10  ;;  %4247 = vmatpush.bf16.msra.mxu3 %v5980_v15  ;;  %4221 = vmatpush.bf16.msra.mxu1 %v5404_v36  ;;  %v4683_v11 = vmul.f32 %v4667_v35, %v4649_v61 }
 0x1f5   :  { %v7624_v16 = vld [vmem:[#allocation9 + $0xbec] sm:$0xf0]  ;;  %4208 = vmatmul.bf16.vlgmr.msra.gmra.mxu0 %v8056_v26 }
 0x1f6   :  { %v5691_v17 = vld [vmem:[#allocation9 + $0x450] sm:$0xf]  ;;  %v6652_v43 = vor.u32 %v7624_v16, %v6651_v14  ;;  %4256 = vmatpush.bf16.msrb.mxu0 %v6396_v39 }
 0x1f7   :  { %v7384_v18 = vld [vmem:[#allocation9 + $0x46c] sm:$0xf0]  ;;  %4222 = vmatmul.bf16.vlgmr.msra.gmra.mxu1 %v8058_v31 }
 0x1f8   :  { %v5947_v29 = vld [vmem:[#allocation9 + $0x650] sm:$0xf]  ;;  %v5692_v38 = vor.u32 %v7384_v18, %v5691_v17  ;;  %4270 = vmatpush.bf16.msrb.mxu1 %v6652_v43  ;;  %v8155_v18 = vpop.f32.mrf.mxu0 }
 0x1f9   :  { %v7448_v32 = vld [vmem:[#allocation9 + $0x66c] sm:$0xf0] }
 0x1fa   :  { %v6363_v41 = vld [vmem:[#allocation9 + $0x990] sm:$0xf]  ;;  %v5948_v47 = vor.u32 %v7448_v32, %v5947_v29  ;;  %4234 = vmatpush.bf16.msra.mxu2 %v5692_v38  ;;  %v8158_v29 = vpop.f32.mrf.mxu1  ;;  %v8160_v32 = vadd.f32 %v4683_v11, %v4682_v6 }
 0x1fb   :  { %v7552_v44 = vld [vmem:[#allocation9 + $0x9ac] sm:$0xf0] }
 0x1fc   :  { %v6619_v37 = vld [vmem:[#allocation9 + $0xb90] sm:$0xf]  ;;  %v6364_v63 = vor.u32 %v7552_v44, %v6363_v41  ;;  %4248 = vmatpush.bf16.msra.mxu3 %v5948_v47 }
 0x1fd   :  { %v7616_v45 = vld [vmem:[#allocation9 + $0xbac] sm:$0xf0] }
 0x1fe   :  { %v5659_v49 = vld [vmem:[#allocation9 + $0x410] sm:$0xf]  ;;  %v6620_v7 = vor.u32 %v7616_v45, %v6619_v37  ;;  %4257 = vmatpush.bf16.msrb.mxu0 %v6364_v63 }
 0x1ff   :  { %v7376_v52 = vld [vmem:[#allocation9 + $0x42c] sm:$0xf0] }
 0x200   :  { %v5915_v55 = vld [vmem:[#allocation9 + $0x610] sm:$0xf]  ;;  %v5660_v9 = vor.u32 %v7376_v52, %v5659_v49  ;;  %4271 = vmatpush.bf16.msrb.mxu1 %v6620_v7  ;;  %v1178_v49 = vperm.slane %v8096_v1, 2  ;;  %v3985_v6 = vpop.f32.mrf.mxu0 }
 0x201   :  { %v7440_v28 = vld [vmem:[#allocation9 + $0x62c] sm:$0xf0] }
 0x202   :  { %v6907_v57 = vld [vmem:[#allocation9 + $0xdd0] sm:$0xf]  ;;  %v5916_v14 = vor.u32 %v7440_v28, %v5915_v55  ;;  %4235 = vmatpush.bf16.msra.mxu2 %v5660_v9  ;;  %v3999_v11 = vpop.f32.mrf.mxu1 }
 0x203   :  { %v7688_v59 = vld [vmem:[#allocation9 + $0xdec] sm:$0xf0] }
 0x204   :  { %v7163_v4 = vld [vmem:[#allocation9 + $0xfd0] sm:$0xf]  ;;  %v6908_v15 = vor.u32 %v7688_v59, %v6907_v57  ;;  %4249 = vmatpush.bf16.msra.mxu3 %v5916_v14 }
 0x205   :  { %v7752_v5 = vld [vmem:[#allocation9 + $0xfec] sm:$0xf0]  ;;  %4236 = vmatmul.bf16.vlgmr.msra.gmra.mxu2 %v8062_v54 }
 0x206   :  { %v6331_v53 = vld [vmem:[#allocation9 + $0x950] sm:$0xf]  ;;  %v7164_v19 = vor.u32 %v7752_v5, %v7163_v4  ;;  %4284 = vmatpush.bf16.msrb.mxu2 %v6908_v15 }
 0x207   :  { %v7544_v10 = vld [vmem:[#allocation9 + $0x96c] sm:$0xf0]  ;;  %4250 = vmatmul.bf16.vlgmr.msra.gmra.mxu3 %v8064_v60 }
 0x208   :  { %v6587_v16 = vld [vmem:[#allocation9 + $0xb50] sm:$0xf]  ;;  %v6332_v33 = vor.u32 %v7544_v10, %v6331_v53  ;;  %4298 = vmatpush.bf16.msrb.mxu3 %v7164_v19  ;;  %v3986_v10 = vadd.f32 %v3985_v6, %v1178_v49 }
 0x209   :  { %v7608_v17 = vld [vmem:[#allocation9 + $0xb6c] sm:$0xf0] }
 0x20a   :  { %v6875_v24 = vld [vmem:[#allocation9 + $0xd90] sm:$0xf]  ;;  %v6588_v41 = vor.u32 %v7608_v17, %v6587_v16  ;;  %4258 = vmatpush.bf16.msrb.mxu0 %v6332_v33 }
 0x20b   :  { %v7680_v2 = vld [vmem:[#allocation9 + $0xdac] sm:$0xf0] }
 0x20c   :  { %v7131_v36 = vld [vmem:[#allocation9 + $0xf90] sm:$0xf]  ;;  %v6876_v38 = vor.u32 %v7680_v2, %v6875_v24  ;;  %4272 = vmatpush.bf16.msrb.mxu1 %v6588_v41  ;;  %v4000_v2 = vadd.f32 %v3999_v11, %v3986_v10  ;;  %v8165_v41 = vpop.f32.mrf.mxu2  ;;  %v4001_v11 = vpop.f32.mrf.mxu1 }
 0x20d   :  { %v7744_v39 = vld [vmem:[#allocation9 + $0xfac] sm:$0xf0] }
 0x20e   :  { %v6299_v42 = vld [vmem:[#allocation9 + $0x910] sm:$0xf]  ;;  %v7132_v45 = vor.u32 %v7744_v39, %v7131_v36  ;;  %4285 = vmatpush.bf16.msrb.mxu2 %v6876_v38 }
 0x20f   :  { %v7536_v43 = vld [vmem:[#allocation9 + $0x92c] sm:$0xf0] }
 0x210   :  { %v6555_v44 = vld [vmem:[#allocation9 + $0xb10] sm:$0xf]  ;;  %v6300_v52 = vor.u32 %v7536_v43, %v6299_v42  ;;  %4299 = vmatpush.bf16.msrb.mxu3 %v7132_v45 }
 0x211   :  { %v7600_v37 = vld [vmem:[#allocation9 + $0xb2c] sm:$0xf0] }
 0x212   :  { %v6843_v46 = vld [vmem:[#allocation9 + $0xd50] sm:$0xf]  ;;  %v6556_v57 = vor.u32 %v7600_v37, %v6555_v44  ;;  %4259 = vmatpush.bf16.msrb.mxu0 %v6300_v52  ;;  %v8167_v44 = vpop.f32.mrf.mxu3 }
 0x213   :  { %v7672_v47 = vld [vmem:[#allocation9 + $0xd6c] sm:$0xf0] }
 0x214   :  { %v7099_v55 = vld [vmem:[#allocation9 + $0xf50] sm:$0xf]  ;;  %v6844_v63 = vor.u32 %v7672_v47, %v6843_v46  ;;  %4273 = vmatpush.bf16.msrb.mxu1 %v6556_v57 }
 0x215   :  { %v7736_v28 = vld [vmem:[#allocation9 + $0xf6c] sm:$0xf0] }
 0x216   :  { %v6267_v59 = vld [vmem:[#allocation9 + $0x8d0] sm:$0xf]  ;;  %v7100_v7 = vor.u32 %v7736_v28, %v7099_v55  ;;  %4286 = vmatpush.bf16.msrb.mxu2 %v6844_v63 }
 0x217   :  { %v7528_v61 = vld [vmem:[#allocation9 + $0x8ec] sm:$0xf0] }
 0x218   :  { %v6523_v4 = vld [vmem:[#allocation9 + $0xad0] sm:$0xf]  ;;  %v6268_v14 = vor.u32 %v7528_v61, %v6267_v59  ;;  %4300 = vmatpush.bf16.msrb.mxu3 %v7100_v7  ;;  %v3987_v61 = vpop.f32.mrf.mxu0 }
 0x219   :  { %v7592_v5 = vld [vmem:[#allocation9 + $0xaec] sm:$0xf0]  ;;  %v3988_v6 = vadd.f32 %v3987_v61, %v1178_v49 }
 0x21a   :  { %v6811_v9 = vld [vmem:[#allocation9 + $0xd10] sm:$0xf]  ;;  %v6524_v17 = vor.u32 %v7592_v5, %v6523_v4  ;;  %4260 = vmatpush.bf16.msrb.mxu0 %v6268_v14 }
 0x21b   :  { %v7664_v53 = vld [vmem:[#allocation9 + $0xd2c] sm:$0xf0] }
 0x21c   :  { %v7067_v15 = vld [vmem:[#allocation9 + $0xf10] sm:$0xf]  ;;  %v6812_v33 = vor.u32 %v7664_v53, %v6811_v9  ;;  %4274 = vmatpush.bf16.msrb.mxu1 %v6524_v17 }
 0x21d   :  { %v7728_v16 = vld [vmem:[#allocation9 + $0xf2c] sm:$0xf0] }
 0x21e   :  { %v6235_v19 = vld [vmem:[#allocation9 + $0x890] sm:$0xf]  ;;  %v7068_v42 = vor.u32 %v7728_v16, %v7067_v15  ;;  %4287 = vmatpush.bf16.msrb.mxu2 %v6812_v33  ;;  %v7300_v33 = vld [vmem:[#allocation9 + $0x1d4] sm:$0xf] }
 0x21f   :  { %v7520_v24 = vld [vmem:[#allocation9 + $0x8ac] sm:$0xf0] }
 0x220   :  { %v6491_v36 = vld [vmem:[#allocation9 + $0xa90] sm:$0xf]  ;;  %v6236_v37 = vor.u32 %v7520_v24, %v6235_v19  ;;  %4301 = vmatpush.bf16.msrb.mxu3 %v7068_v42  ;;  %v4002_v19 = vadd.f32 %v4001_v11, %v3988_v6  ;;  %v4013_v42 = vpop.f32.mrf.mxu2  ;;  %v7356_v6 = vld [vmem:[#allocation9 + $0x394] sm:$0xf] }
 0x221   :  { %v7584_v39 = vld [vmem:[#allocation9 + $0xaac] sm:$0xf0] }
 0x222   :  { %v6779_v43 = vld [vmem:[#allocation9 + $0xcd0] sm:$0xf]  ;;  %v6492_v47 = vor.u32 %v7584_v39, %v6491_v36  ;;  %4261 = vmatpush.bf16.msrb.mxu0 %v6236_v37  ;;  %v5373_v36 = vld [vmem:[#allocation9 + $0x1f0] sm:$0xf0] }
 0x223   :  { %v7656_v38 = vld [vmem:[#allocation9 + $0xcec] sm:$0xf0]  ;;  %v7364_v39 = vld [vmem:[#allocation9 + $0x3d4] sm:$0xf] }
 0x224   :  { %v7035_v45 = vld [vmem:[#allocation9 + $0xed0] sm:$0xf]  ;;  %v6780_v28 = vor.u32 %v7656_v38, %v6779_v43  ;;  %4275 = vmatpush.bf16.msrb.mxu1 %v6492_v47  ;;  %v5629_v43 = vld [vmem:[#allocation9 + $0x3f0] sm:$0xf0] }
 0x225   :  { %v7720_v46 = vld [vmem:[#allocation9 + $0xeec] sm:$0xf0] }
 0x226   :  { %v6203_v52 = vld [vmem:[#allocation9 + $0x850] sm:$0xf]  ;;  %v7036_v63 = vor.u32 %v7720_v46, %v7035_v45  ;;  %4288 = vmatpush.bf16.msrb.mxu2 %v6780_v28  ;;  %v4014_v45 = vadd.f32 %v4013_v42, %v4000_v2  ;;  %v4027_v46 = vpop.f32.mrf.mxu3  ;;  %v7292_v28 = vld [vmem:[#allocation9 + $0x194] sm:$0xf] }
 0x227   :  { %v7512_v55 = vld [vmem:[#allocation9 + $0x86c] sm:$0xf0]  ;;  %v5309_v42 = vld [vmem:[#allocation9 + $0x170] sm:$0xf0] }
 0x228   :  { %v6459_v57 = vld [vmem:[#allocation9 + $0xa50] sm:$0xf]  ;;  %v6204_v7 = vor.u32 %v7512_v55, %v6203_v52  ;;  %4302 = vmatpush.bf16.msrb.mxu3 %v7036_v63  ;;  %v8169_v61 = vadd.f32 %v4027_v46, %v4014_v45  ;;  %v5565_v45 = vld [vmem:[#allocation9 + $0x370] sm:$0xf0] }
 0x229   :  { %v7576_v59 = vld [vmem:[#allocation9 + $0xa6c] sm:$0xf0] }
 0x22a   :  { %v6747_v4 = vld [vmem:[#allocation9 + $0xc90] sm:$0xf]  ;;  %v6460_v14 = vor.u32 %v7576_v59, %v6459_v57  ;;  %4262 = vmatpush.bf16.msrb.mxu0 %v6204_v7  ;;  %v5376_v59 = vor.u32 %v7300_v33, %v5373_v36  ;;  %v6141_v33 = vld [vmem:[#allocation9 + $0x7f0] sm:$0xf0] }
 0x22b   :  { %v7648_v5 = vld [vmem:[#allocation9 + $0xcac] sm:$0xf0] }
 0x22c   :  { %v7003_v9 = vld [vmem:[#allocation9 + $0xe90] sm:$0xf]  ;;  %v6748_v24 = vor.u32 %v7648_v5, %v6747_v4  ;;  %4276 = vmatpush.bf16.msrb.mxu1 %v6460_v14  ;;  %v5632_v4 = vor.u32 %v7364_v39, %v5629_v43  ;;  %v5341_v5 = vld [vmem:[#allocation9 + $0x1b0] sm:$0xf0] }
 0x22d   :  { %v7712_v53 = vld [vmem:[#allocation9 + $0xeac] sm:$0xf0]  ;;  %v5885_v14 = vld [vmem:[#allocation9 + $0x5f0] sm:$0xf0] }
 0x22e   :  { %v6171_v10 = vld [vmem:[#allocation9 + $0x810] sm:$0xf]  ;;  %v7004_v49 = vor.u32 %v7712_v53, %v7003_v9  ;;  %4289 = vmatpush.bf16.msrb.mxu2 %v6748_v24  ;;  %v5597_v9 = vld [vmem:[#allocation9 + $0x3b0] sm:$0xf0] }
 0x22f   :  { %v7504_v15 = vld [vmem:[#allocation9 + $0x82c] sm:$0xf0]  ;;  %v5600_v24 = vor.u32 %v7356_v6, %v5597_v9  ;;  %v7284_v39 = vld [vmem:[#allocation9 + $0x154] sm:$0xf] }
 0x230   :  { %v6427_v16 = vld [vmem:[#allocation9 + $0xa10] sm:$0xf]  ;;  %v6172_v47 = vor.u32 %v7504_v15, %v6171_v10  ;;  %4303 = vmatpush.bf16.msrb.mxu3 %v7004_v49  ;;  %v7428_v15 = vld [vmem:[#allocation9 + $0x5d4] sm:$0xf]  ;;  %v4015_v49 = vpop.f32.mrf.mxu2 }
 0x231   :  { %v7568_v17 = vld [vmem:[#allocation9 + $0xa2c] sm:$0xf0]  ;;  %v4016_v46 = vadd.f32 %v4015_v49, %v4002_v19  ;;  %v7276_v6 = vld [vmem:[#allocation9 + $0x114] sm:$0xf]  ;;  %v4041_v49 = vpop.f32.mrf.mxu0 }
 0x232   :  { %v6715_v38 = vld [vmem:[#allocation9 + $0xc50] sm:$0xf]  ;;  %v6428_v57 = vor.u32 %v7568_v17, %v6427_v16  ;;  %4263 = vmatpush.bf16.msrb.mxu0 %v6172_v47  ;;  %v5344_v16 = vor.u32 %v7292_v28, %v5341_v5  ;;  %v7492_v17 = vld [vmem:[#allocation9 + $0x7d4] sm:$0xf] }
 0x233   :  { %v7640_v37 = vld [vmem:[#allocation9 + $0xc6c] sm:$0xf0]  ;;  %v6144_v47 = vor.u32 %v7492_v17, %v6141_v33  ;;  %v7484_v28 = vld [vmem:[#allocation9 + $0x794] sm:$0xf] }
 0x234   :  { %v6971_v52 = vld [vmem:[#allocation9 + $0xe50] sm:$0xf]  ;;  %v6716_v63 = vor.u32 %v7640_v37, %v6715_v38  ;;  %4277 = vmatpush.bf16.msrb.mxu1 %v6428_v57  ;;  %v5888_v38 = vor.u32 %v7428_v15, %v5885_v14  ;;  %v7348_v37 = vld [vmem:[#allocation9 + $0x354] sm:$0xf]  ;;  %v4029_v57 = vpop.f32.mrf.mxu3 }
 0x235   :  { %v7704_v55 = vld [vmem:[#allocation9 + $0xe6c] sm:$0xf0]  ;;  %4264 = vmatmul.bf16.vlgmr.msrb.gmra.mxu0 %v8072_v23  ;;  %v5568_v5 = vor.u32 %v7348_v37, %v5565_v45  ;;  %v5277_v9 = vld [vmem:[#allocation9 + $0x130] sm:$0xf0]  ;;  %v4042_v45 = vadd.f32 %v4041_v49, %v8169_v61 }
 0x236   :  { %v6972_v53 = vor.u32 %v7704_v55, %v6971_v52  ;;  %v6683_v2 = vld [vmem:[#allocation9 + $0xc10] sm:$0xf]  ;;  %4312 = vmatpush.bf16.msra.mxu0 %v5376_v59  ;;  %4290 = vmatpush.bf16.msrb.mxu2 %v6716_v63  ;;  %v7420_v52 = vld [vmem:[#allocation9 + $0x594] sm:$0xf]  ;;  %v5312_v59 = vor.u32 %v7284_v39, %v5309_v42  ;;  %v8173_v63 = vadd.f32 %v4029_v57, %v4016_v46  ;;  %v4055_v46 = vpop.f32.mrf.mxu1 }
 0x237   :  { %v7632_v11 = vld [vmem:[#allocation9 + $0xc2c] sm:$0xf0]  ;;  %4278 = vmatmul.bf16.vlgmr.msrb.gmra.mxu1 %v8074_v27  ;;  %v5853_v55 = vld [vmem:[#allocation9 + $0x5b0] sm:$0xf0]  ;;  %v5280_v15 = vor.u32 %v7276_v6, %v5277_v9 }
 0x238   :  { %v6939_v7 = vld [vmem:[#allocation9 + $0xe10] sm:$0xf]  ;;  %4326 = vmatpush.bf16.msra.mxu1 %v5632_v4  ;;  %v6684_v36 = vor.u32 %v7632_v11, %v6683_v2  ;;  %4304 = vmatpush.bf16.msrb.mxu3 %v6972_v53  ;;  %v6109_v4 = vld [vmem:[#allocation9 + $0x7b0] sm:$0xf0]  ;;  %v5856_v19 = vor.u32 %v7420_v52, %v5853_v55 }
 0x239   :  { %v7696_v10 = vld [vmem:[#allocation9 + $0xe2c] sm:$0xf0]  ;;  %v7340_v53 = vld [vmem:[#allocation9 + $0x314] sm:$0xf]  ;;  %v6112_v11 = vor.u32 %v7484_v28, %v6109_v4  ;;  %v4056_v4 = vadd.f32 %v4055_v46, %v4042_v45 }
 0x23a   :  { %v6940_v43 = vor.u32 %v7696_v10, %v6939_v7  ;;  %4313 = vmatpush.bf16.msra.mxu0 %v5344_v16  ;;  %4291 = vmatpush.bf16.msrb.mxu2 %v6684_v36  ;;  %v5533_v2 = vld [vmem:[#allocation9 + $0x330] sm:$0xf0] }
 0x23b   :  { %v7412_v7 = vld [vmem:[#allocation9 + $0x554] sm:$0xf]  ;;  %v5536_v17 = vor.u32 %v7340_v53, %v5533_v2 }
 0x23c   :  { %4327 = vmatpush.bf16.msra.mxu1 %v5600_v24  ;;  %4305 = vmatpush.bf16.msrb.mxu3 %v6940_v43  ;;  %v5821_v10 = vld [vmem:[#allocation9 + $0x570] sm:$0xf0] }
 0x23d   :  { %4292 = vmatmul.bf16.vlgmr.msrb.gmra.mxu2 %v8078_v62  ;;  %v7476_v14 = vld [vmem:[#allocation9 + $0x754] sm:$0xf]  ;;  %v5824_v36 = vor.u32 %v7412_v7, %v5821_v10 }
 0x23e   :  { %4340 = vmatpush.bf16.msra.mxu2 %v5888_v38  ;;  %4314 = vmatpush.bf16.msra.mxu0 %v5312_v59  ;;  %v6077_v16 = vld [vmem:[#allocation9 + $0x770] sm:$0xf0]  ;;  %v4057_v46 = vpop.f32.mrf.mxu1 }
 0x23f   :  { %4306 = vmatmul.bf16.vlgmr.msrb.gmra.mxu3 %v8080_v0  ;;  %v7268_v33 = vld [vmem:[#allocation9 + $0xd4] sm:$0xf]  ;;  %v6080_v43 = vor.u32 %v7476_v14, %v6077_v16 }
 0x240   :  { %4354 = vmatpush.bf16.msra.mxu3 %v6144_v47  ;;  %4328 = vmatpush.bf16.msra.mxu1 %v5568_v5  ;;  %v5245_v24 = vld [vmem:[#allocation9 + $0xf0] sm:$0xf0] }
 0x241   :  { %v7332_v39 = vld [vmem:[#allocation9 + $0x2d4] sm:$0xf]  ;;  %v5248_v47 = vor.u32 %v7268_v33, %v5245_v24  ;;  %v4043_v24 = vpop.f32.mrf.mxu0 }
 0x242   :  { %4341 = vmatpush.bf16.msra.mxu2 %v5856_v19  ;;  %v5501_v42 = vld [vmem:[#allocation9 + $0x2f0] sm:$0xf0]  ;;  %4315 = vmatpush.bf16.msra.mxu0 %v5280_v15  ;;  %v4044_v49 = vadd.f32 %v4043_v24, %v8173_v63 }
 0x243   :  { %v7404_v38 = vld [vmem:[#allocation9 + $0x514] sm:$0xf]  ;;  %v5504_v57 = vor.u32 %v7332_v39, %v5501_v42 }
 0x244   :  { %4355 = vmatpush.bf16.msra.mxu3 %v6112_v11  ;;  %v5789_v37 = vld [vmem:[#allocation9 + $0x530] sm:$0xf0]  ;;  %4329 = vmatpush.bf16.msra.mxu1 %v5536_v17 }
 0x245   :  { %v7468_v52 = vld [vmem:[#allocation9 + $0x714] sm:$0xf]  ;;  %v5792_v5 = vor.u32 %v7404_v38, %v5789_v37 }
 0x246   :  { %v6045_v55 = vld [vmem:[#allocation9 + $0x730] sm:$0xf0]  ;;  %4342 = vmatpush.bf16.msra.mxu2 %v5824_v36  ;;  %4316 = vmatpush.bf16.msra.mxu0 %v5248_v47 }
 0x247   :  { %v7260_v59 = vld [vmem:[#allocation9 + $0x94] sm:$0xf]  ;;  %v6048_v19 = vor.u32 %v7468_v52, %v6045_v55 }
 0x248   :  { %v5213_v28 = vld [vmem:[#allocation9 + $0xb0] sm:$0xf0]  ;;  %4356 = vmatpush.bf16.msra.mxu3 %v6080_v43  ;;  %4330 = vmatpush.bf16.msra.mxu1 %v5504_v57 }
 0x249   :  { %v7324_v6 = vld [vmem:[#allocation9 + $0x294] sm:$0xf]  ;;  %v5216_v61 = vor.u32 %v7260_v59, %v5213_v28  ;;  %v4058_v59 = vadd.f32 %v4057_v46, %v4044_v49 }
 0x24a   :  { %v5469_v9 = vld [vmem:[#allocation9 + $0x2b0] sm:$0xf0]  ;;  %4343 = vmatpush.bf16.msra.mxu2 %v5792_v5 }
 0x24b   :  { %v7396_v53 = vld [vmem:[#allocation9 + $0x4d4] sm:$0xf]  ;;  %v5472_v10 = vor.u32 %v7324_v6, %v5469_v9  ;;  %4317 = vmatpush.bf16.msra.mxu0 %v5216_v61 }
 0x24c   :  { %v5757_v2 = vld [vmem:[#allocation9 + $0x4f0] sm:$0xf0]  ;;  %4357 = vmatpush.bf16.msra.mxu3 %v6048_v19  ;;  %v4069_v19 = vpop.f32.mrf.mxu2 }
 0x24d   :  { %v7460_v11 = vld [vmem:[#allocation9 + $0x6d4] sm:$0xf]  ;;  %v5760_v16 = vor.u32 %v7396_v53, %v5757_v2  ;;  %4331 = vmatpush.bf16.msra.mxu1 %v5472_v10 }
 0x24e   :  { %v6013_v7 = vld [vmem:[#allocation9 + $0x6f0] sm:$0xf0] }
 0x24f   :  { %v7252_v15 = vld [vmem:[#allocation9 + $0x54] sm:$0xf]  ;;  %v6016_v36 = vor.u32 %v7460_v11, %v6013_v7  ;;  %4344 = vmatpush.bf16.msra.mxu2 %v5760_v16  ;;  %v4070_v11 = vadd.f32 %v4069_v19, %v4056_v4  ;;  %v4083_v7 = vpop.f32.mrf.mxu3 }
 0x250   :  { %v5181_v14 = vld [vmem:[#allocation9 + $0x70] sm:$0xf0] }
 0x251   :  { %v7316_v17 = vld [vmem:[#allocation9 + $0x254] sm:$0xf]  ;;  %v5184_v43 = vor.u32 %v7252_v15, %v5181_v14  ;;  %4358 = vmatpush.bf16.msra.mxu3 %v6016_v36 }
 0x252   :  { %v5437_v33 = vld [vmem:[#allocation9 + $0x270] sm:$0xf0] }
 0x253   :  { %v7388_v39 = vld [vmem:[#allocation9 + $0x494] sm:$0xf]  ;;  %v5440_v47 = vor.u32 %v7316_v17, %v5437_v33  ;;  %4318 = vmatpush.bf16.msra.mxu0 %v5184_v43  ;;  %v8313_v17 = vperm.slane %v8145_v50, 2 }
 0x254   :  { %v5725_v42 = vld [vmem:[#allocation9 + $0x4b0] sm:$0xf0] }
 0x255   :  { %v7452_v38 = vld [vmem:[#allocation9 + $0x694] sm:$0xf]  ;;  %v5728_v28 = vor.u32 %v7388_v39, %v5725_v42  ;;  %4332 = vmatpush.bf16.msra.mxu1 %v5440_v47  ;;  %v4084_v42 = vadd.f32 %v4083_v7, %v4070_v11 }
 0x256   :  { %v5981_v37 = vld [vmem:[#allocation9 + $0x6b0] sm:$0xf0] }
 0x257   :  { %v7244_v45 = vld [vmem:[#allocation9 + $0x14] sm:$0xf]  ;;  %v5984_v63 = vor.u32 %v7452_v38, %v5981_v37  ;;  %4345 = vmatpush.bf16.msra.mxu2 %v5728_v28  ;;  %v4650_v19 = vmax.f32 %v4084_v42, 0.0 }
 0x258   :  { %v5149_v52 = vld [vmem:[#allocation9 + $0x30] sm:$0xf0] }
 0x259   :  { %v7308_v55 = vld [vmem:[#allocation9 + $0x214] sm:$0xf]  ;;  %v5152_v10 = vor.u32 %v7244_v45, %v5149_v52  ;;  %4359 = vmatpush.bf16.msra.mxu3 %v5984_v63  ;;  %v4684_v28 = vmul.f32 %v8313_v17, %v4650_v19  ;;  %v8190_v19 = vld [vmem:[#allocation11] sm:$0xff] }
 0x25a   :  { %v5405_v57 = vld [vmem:[#allocation9 + $0x230] sm:$0xf0] }
 0x25b   :  { %v7556_v5 = vld [vmem:[#allocation9 + $0x9d4] sm:$0xf]  ;;  %v5408_v16 = vor.u32 %v7308_v55, %v5405_v57  ;;  %4319 = vmatpush.bf16.msra.mxu0 %v5152_v10 }
 0x25c   :  { %v6397_v6 = vld [vmem:[#allocation9 + $0x9f0] sm:$0xf0] }
 0x25d   :  { %v7620_v9 = vld [vmem:[#allocation9 + $0xbd4] sm:$0xf]  ;;  %v6400_v33 = vor.u32 %v7556_v5, %v6397_v6  ;;  %4333 = vmatpush.bf16.msra.mxu1 %v5408_v16 }
 0x25e   :  { %v6653_v53 = vld [vmem:[#allocation9 + $0xbf0] sm:$0xf0]  ;;  %4320 = vmatmul.bf16.vlgmr.msra.gmra.mxu0 %v8056_v26 }
 0x25f   :  { %v7380_v2 = vld [vmem:[#allocation9 + $0x454] sm:$0xf]  ;;  %v6656_v36 = vor.u32 %v7620_v9, %v6653_v53  ;;  %4368 = vmatpush.bf16.msrb.mxu0 %v6400_v33 }
 0x260   :  { %v5693_v61 = vld [vmem:[#allocation9 + $0x470] sm:$0xf0]  ;;  %4334 = vmatmul.bf16.vlgmr.msra.gmra.mxu1 %v8058_v31 }
 0x261   :  { %v7444_v15 = vld [vmem:[#allocation9 + $0x654] sm:$0xf]  ;;  %v5696_v49 = vor.u32 %v7380_v2, %v5693_v61  ;;  %4382 = vmatpush.bf16.msrb.mxu1 %v6656_v36  ;;  %v4071_v2 = vpop.f32.mrf.mxu2 }
 0x262   :  { %v5949_v14 = vld [vmem:[#allocation9 + $0x670] sm:$0xf0] }
 0x263   :  { %v7548_v24 = vld [vmem:[#allocation9 + $0x994] sm:$0xf]  ;;  %v5952_v4 = vor.u32 %v7444_v15, %v5949_v14  ;;  %4346 = vmatpush.bf16.msra.mxu2 %v5696_v49  ;;  %v8184_v15 = vadd.f32 %v8160_v32, %v4684_v28  ;;  %v4072_v14 = vadd.f32 %v4071_v2, %v4058_v59 }
 0x264   :  { %v6365_v39 = vld [vmem:[#allocation9 + $0x9b0] sm:$0xf0] }
 0x265   :  { %v7612_v38 = vld [vmem:[#allocation9 + $0xb94] sm:$0xf]  ;;  %v6368_v55 = vor.u32 %v7548_v24, %v6365_v39  ;;  %4360 = vmatpush.bf16.msra.mxu3 %v5952_v4  ;;  %v4085_v39 = vpop.f32.mrf.mxu3 }
 0x266   :  { %v6621_v37 = vld [vmem:[#allocation9 + $0xbb0] sm:$0xf0] }
 0x267   :  { %v7372_v46 = vld [vmem:[#allocation9 + $0x414] sm:$0xf]  ;;  %v6624_v6 = vor.u32 %v7612_v38, %v6621_v37  ;;  %4369 = vmatpush.bf16.msrb.mxu0 %v6368_v55  ;;  %v8187_v38 = vadd.f32 %v4085_v39, %v4072_v14 }
 0x268   :  { %v5661_v43 = vld [vmem:[#allocation9 + $0x430] sm:$0xf0] }
 0x269   :  { %v7436_v45 = vld [vmem:[#allocation9 + $0x614] sm:$0xf]  ;;  %v5664_v9 = vor.u32 %v7372_v46, %v5661_v43  ;;  %4383 = vmatpush.bf16.msrb.mxu1 %v6624_v6 }
 0x26a   :  { %v5917_v52 = vld [vmem:[#allocation9 + $0x630] sm:$0xf0] }
 0x26b   :  { %v6909_v47 = vld [vmem:[#allocation9 + $0xdf0] sm:$0xf0]  ;;  %v5920_v61 = vor.u32 %v7436_v45, %v5917_v52  ;;  %4347 = vmatpush.bf16.msra.mxu2 %v5664_v9 }
 0x26c   :  { %v7748_v57 = vld [vmem:[#allocation9 + $0xfd4] sm:$0xf]  ;;  %v6912_v11 = vor.u32 %v7684_v21, %v6909_v47  ;;  %v1179_v47 = vperm.slane %v8190_v19, 3 }
 0x26d   :  { %v7165_v5 = vld [vmem:[#allocation9 + $0xff0] sm:$0xf0]  ;;  %4361 = vmatpush.bf16.msra.mxu3 %v5920_v61  ;;  %v4097_v61 = vpop.f32.mrf.mxu0 }
 0x26e   :  { %v7540_v63 = vld [vmem:[#allocation9 + $0x954] sm:$0xf]  ;;  %v7168_v16 = vor.u32 %v7748_v57, %v7165_v5  ;;  %4348 = vmatmul.bf16.vlgmr.msra.gmra.mxu2 %v8062_v54  ;;  %v4098_v14 = vadd.f32 %v4097_v61, %v1179_v47 }
 0x26f   :  { %v6333_v53 = vld [vmem:[#allocation9 + $0x970] sm:$0xf0]  ;;  %4396 = vmatpush.bf16.msrb.mxu2 %v6912_v11 }
 0x270   :  { %v7604_v7 = vld [vmem:[#allocation9 + $0xb54] sm:$0xf]  ;;  %v6336_v42 = vor.u32 %v7540_v63, %v6333_v53  ;;  %4362 = vmatmul.bf16.vlgmr.msra.gmra.mxu3 %v8064_v60 }
 0x271   :  { %v6589_v10 = vld [vmem:[#allocation9 + $0xb70] sm:$0xf0]  ;;  %4410 = vmatpush.bf16.msrb.mxu3 %v7168_v16  ;;  %v4111_v16 = vpop.f32.mrf.mxu1 }
 0x272   :  { %v7676_v33 = vld [vmem:[#allocation9 + $0xd94] sm:$0xf]  ;;  %v6592_v21 = vor.u32 %v7604_v7, %v6589_v10  ;;  %4370 = vmatpush.bf16.msrb.mxu0 %v6336_v42 }
 0x273   :  { %v6877_v24 = vld [vmem:[#allocation9 + $0xdb0] sm:$0xf0] }
 0x274   :  { %v7740_v36 = vld [vmem:[#allocation9 + $0xf94] sm:$0xf]  ;;  %v6880_v32 = vor.u32 %v7676_v33, %v6877_v24  ;;  %4384 = vmatpush.bf16.msrb.mxu1 %v6592_v21  ;;  %v4112_v21 = vadd.f32 %v4111_v16, %v4098_v14 }
 0x275   :  { %v7133_v49 = vld [vmem:[#allocation9 + $0xfb0] sm:$0xf0] }
 0x276   :  { %v7532_v37 = vld [vmem:[#allocation9 + $0x914] sm:$0xf]  ;;  %v7136_v43 = vor.u32 %v7740_v36, %v7133_v49  ;;  %4397 = vmatpush.bf16.msrb.mxu2 %v6880_v32 }
 0x277   :  { %v6301_v46 = vld [vmem:[#allocation9 + $0x930] sm:$0xf0] }
 0x278   :  { %v7596_v59 = vld [vmem:[#allocation9 + $0xb14] sm:$0xf]  ;;  %v6304_v55 = vor.u32 %v7532_v37, %v6301_v46  ;;  %4411 = vmatpush.bf16.msrb.mxu3 %v7136_v43 }
 0x279   :  { %v6557_v4 = vld [vmem:[#allocation9 + $0xb30] sm:$0xf0] }
 0x27a   :  { %v7668_v45 = vld [vmem:[#allocation9 + $0xd54] sm:$0xf]  ;;  %v6560_v28 = vor.u32 %v7596_v59, %v6557_v4  ;;  %4371 = vmatpush.bf16.msrb.mxu0 %v6304_v55 }
 0x27b   :  { %v6845_v52 = vld [vmem:[#allocation9 + $0xd70] sm:$0xf0] }
 0x27c   :  { %v7732_v57 = vld [vmem:[#allocation9 + $0xf54] sm:$0xf]  ;;  %v6848_v63 = vor.u32 %v7668_v45, %v6845_v52  ;;  %4385 = vmatpush.bf16.msrb.mxu1 %v6560_v28 }
 0x27d   :  { %v7101_v5 = vld [vmem:[#allocation9 + $0xf70] sm:$0xf0] }
 0x27e   :  { %v7524_v6 = vld [vmem:[#allocation9 + $0x8d4] sm:$0xf]  ;;  %v7104_v11 = vor.u32 %v7732_v57, %v7101_v5  ;;  %4398 = vmatpush.bf16.msrb.mxu2 %v6848_v63  ;;  %v4099_v63 = vpop.f32.mrf.mxu0 }
 0x27f   :  { %v6269_v9 = vld [vmem:[#allocation9 + $0x8f0] sm:$0xf0] }
 0x280   :  { %v7588_v53 = vld [vmem:[#allocation9 + $0xad4] sm:$0xf]  ;;  %v6272_v33 = vor.u32 %v7524_v6, %v6269_v9  ;;  %4412 = vmatpush.bf16.msrb.mxu3 %v7104_v11 }
 0x281   :  { %v6525_v2 = vld [vmem:[#allocation9 + $0xaf0] sm:$0xf0] }
 0x282   :  { %v7660_v7 = vld [vmem:[#allocation9 + $0xd14] sm:$0xf]  ;;  %v6528_v42 = vor.u32 %v7588_v53, %v6525_v2  ;;  %4372 = vmatpush.bf16.msrb.mxu0 %v6272_v33 }
 0x283   :  { %v6813_v10 = vld [vmem:[#allocation9 + $0xd30] sm:$0xf0] }
 0x284   :  { %v7724_v24 = vld [vmem:[#allocation9 + $0xf14] sm:$0xf]  ;;  %v6816_v37 = vor.u32 %v7660_v7, %v6813_v10  ;;  %4386 = vmatpush.bf16.msrb.mxu1 %v6528_v42  ;;  %v4100_v7 = vadd.f32 %v4099_v63, %v1179_v47 }
 0x285   :  { %v7069_v39 = vld [vmem:[#allocation9 + $0xf30] sm:$0xf0] }
 0x286   :  { %v7516_v36 = vld [vmem:[#allocation9 + $0x894] sm:$0xf]  ;;  %v7072_v59 = vor.u32 %v7724_v24, %v7069_v39  ;;  %4399 = vmatpush.bf16.msrb.mxu2 %v6816_v37  ;;  %v4113_v24 = vpop.f32.mrf.mxu1 }
 0x287   :  { %v6237_v49 = vld [vmem:[#allocation9 + $0x8b0] sm:$0xf0]  ;;  %v4114_v37 = vadd.f32 %v4113_v24, %v4100_v7  ;;  %v7297_v24 = vld [vmem:[#allocation9 + $0x1b4] sm:$0xf0] }
 0x288   :  { %v7580_v46 = vld [vmem:[#allocation9 + $0xa94] sm:$0xf]  ;;  %v6240_v45 = vor.u32 %v7516_v36, %v6237_v49  ;;  %4413 = vmatpush.bf16.msrb.mxu3 %v7072_v59  ;;  %v7305_v59 = vld [vmem:[#allocation9 + $0x1f4] sm:$0xf0] }
 0x289   :  { %v6493_v32 = vld [vmem:[#allocation9 + $0xab0] sm:$0xf0] }
 0x28a   :  { %v7652_v4 = vld [vmem:[#allocation9 + $0xcd4] sm:$0xf]  ;;  %v6496_v57 = vor.u32 %v7580_v46, %v6493_v32  ;;  %4373 = vmatpush.bf16.msrb.mxu0 %v6240_v45  ;;  %v5379_v32 = vld [vmem:[#allocation9 + $0x1d8] sm:$0xf] }
 0x28b   :  { %v6781_v43 = vld [vmem:[#allocation9 + $0xcf0] sm:$0xf0]  ;;  %v7369_v45 = vld [vmem:[#allocation9 + $0x3f4] sm:$0xf0]  ;;  %v5380_v7 = vor.u32 %v7305_v59, %v5379_v32 }
 0x28c   :  { %v7716_v52 = vld [vmem:[#allocation9 + $0xed4] sm:$0xf]  ;;  %v6784_v6 = vor.u32 %v7652_v4, %v6781_v43  ;;  %4387 = vmatpush.bf16.msrb.mxu1 %v6496_v57  ;;  %v5635_v4 = vld [vmem:[#allocation9 + $0x3d8] sm:$0xf]  ;;  %v4125_v43 = vpop.f32.mrf.mxu2 }
 0x28d   :  { %v7037_v55 = vld [vmem:[#allocation9 + $0xef0] sm:$0xf0]  ;;  %v7497_v32 = vld [vmem:[#allocation9 + $0x7f4] sm:$0xf0] }
 0x28e   :  { %v7508_v5 = vld [vmem:[#allocation9 + $0x854] sm:$0xf]  ;;  %v7040_v2 = vor.u32 %v7716_v52, %v7037_v55  ;;  %4400 = vmatpush.bf16.msrb.mxu2 %v6784_v6  ;;  %v5347_v6 = vld [vmem:[#allocation9 + $0x198] sm:$0xf] }
 0x28f   :  { %v6205_v28 = vld [vmem:[#allocation9 + $0x870] sm:$0xf0] }
 0x290   :  { %v7572_v9 = vld [vmem:[#allocation9 + $0xa54] sm:$0xf]  ;;  %v6208_v10 = vor.u32 %v7508_v5, %v6205_v28  ;;  %4414 = vmatpush.bf16.msrb.mxu3 %v7040_v2  ;;  %v4126_v5 = vadd.f32 %v4125_v43, %v4112_v21  ;;  %v4139_v28 = vpop.f32.mrf.mxu3 }
 0x291   :  { %v6461_v53 = vld [vmem:[#allocation9 + $0xa70] sm:$0xf0] }
 0x292   :  { %v7644_v61 = vld [vmem:[#allocation9 + $0xc94] sm:$0xf]  ;;  %v6464_v39 = vor.u32 %v7572_v9, %v6461_v53  ;;  %4374 = vmatpush.bf16.msrb.mxu0 %v6208_v10 }
 0x293   :  { %v6749_v11 = vld [vmem:[#allocation9 + $0xcb0] sm:$0xf0] }
 0x294   :  { %v7708_v14 = vld [vmem:[#allocation9 + $0xe94] sm:$0xf]  ;;  %v6752_v46 = vor.u32 %v7644_v61, %v6749_v11  ;;  %4388 = vmatpush.bf16.msrb.mxu1 %v6464_v39  ;;  %v8194_v61 = vadd.f32 %v4139_v28, %v4126_v5  ;;  %v5636_v11 = vor.u32 %v7369_v45, %v5635_v4  ;;  %v7433_v39 = vld [vmem:[#allocation9 + $0x5f4] sm:$0xf0] }
 0x295   :  { %v7005_v16 = vld [vmem:[#allocation9 + $0xeb0] sm:$0xf0]  ;;  %v7289_v45 = vld [vmem:[#allocation9 + $0x174] sm:$0xf0] }
 0x296   :  { %v7500_v33 = vld [vmem:[#allocation9 + $0x814] sm:$0xf]  ;;  %v7008_v47 = vor.u32 %v7708_v14, %v7005_v16  ;;  %4401 = vmatpush.bf16.msrb.mxu2 %v6752_v46  ;;  %v5603_v14 = vld [vmem:[#allocation9 + $0x398] sm:$0xf] }
 0x297   :  { %v6173_v42 = vld [vmem:[#allocation9 + $0x830] sm:$0xf0]  ;;  %v7361_v16 = vld [vmem:[#allocation9 + $0x3b4] sm:$0xf0] }
 0x298   :  { %v7564_v36 = vld [vmem:[#allocation9 + $0xa14] sm:$0xf]  ;;  %v6176_v57 = vor.u32 %v7500_v33, %v6173_v42  ;;  %4415 = vmatpush.bf16.msrb.mxu3 %v7008_v47  ;;  %v5891_v42 = vld [vmem:[#allocation9 + $0x5d8] sm:$0xf]  ;;  %v5604_v59 = vor.u32 %v7361_v16, %v5603_v14 }
 0x299   :  { %v6429_v49 = vld [vmem:[#allocation9 + $0xa30] sm:$0xf0]  ;;  %v6147_v46 = vld [vmem:[#allocation9 + $0x7d8] sm:$0xf]  ;;  %v5892_v5 = vor.u32 %v7433_v39, %v5891_v42 }
 0x29a   :  { %v7636_v52 = vld [vmem:[#allocation9 + $0xc54] sm:$0xf]  ;;  %v6432_v63 = vor.u32 %v7564_v36, %v6429_v49  ;;  %4375 = vmatpush.bf16.msrb.mxu0 %v6176_v57  ;;  %v3876_v36 = vadd.f32 %v8134_v22, %v1177_v20  ;;  %v5348_v49 = vor.u32 %v7297_v24, %v5347_v6  ;;  %v5315_v47 = vld [vmem:[#allocation9 + $0x158] sm:$0xf]  ;;  %v3764_v20 = vadd.f32 %v8107_v51, %v1176_v12 }
 0x29b   :  { %v6717_v55 = vld [vmem:[#allocation9 + $0xc70] sm:$0xf0]  ;;  %v5571_v28 = vld [vmem:[#allocation9 + $0x358] sm:$0xf]  ;;  %v5316_v6 = vor.u32 %v7289_v45, %v5315_v47  ;;  %v4153_v45 = vpop.f32.mrf.mxu0 }
 0x29c   :  { %v7700_v9 = vld [vmem:[#allocation9 + $0xe54] sm:$0xf]  ;;  %v6720_v2 = vor.u32 %v7636_v52, %v6717_v55  ;;  %4389 = vmatpush.bf16.msrb.mxu1 %v6432_v63  ;;  %v4127_v52 = vpop.f32.mrf.mxu2  ;;  %v7353_v57 = vld [vmem:[#allocation9 + $0x374] sm:$0xf0] }
 0x29d   :  { %v6973_v53 = vld [vmem:[#allocation9 + $0xe70] sm:$0xf0]  ;;  %4376 = vmatmul.bf16.vlgmr.msrb.gmra.mxu0 %v8072_v23  ;;  %v4128_v22 = vadd.f32 %v4127_v52, %v4114_v37  ;;  %v7425_v63 = vld [vmem:[#allocation9 + $0x5b4] sm:$0xf0]  ;;  %v5572_v1 = vor.u32 %v7353_v57, %v5571_v28  ;;  %v4154_v28 = vadd.f32 %v4153_v45, %v8194_v61 }
 0x29e   :  { %v6976_v17 = vor.u32 %v7700_v9, %v6973_v53  ;;  %v7628_v21 = vld [vmem:[#allocation9 + $0xc14] sm:$0xf]  ;;  %4424 = vmatpush.bf16.msra.mxu0 %v5380_v7  ;;  %4402 = vmatpush.bf16.msrb.mxu2 %v6720_v2  ;;  %v6148_v9 = vor.u32 %v7497_v32, %v6147_v46  ;;  %v5859_v53 = vld [vmem:[#allocation9 + $0x598] sm:$0xf]  ;;  %v3890_v7 = vadd.f32 %v8137_v30, %v3876_v36 }
 0x29f   :  { %v6685_v43 = vld [vmem:[#allocation9 + $0xc30] sm:$0xf0]  ;;  %4390 = vmatmul.bf16.vlgmr.msrb.gmra.mxu1 %v8074_v27  ;;  %v7489_v2 = vld [vmem:[#allocation9 + $0x7b4] sm:$0xf0]  ;;  %v5860_v37 = vor.u32 %v7425_v63, %v5859_v53  ;;  %v3778_v30 = vadd.f32 %v8109_v56, %v3764_v20 }
 0x2a0   :  { %v7692_v10 = vld [vmem:[#allocation9 + $0xe14] sm:$0xf]  ;;  %4438 = vmatpush.bf16.msra.mxu1 %v5636_v11  ;;  %v6688_v4 = vor.u32 %v7628_v21, %v6685_v43  ;;  %4416 = vmatpush.bf16.msrb.mxu3 %v6976_v17  ;;  %v4141_v17 = vpop.f32.mrf.mxu3  ;;  %v6115_v11 = vld [vmem:[#allocation9 + $0x798] sm:$0xf]  ;;  %v3904_v51 = vadd.f32 %v8141_v34, %v3890_v7 }
 0x2a1   :  { %v6941_v33 = vld [vmem:[#allocation9 + $0xe30] sm:$0xf0]  ;;  %v8205_v24 = vadd.f32 %v4141_v17, %v4128_v22  ;;  %v5283_v14 = vld [vmem:[#allocation9 + $0x118] sm:$0xf]  ;;  %v6116_v43 = vor.u32 %v7489_v2, %v6115_v11 }
 0x2a2   :  { %v6944_v55 = vor.u32 %v7692_v10, %v6941_v33  ;;  %4425 = vmatpush.bf16.msra.mxu0 %v5348_v49  ;;  %4403 = vmatpush.bf16.msrb.mxu2 %v6688_v4  ;;  %v7281_v12 = vld [vmem:[#allocation9 + $0x134] sm:$0xf0]  ;;  %v3792_v49 = vadd.f32 %v8116_v25, %v3778_v30  ;;  %v3918_v56 = vadd.f32 %v8143_v40, %v3904_v51  ;;  %v4167_v25 = vpop.f32.mrf.mxu1 }
 0x2a3   :  { %v5539_v16 = vld [vmem:[#allocation9 + $0x318] sm:$0xf]  ;;  %v5284_v42 = vor.u32 %v7281_v12, %v5283_v14  ;;  %v4168_v17 = vadd.f32 %v4167_v25, %v4154_v28 }
 0x2a4   :  { %4439 = vmatpush.bf16.msra.mxu1 %v5604_v59  ;;  %4417 = vmatpush.bf16.msrb.mxu3 %v6944_v55  ;;  %v7345_v21 = vld [vmem:[#allocation9 + $0x334] sm:$0xf0]  ;;  %v3932_v7 = vadd.f32 %v8155_v18, %v3918_v56 }
 0x2a5   :  { %v5827_v10 = vld [vmem:[#allocation9 + $0x558] sm:$0xf]  ;;  %4404 = vmatmul.bf16.vlgmr.msrb.gmra.mxu2 %v8078_v62  ;;  %v5540_v34 = vor.u32 %v7345_v21, %v5539_v16 }
 0x2a6   :  { %4452 = vmatpush.bf16.msra.mxu2 %v5892_v5  ;;  %v7417_v33 = vld [vmem:[#allocation9 + $0x574] sm:$0xf0]  ;;  %4426 = vmatpush.bf16.msra.mxu0 %v5316_v6  ;;  %v3946_v18 = vadd.f32 %v8158_v29, %v3932_v7 }
 0x2a7   :  { %v6083_v39 = vld [vmem:[#allocation9 + $0x758] sm:$0xf]  ;;  %4418 = vmatmul.bf16.vlgmr.msrb.gmra.mxu3 %v8080_v0  ;;  %v5828_v59 = vor.u32 %v7417_v33, %v5827_v10 }
 0x2a8   :  { %4466 = vmatpush.bf16.msra.mxu3 %v6148_v9  ;;  %v7481_v36 = vld [vmem:[#allocation9 + $0x774] sm:$0xf0]  ;;  %4440 = vmatpush.bf16.msra.mxu1 %v5572_v1  ;;  %v3806_v9 = vadd.f32 %v8118_v48, %v3792_v49 }
 0x2a9   :  { %v5251_v46 = vld [vmem:[#allocation9 + $0xd8] sm:$0xf]  ;;  %v6084_v52 = vor.u32 %v7481_v36, %v6083_v39 }
 0x2aa   :  { %v7273_v32 = vld [vmem:[#allocation9 + $0xf4] sm:$0xf0]  ;;  %4453 = vmatpush.bf16.msra.mxu2 %v5860_v37  ;;  %4427 = vmatpush.bf16.msra.mxu0 %v5284_v42  ;;  %v3820_v61 = vadd.f32 %v8120_v58, %v3806_v9  ;;  %v4155_v42 = vpop.f32.mrf.mxu0 }
 0x2ab   :  { %v5507_v4 = vld [vmem:[#allocation9 + $0x2d8] sm:$0xf]  ;;  %v5252_v57 = vor.u32 %v7273_v32, %v5251_v46  ;;  %v4156_v46 = vadd.f32 %v4155_v42, %v8205_v24 }
 0x2ac   :  { %v7337_v47 = vld [vmem:[#allocation9 + $0x2f4] sm:$0xf0]  ;;  %4467 = vmatpush.bf16.msra.mxu3 %v6116_v43  ;;  %4441 = vmatpush.bf16.msra.mxu1 %v5540_v34  ;;  %v3834_v58 = vadd.f32 %v8122_v3, %v3820_v61  ;;  %v3960_v34 = vadd.f32 %v8165_v41, %v3946_v18  ;;  %v8226_v61 = vld [vmem:[#allocation12] sm:$0xff] }
 0x2ad   :  { %v5795_v55 = vld [vmem:[#allocation9 + $0x518] sm:$0xf]  ;;  %v5508_v40 = vor.u32 %v7337_v47, %v5507_v4  ;;  %v4169_v47 = vpop.f32.mrf.mxu1 }
 0x2ae   :  { %v7409_v5 = vld [vmem:[#allocation9 + $0x534] sm:$0xf0]  ;;  %4454 = vmatpush.bf16.msra.mxu2 %v5828_v59  ;;  %4428 = vmatpush.bf16.msra.mxu0 %v5252_v57  ;;  %v3848_v4 = vadd.f32 %v8129_v8, %v3834_v58  ;;  %v4181_v57 = vpop.f32.mrf.mxu2  ;;  %v3974_v8 = vadd.f32 %v8167_v44, %v3960_v34 }
 0x2af   :  { %v6051_v20 = vld [vmem:[#allocation9 + $0x718] sm:$0xf]  ;;  %v5796_v6 = vor.u32 %v7409_v5, %v5795_v55  ;;  %v8222_v5 = vadd.f32 %v4169_v47, %v4156_v46 }
 0x2b0   :  { %v7473_v22 = vld [vmem:[#allocation9 + $0x734] sm:$0xf0]  ;;  %4468 = vmatpush.bf16.msra.mxu3 %v6084_v52  ;;  %4442 = vmatpush.bf16.msra.mxu1 %v5508_v40 }
 0x2b1   :  { %v5219_v53 = vld [vmem:[#allocation9 + $0x98] sm:$0xf]  ;;  %v6052_v1 = vor.u32 %v7473_v22, %v6051_v20 }
 0x2b2   :  { %v7265_v63 = vld [vmem:[#allocation9 + $0xb4] sm:$0xf0]  ;;  %4455 = vmatpush.bf16.msra.mxu2 %v5796_v6 }
 0x2b3   :  { %v5475_v11 = vld [vmem:[#allocation9 + $0x298] sm:$0xf]  ;;  %v5220_v51 = vor.u32 %v7265_v63, %v5219_v53  ;;  %v4182_v53 = vadd.f32 %v4181_v57, %v4168_v17  ;;  %v4195_v63 = vpop.f32.mrf.mxu3 }
 0x2b4   :  { %v7329_v2 = vld [vmem:[#allocation9 + $0x2b4] sm:$0xf0]  ;;  %4469 = vmatpush.bf16.msra.mxu3 %v6052_v1  ;;  %v4669_v1 = vperm.slane %v8226_v61, 3 }
 0x2b5   :  { %v5763_v14 = vld [vmem:[#allocation9 + $0x4d8] sm:$0xf]  ;;  %v5476_v16 = vor.u32 %v7329_v2, %v5475_v11  ;;  %4429 = vmatpush.bf16.msra.mxu0 %v5220_v51  ;;  %v3862_v2 = vadd.f32 %v8131_v13, %v3848_v4 }
 0x2b6   :  { %v7401_v12 = vld [vmem:[#allocation9 + $0x4f4] sm:$0xf0] }
 0x2b7   :  { %v6019_v48 = vld [vmem:[#allocation9 + $0x6d8] sm:$0xf]  ;;  %v5764_v43 = vor.u32 %v7401_v12, %v5763_v14  ;;  %4443 = vmatpush.bf16.msra.mxu1 %v5476_v16 }
 0x2b8   :  { %v7465_v37 = vld [vmem:[#allocation9 + $0x6f4] sm:$0xf0] }
 0x2b9   :  { %v5187_v21 = vld [vmem:[#allocation9 + $0x58] sm:$0xf]  ;;  %v6020_v39 = vor.u32 %v7465_v37, %v6019_v48  ;;  %4456 = vmatpush.bf16.msra.mxu2 %v5764_v43  ;;  %v4196_v37 = vadd.f32 %v4195_v63, %v4182_v53 }
 0x2ba   :  { %v7257_v30 = vld [vmem:[#allocation9 + $0x74] sm:$0xf0] }
 0x2bb   :  { %v5443_v10 = vld [vmem:[#allocation9 + $0x258] sm:$0xf]  ;;  %v5188_v32 = vor.u32 %v7257_v30, %v5187_v21  ;;  %4470 = vmatpush.bf16.msra.mxu3 %v6020_v39  ;;  %v4651_v58 = vmax.f32 %v4196_v37, 0.0 }
 0x2bc   :  { %v7321_v33 = vld [vmem:[#allocation9 + $0x274] sm:$0xf0] }
 0x2bd   :  { %v5731_v36 = vld [vmem:[#allocation9 + $0x498] sm:$0xf]  ;;  %v5444_v45 = vor.u32 %v7321_v33, %v5443_v10  ;;  %4430 = vmatpush.bf16.msra.mxu0 %v5188_v32  ;;  %v4657_v33 = vmax.f32 %v3974_v8, 0.0  ;;  %v4658_v32 = vmax.f32 %v8187_v38, 0.0 }
 0x2be   :  { %v7393_v49 = vld [vmem:[#allocation9 + $0x4b4] sm:$0xf0] }
 0x2bf   :  { %v5987_v56 = vld [vmem:[#allocation9 + $0x698] sm:$0xf]  ;;  %v5732_v28 = vor.u32 %v7393_v49, %v5731_v36  ;;  %4444 = vmatpush.bf16.msra.mxu1 %v5444_v45  ;;  %v4656_v36 = vmax.f32 %v3862_v2, 0.0  ;;  %v4183_v45 = vpop.f32.mrf.mxu2  ;;  %v4691_v38 = vmul.f32 %v4667_v35, %v4657_v33  ;;  %v8315_v35 = vperm.slane %v8145_v50, 2 }
 0x2c0   :  { %v7457_v59 = vld [vmem:[#allocation9 + $0x6b4] sm:$0xf0] }
 0x2c1   :  { %v5155_v29 = vld [vmem:[#allocation9 + $0x18] sm:$0xf]  ;;  %v5988_v20 = vor.u32 %v7457_v59, %v5987_v56  ;;  %4457 = vmatpush.bf16.msra.mxu2 %v5732_v28  ;;  %v4685_v56 = vmul.f32 %v4669_v1, %v4651_v58 }
 0x2c2   :  { %v7249_v3 = vld [vmem:[#allocation9 + $0x34] sm:$0xf0] }
 0x2c3   :  { %v5411_v52 = vld [vmem:[#allocation9 + $0x218] sm:$0xf]  ;;  %v5156_v7 = vor.u32 %v7249_v3, %v5155_v29  ;;  %4471 = vmatpush.bf16.msra.mxu3 %v5988_v20 }
 0x2c4   :  { %v7313_v55 = vld [vmem:[#allocation9 + $0x234] sm:$0xf0] }
 0x2c5   :  { %v6403_v41 = vld [vmem:[#allocation9 + $0x9d8] sm:$0xf]  ;;  %v5412_v14 = vor.u32 %v7313_v55, %v5411_v52  ;;  %4431 = vmatpush.bf16.msra.mxu0 %v5156_v7  ;;  %v4692_v7 = vmul.f32 %v8315_v35, %v4658_v32 }
 0x2c6   :  { %v7561_v25 = vld [vmem:[#allocation9 + $0x9f4] sm:$0xf0] }
 0x2c7   :  { %v6659_v24 = vld [vmem:[#allocation9 + $0xbd8] sm:$0xf]  ;;  %v6404_v12 = vor.u32 %v7561_v25, %v6403_v41  ;;  %4445 = vmatpush.bf16.msra.mxu1 %v5412_v14  ;;  %v8236_v41 = vadd.f32 %v8184_v15, %v4685_v56  ;;  %v4184_v25 = vadd.f32 %v4183_v45, %v8222_v5  ;;  %v4223_v56 = vpop.f32.mrf.mxu1 }
 0x2c8   :  { %v7625_v22 = vld [vmem:[#allocation9 + $0xbf4] sm:$0xf0]  ;;  %4432 = vmatmul.bf16.vlgmr.msra.gmra.mxu0 %v8056_v26 }
 0x2c9   :  { %v5699_v9 = vld [vmem:[#allocation9 + $0x458] sm:$0xf]  ;;  %v6660_v44 = vor.u32 %v7625_v22, %v6659_v24  ;;  %4480 = vmatpush.bf16.msrb.mxu0 %v6404_v12  ;;  %v8314_v22 = vperm.slane %v8145_v50, 0  ;;  %v1180_v50 = vperm.slane %v8190_v19, 4  ;;  %v4209_v19 = vpop.f32.mrf.mxu0 }
 0x2ca   :  { %v7385_v40 = vld [vmem:[#allocation9 + $0x474] sm:$0xf0]  ;;  %4446 = vmatmul.bf16.vlgmr.msra.gmra.mxu1 %v8058_v31 }
 0x2cb   :  { %v5955_v6 = vld [vmem:[#allocation9 + $0x658] sm:$0xf]  ;;  %v5700_v17 = vor.u32 %v7385_v40, %v5699_v9  ;;  %4494 = vmatpush.bf16.msrb.mxu1 %v6660_v44  ;;  %v4690_v9 = vmul.f32 %v8314_v22, %v4656_v36  ;;  %v4197_v40 = vpop.f32.mrf.mxu3  ;;  %v4210_v32 = vadd.f32 %v4209_v19, %v1180_v50 }
 0x2cc   :  { %v7449_v11 = vld [vmem:[#allocation9 + $0x674] sm:$0xf0]  ;;  %v4198_v15 = vadd.f32 %v4197_v40, %v4184_v25 }
 0x2cd   :  { %v6371_v51 = vld [vmem:[#allocation9 + $0x998] sm:$0xf]  ;;  %v5956_v18 = vor.u32 %v7449_v11, %v5955_v6  ;;  %4458 = vmatpush.bf16.msra.mxu2 %v5700_v17 }
 0x2ce   :  { %v7553_v48 = vld [vmem:[#allocation9 + $0x9b4] sm:$0xf0] }
 0x2cf   :  { %v6627_v16 = vld [vmem:[#allocation9 + $0xb98] sm:$0xf]  ;;  %v6372_v49 = vor.u32 %v7553_v48, %v6371_v51  ;;  %4472 = vmatpush.bf16.msra.mxu3 %v5956_v18  ;;  %v4707_v51 = vadd.f32 %v4691_v38, %v4690_v9  ;;  %v4659_v48 = vmax.f32 %v4198_v15, 0.0 }
 0x2d0   :  { %v7617_v21 = vld [vmem:[#allocation9 + $0xbb4] sm:$0xf0] }
 0x2d1   :  { %v5667_v30 = vld [vmem:[#allocation9 + $0x418] sm:$0xf]  ;;  %v6628_v59 = vor.u32 %v7617_v21, %v6627_v16  ;;  %4481 = vmatpush.bf16.msrb.mxu0 %v6372_v49  ;;  %v4708_v18 = vadd.f32 %v4707_v51, %v4692_v7  ;;  %v4211_v7 = vpop.f32.mrf.mxu0 }
 0x2d2   :  { %v7377_v43 = vld [vmem:[#allocation9 + $0x434] sm:$0xf0] }
 0x2d3   :  { %v5923_v13 = vld [vmem:[#allocation9 + $0x618] sm:$0xf]  ;;  %v5668_v29 = vor.u32 %v7377_v43, %v5667_v30  ;;  %4495 = vmatpush.bf16.msrb.mxu1 %v6628_v59  ;;  %v4693_v43 = vmul.f32 %v4669_v1, %v4659_v48  ;;  %v4225_v48 = vpop.f32.mrf.mxu1  ;;  %v4251_v19 = vpop.f32.mrf.mxu3 }
 0x2d4   :  { %v7441_v10 = vld [vmem:[#allocation9 + $0x634] sm:$0xf0] }
 0x2d5   :  { %v6915_v42 = vld [vmem:[#allocation9 + $0xdd8] sm:$0xf]  ;;  %v5924_v3 = vor.u32 %v7441_v10, %v5923_v13  ;;  %4459 = vmatpush.bf16.msra.mxu2 %v5668_v29  ;;  %v8249_v36 = vadd.f32 %v4708_v18, %v4693_v43  ;;  %v7301_v18 = vld [vmem:[#allocation9 + $0x1dc] sm:$0xf] }
 0x2d6   :  { %v7689_v39 = vld [vmem:[#allocation9 + $0xdf4] sm:$0xf0]  ;;  %v5381_v43 = vld [vmem:[#allocation9 + $0x1f8] sm:$0xf0] }
 0x2d7   :  { %v7171_v34 = vld [vmem:[#allocation9 + $0xfd8] sm:$0xf]  ;;  %v6916_v52 = vor.u32 %v7689_v39, %v6915_v42  ;;  %4473 = vmatpush.bf16.msra.mxu3 %v5924_v3  ;;  %v4224_v3 = vadd.f32 %v4223_v56, %v4210_v32  ;;  %v5384_v56 = vor.u32 %v7301_v18, %v5381_v43  ;;  %v5285_v18 = vld [vmem:[#allocation9 + $0x138] sm:$0xf0] }
 0x2d8   :  { %v7753_v46 = vld [vmem:[#allocation9 + $0xff4] sm:$0xf0]  ;;  %4460 = vmatmul.bf16.vlgmr.msra.gmra.mxu2 %v8062_v54  ;;  %v7341_v43 = vld [vmem:[#allocation9 + $0x31c] sm:$0xf] }
 0x2d9   :  { %v6339_v4 = vld [vmem:[#allocation9 + $0x958] sm:$0xf]  ;;  %v7172_v24 = vor.u32 %v7753_v46, %v7171_v34  ;;  %4508 = vmatpush.bf16.msrb.mxu2 %v6916_v52 }
 0x2da   :  { %v7545_v47 = vld [vmem:[#allocation9 + $0x974] sm:$0xf0]  ;;  %4474 = vmatmul.bf16.vlgmr.msra.gmra.mxu3 %v8064_v60 }
 0x2db   :  { %v6595_v55 = vld [vmem:[#allocation9 + $0xb58] sm:$0xf]  ;;  %v6340_v8 = vor.u32 %v7545_v47, %v6339_v4  ;;  %4522 = vmatpush.bf16.msrb.mxu3 %v7172_v24 }
 0x2dc   :  { %v7609_v28 = vld [vmem:[#allocation9 + $0xb74] sm:$0xf0] }
 0x2dd   :  { %v6883_v57 = vld [vmem:[#allocation9 + $0xd98] sm:$0xf]  ;;  %v6596_v5 = vor.u32 %v7609_v28, %v6595_v55  ;;  %4482 = vmatpush.bf16.msrb.mxu0 %v6340_v8 }
 0x2de   :  { %v7681_v20 = vld [vmem:[#allocation9 + $0xdb4] sm:$0xf0] }
 0x2df   :  { %v7139_v53 = vld [vmem:[#allocation9 + $0xf98] sm:$0xf]  ;;  %v6884_v2 = vor.u32 %v7681_v20, %v6883_v57  ;;  %4496 = vmatpush.bf16.msrb.mxu1 %v6596_v5 }
 0x2e0   :  { %v7745_v63 = vld [vmem:[#allocation9 + $0xfb4] sm:$0xf0] }
 0x2e1   :  { %v6307_v6 = vld [vmem:[#allocation9 + $0x918] sm:$0xf]  ;;  %v7140_v37 = vor.u32 %v7745_v63, %v7139_v53  ;;  %4509 = vmatpush.bf16.msrb.mxu2 %v6884_v2 }
 0x2e2   :  { %v7537_v11 = vld [vmem:[#allocation9 + $0x934] sm:$0xf0] }
 0x2e3   :  { %v6563_v14 = vld [vmem:[#allocation9 + $0xb18] sm:$0xf]  ;;  %v6308_v16 = vor.u32 %v7537_v11, %v6307_v6  ;;  %4523 = vmatpush.bf16.msrb.mxu3 %v7140_v37  ;;  %v4212_v11 = vadd.f32 %v4211_v7, %v1180_v50 }
 0x2e4   :  { %v7601_v12 = vld [vmem:[#allocation9 + $0xb34] sm:$0xf0] }
 0x2e5   :  { %v6851_v44 = vld [vmem:[#allocation9 + $0xd58] sm:$0xf]  ;;  %v6564_v13 = vor.u32 %v7601_v12, %v6563_v14  ;;  %4483 = vmatpush.bf16.msrb.mxu0 %v6308_v16 }
 0x2e6   :  { %v7673_v17 = vld [vmem:[#allocation9 + $0xd74] sm:$0xf0] }
 0x2e7   :  { %v7107_v21 = vld [vmem:[#allocation9 + $0xf58] sm:$0xf]  ;;  %v6852_v58 = vor.u32 %v7673_v17, %v6851_v44  ;;  %4497 = vmatpush.bf16.msrb.mxu1 %v6564_v13  ;;  %v7365_v13 = vld [vmem:[#allocation9 + $0x3dc] sm:$0xf] }
 0x2e8   :  { %v7737_v30 = vld [vmem:[#allocation9 + $0xf74] sm:$0xf0] }
 0x2e9   :  { %v6275_v10 = vld [vmem:[#allocation9 + $0x8d8] sm:$0xf]  ;;  %v7108_v49 = vor.u32 %v7737_v30, %v7107_v21  ;;  %4510 = vmatpush.bf16.msrb.mxu2 %v6852_v58  ;;  %v4226_v21 = vadd.f32 %v4225_v48, %v4212_v11 }
 0x2ea   :  { %v7529_v33 = vld [vmem:[#allocation9 + $0x8f4] sm:$0xf0] }
 0x2eb   :  { %v6531_v42 = vld [vmem:[#allocation9 + $0xad8] sm:$0xf]  ;;  %v6276_v1 = vor.u32 %v7529_v33, %v6275_v10  ;;  %4524 = vmatpush.bf16.msrb.mxu3 %v7108_v49  ;;  %v4237_v10 = vpop.f32.mrf.mxu2  ;;  %v5637_v33 = vld [vmem:[#allocation9 + $0x3f8] sm:$0xf0] }
 0x2ec   :  { %v7593_v39 = vld [vmem:[#allocation9 + $0xaf4] sm:$0xf0] }
 0x2ed   :  { %v6819_v34 = vld [vmem:[#allocation9 + $0xd18] sm:$0xf]  ;;  %v6532_v4 = vor.u32 %v7593_v39, %v6531_v42  ;;  %4484 = vmatpush.bf16.msrb.mxu0 %v6276_v1  ;;  %v4238_v39 = vadd.f32 %v4237_v10, %v4224_v3  ;;  %v7293_v1 = vld [vmem:[#allocation9 + $0x19c] sm:$0xf] }
 0x2ee   :  { %v7665_v46 = vld [vmem:[#allocation9 + $0xd34] sm:$0xf0] }
 0x2ef   :  { %v7075_v59 = vld [vmem:[#allocation9 + $0xf18] sm:$0xf]  ;;  %v6820_v52 = vor.u32 %v7665_v46, %v6819_v34  ;;  %4498 = vmatpush.bf16.msrb.mxu1 %v6532_v4 }
 0x2f0   :  { %v7729_v29 = vld [vmem:[#allocation9 + $0xf34] sm:$0xf0] }
 0x2f1   :  { %v6243_v47 = vld [vmem:[#allocation9 + $0x898] sm:$0xf]  ;;  %v7076_v38 = vor.u32 %v7729_v29, %v7075_v59  ;;  %4511 = vmatpush.bf16.msrb.mxu2 %v6820_v52  ;;  %v8251_v59 = vadd.f32 %v4251_v19, %v4238_v39  ;;  %v5640_v29 = vor.u32 %v7365_v13, %v5637_v33  ;;  %v5605_v52 = vld [vmem:[#allocation9 + $0x3b8] sm:$0xf0] }
 0x2f2   :  { %v7521_v45 = vld [vmem:[#allocation9 + $0x8b4] sm:$0xf0]  ;;  %v5541_v13 = vld [vmem:[#allocation9 + $0x338] sm:$0xf0] }
 0x2f3   :  { %v6499_v55 = vld [vmem:[#allocation9 + $0xa98] sm:$0xf]  ;;  %v6244_v57 = vor.u32 %v7521_v45, %v6243_v47  ;;  %4525 = vmatpush.bf16.msrb.mxu3 %v7076_v38  ;;  %v5349_v47 = vld [vmem:[#allocation9 + $0x1b8] sm:$0xf0]  ;;  %v5544_v19 = vor.u32 %v7341_v43, %v5541_v13 }
 0x2f4   :  { %v7585_v28 = vld [vmem:[#allocation9 + $0xab4] sm:$0xf0]  ;;  %v7357_v45 = vld [vmem:[#allocation9 + $0x39c] sm:$0xf] }
 0x2f5   :  { %v6787_v25 = vld [vmem:[#allocation9 + $0xcd8] sm:$0xf]  ;;  %v6500_v9 = vor.u32 %v7585_v28, %v6499_v55  ;;  %4485 = vmatpush.bf16.msrb.mxu0 %v6244_v57  ;;  %v5893_v57 = vld [vmem:[#allocation9 + $0x5f8] sm:$0xf0] }
 0x2f6   :  { %v7657_v24 = vld [vmem:[#allocation9 + $0xcf4] sm:$0xf0]  ;;  %v5829_v33 = vld [vmem:[#allocation9 + $0x578] sm:$0xf0] }
 0x2f7   :  { %v7043_v20 = vld [vmem:[#allocation9 + $0xed8] sm:$0xf]  ;;  %v6788_v53 = vor.u32 %v7657_v24, %v6787_v25  ;;  %4499 = vmatpush.bf16.msrb.mxu1 %v6500_v9  ;;  %v7429_v24 = vld [vmem:[#allocation9 + $0x5dc] sm:$0xf] }
 0x2f8   :  { %v7721_v22 = vld [vmem:[#allocation9 + $0xef4] sm:$0xf0]  ;;  %v6149_v9 = vld [vmem:[#allocation9 + $0x7f8] sm:$0xf0] }
 0x2f9   :  { %v6211_v40 = vld [vmem:[#allocation9 + $0x858] sm:$0xf]  ;;  %v7044_v15 = vor.u32 %v7721_v22, %v7043_v20  ;;  %4512 = vmatpush.bf16.msrb.mxu2 %v6788_v53  ;;  %v5352_v20 = vor.u32 %v7293_v1, %v5349_v47  ;;  %v7493_v22 = vld [vmem:[#allocation9 + $0x7dc] sm:$0xf]  ;;  %v4265_v1 = vpop.f32.mrf.mxu0 }
 0x2fa   :  { %v7513_v8 = vld [vmem:[#allocation9 + $0x874] sm:$0xf0]  ;;  %v7285_v53 = vld [vmem:[#allocation9 + $0x15c] sm:$0xf] }
 0x2fb   :  { %v6467_v63 = vld [vmem:[#allocation9 + $0xa58] sm:$0xf]  ;;  %v6212_v2 = vor.u32 %v7513_v8, %v6211_v40  ;;  %4526 = vmatpush.bf16.msrb.mxu3 %v7044_v15  ;;  %v5608_v40 = vor.u32 %v7357_v45, %v5605_v52  ;;  %v5896_v15 = vor.u32 %v7429_v24, %v5893_v57  ;;  %v6085_v39 = vld [vmem:[#allocation9 + $0x778] sm:$0xf0]  ;;  %v4266_v45 = vadd.f32 %v4265_v1, %v8251_v59  ;;  %v4279_v52 = vpop.f32.mrf.mxu1 }
 0x2fc   :  { %v7577_v35 = vld [vmem:[#allocation9 + $0xa74] sm:$0xf0]  ;;  %v5797_v47 = vld [vmem:[#allocation9 + $0x538] sm:$0xf0] }
 0x2fd   :  { %v6755_v5 = vld [vmem:[#allocation9 + $0xc98] sm:$0xf]  ;;  %v6468_v37 = vor.u32 %v7577_v35, %v6467_v63  ;;  %4486 = vmatpush.bf16.msrb.mxu0 %v6212_v2  ;;  %v5317_v63 = vld [vmem:[#allocation9 + $0x178] sm:$0xf0]  ;;  %v4239_v35 = vpop.f32.mrf.mxu2  ;;  %v6152_v2 = vor.u32 %v7493_v22, %v6149_v9  ;;  %v4280_v57 = vadd.f32 %v4279_v52, %v4266_v45  ;;  %v4670_v45 = vperm.slane %v8226_v61, 4 }
 0x2fe   :  { %v7649_v6 = vld [vmem:[#allocation9 + $0xcb4] sm:$0xf0]  ;;  %v4240_v11 = vadd.f32 %v4239_v35, %v4226_v21  ;;  %v5320_v48 = vor.u32 %v7285_v53, %v5317_v63  ;;  %v5221_v24 = vld [vmem:[#allocation9 + $0xb8] sm:$0xf0] }
 0x2ff   :  { %v7011_v14 = vld [vmem:[#allocation9 + $0xe98] sm:$0xf]  ;;  %v6756_v30 = vor.u32 %v7649_v6, %v6755_v5  ;;  %4500 = vmatpush.bf16.msrb.mxu1 %v6468_v37  ;;  %v7349_v5 = vld [vmem:[#allocation9 + $0x35c] sm:$0xf] }
 0x300   :  { %v7713_v12 = vld [vmem:[#allocation9 + $0xeb4] sm:$0xf0]  ;;  %v5573_v6 = vld [vmem:[#allocation9 + $0x378] sm:$0xf0] }
 0x301   :  { %v6179_v51 = vld [vmem:[#allocation9 + $0x818] sm:$0xf]  ;;  %v7012_v50 = vor.u32 %v7713_v12, %v7011_v14  ;;  %4513 = vmatpush.bf16.msrb.mxu2 %v6756_v30  ;;  %v7421_v14 = vld [vmem:[#allocation9 + $0x59c] sm:$0xf] }
 0x302   :  { %v7505_v44 = vld [vmem:[#allocation9 + $0x834] sm:$0xf0]  ;;  %v5861_v12 = vld [vmem:[#allocation9 + $0x5b8] sm:$0xf0] }
 0x303   :  { %v6435_v17 = vld [vmem:[#allocation9 + $0xa18] sm:$0xf]  ;;  %v6180_v49 = vor.u32 %v7505_v44, %v6179_v51  ;;  %4527 = vmatpush.bf16.msrb.mxu3 %v7012_v50  ;;  %v4253_v51 = vpop.f32.mrf.mxu3  ;;  %v7485_v37 = vld [vmem:[#allocation9 + $0x79c] sm:$0xf]  ;;  %v5864_v21 = vor.u32 %v7421_v14, %v5861_v12  ;;  %v4267_v14 = vpop.f32.mrf.mxu0 }
 0x304   :  { %v7569_v16 = vld [vmem:[#allocation9 + $0xa34] sm:$0xf0]  ;;  %v6117_v44 = vld [vmem:[#allocation9 + $0x7b8] sm:$0xf0] }
 0x305   :  { %v6723_v58 = vld [vmem:[#allocation9 + $0xc58] sm:$0xf]  ;;  %v6436_v32 = vor.u32 %v7569_v16, %v6435_v17  ;;  %4487 = vmatpush.bf16.msrb.mxu0 %v6180_v49  ;;  %v8255_v17 = vadd.f32 %v4253_v51, %v4240_v11  ;;  %v5576_v16 = vor.u32 %v7349_v5, %v5573_v6  ;;  %v7277_v30 = vld [vmem:[#allocation9 + $0x11c] sm:$0xf]  ;;  %v6120_v10 = vor.u32 %v7485_v37, %v6117_v44 }
 0x306   :  { %v7641_v42 = vld [vmem:[#allocation9 + $0xc74] sm:$0xf0]  ;;  %v7413_v50 = vld [vmem:[#allocation9 + $0x55c] sm:$0xf] }
 0x307   :  { %v6979_v34 = vld [vmem:[#allocation9 + $0xe58] sm:$0xf]  ;;  %v6724_v4 = vor.u32 %v7641_v42, %v6723_v58  ;;  %4501 = vmatpush.bf16.msrb.mxu1 %v6436_v32  ;;  %v5288_v58 = vor.u32 %v7277_v30, %v5285_v18  ;;  %v7477_v42 = vld [vmem:[#allocation9 + $0x75c] sm:$0xf]  ;;  %v4268_v37 = vadd.f32 %v4267_v14, %v8255_v17 }
 0x308   :  { %v7705_v46 = vld [vmem:[#allocation9 + $0xe74] sm:$0xf0]  ;;  %4488 = vmatmul.bf16.vlgmr.msrb.gmra.mxu0 %v8072_v23  ;;  %v7269_v49 = vld [vmem:[#allocation9 + $0xdc] sm:$0xf] }
 0x309   :  { %v6980_v55 = vor.u32 %v7705_v46, %v6979_v34  ;;  %v6691_v3 = vld [vmem:[#allocation9 + $0xc18] sm:$0xf]  ;;  %4536 = vmatpush.bf16.msra.mxu0 %v5384_v56  ;;  %4514 = vmatpush.bf16.msrb.mxu2 %v6724_v4  ;;  %v5253_v34 = vld [vmem:[#allocation9 + $0xf8] sm:$0xf0]  ;;  %v5832_v46 = vor.u32 %v7413_v50, %v5829_v33 }
 0x30a   :  { %v7633_v28 = vld [vmem:[#allocation9 + $0xc34] sm:$0xf0]  ;;  %4502 = vmatmul.bf16.vlgmr.msrb.gmra.mxu1 %v8074_v27  ;;  %v7333_v32 = vld [vmem:[#allocation9 + $0x2dc] sm:$0xf] }
 0x30b   :  { %v6947_v38 = vld [vmem:[#allocation9 + $0xe18] sm:$0xf]  ;;  %4550 = vmatpush.bf16.msra.mxu1 %v5640_v29  ;;  %v6692_v8 = vor.u32 %v7633_v28, %v6691_v3  ;;  %4528 = vmatpush.bf16.msrb.mxu3 %v6980_v55  ;;  %v5509_v56 = vld [vmem:[#allocation9 + $0x2f8] sm:$0xf0]  ;;  %v6088_v29 = vor.u32 %v7477_v42, %v6085_v39  ;;  %v5256_v55 = vor.u32 %v7269_v49, %v5253_v34  ;;  %v4293_v49 = vpop.f32.mrf.mxu2  ;;  %v4307_v1 = vpop.f32.mrf.mxu3 }
 0x30c   :  { %v7697_v25 = vld [vmem:[#allocation9 + $0xe34] sm:$0xf0]  ;;  %v7405_v4 = vld [vmem:[#allocation9 + $0x51c] sm:$0xf] }
 0x30d   :  { %v6948_v7 = vor.u32 %v7697_v25, %v6947_v38  ;;  %4537 = vmatpush.bf16.msra.mxu0 %v5352_v20  ;;  %4515 = vmatpush.bf16.msrb.mxu2 %v6692_v8  ;;  %v7469_v3 = vld [vmem:[#allocation9 + $0x71c] sm:$0xf]  ;;  %v5512_v38 = vor.u32 %v7333_v32, %v5509_v56  ;;  %v5800_v20 = vor.u32 %v7405_v4, %v5797_v47 }
 0x30e   :  { %v6053_v28 = vld [vmem:[#allocation9 + $0x738] sm:$0xf0]  ;;  %v4294_v56 = vadd.f32 %v4293_v49, %v4280_v57 }
 0x30f   :  { %4551 = vmatpush.bf16.msra.mxu1 %v5608_v40  ;;  %4529 = vmatpush.bf16.msrb.mxu3 %v6948_v7  ;;  %v7261_v25 = vld [vmem:[#allocation9 + $0x9c] sm:$0xf]  ;;  %v6056_v40 = vor.u32 %v7469_v3, %v6053_v28 }
 0x310   :  { %4516 = vmatmul.bf16.vlgmr.msrb.gmra.mxu2 %v8078_v62  ;;  %v7325_v22 = vld [vmem:[#allocation9 + $0x29c] sm:$0xf]  ;;  %v5224_v59 = vor.u32 %v7261_v25, %v5221_v24 }
 0x311   :  { %4564 = vmatpush.bf16.msra.mxu2 %v5896_v15  ;;  %4538 = vmatpush.bf16.msra.mxu0 %v5320_v48  ;;  %v5477_v9 = vld [vmem:[#allocation9 + $0x2b8] sm:$0xf0] }
 0x312   :  { %4530 = vmatmul.bf16.vlgmr.msrb.gmra.mxu3 %v8080_v0  ;;  %v7397_v8 = vld [vmem:[#allocation9 + $0x4dc] sm:$0xf]  ;;  %v5480_v7 = vor.u32 %v7325_v22, %v5477_v9 }
 0x313   :  { %4578 = vmatpush.bf16.msra.mxu3 %v6152_v2  ;;  %4552 = vmatpush.bf16.msra.mxu1 %v5576_v16  ;;  %v5765_v53 = vld [vmem:[#allocation9 + $0x4f8] sm:$0xf0] }
 0x314   :  { %v7461_v63 = vld [vmem:[#allocation9 + $0x6dc] sm:$0xf]  ;;  %v5768_v6 = vor.u32 %v7397_v8, %v5765_v53 }
 0x315   :  { %4565 = vmatpush.bf16.msra.mxu2 %v5864_v21  ;;  %4539 = vmatpush.bf16.msra.mxu0 %v5288_v58  ;;  %v6021_v35 = vld [vmem:[#allocation9 + $0x6f8] sm:$0xf0]  ;;  %v4281_v21 = vpop.f32.mrf.mxu1 }
 0x316   :  { %v7253_v15 = vld [vmem:[#allocation9 + $0x5c] sm:$0xf]  ;;  %v6024_v12 = vor.u32 %v7461_v63, %v6021_v35  ;;  %v4282_v33 = vadd.f32 %v4281_v21, %v4268_v37 }
 0x317   :  { %4579 = vmatpush.bf16.msra.mxu3 %v6120_v10  ;;  %4553 = vmatpush.bf16.msra.mxu1 %v5544_v19  ;;  %v5189_v5 = vld [vmem:[#allocation9 + $0x78] sm:$0xf0] }
 0x318   :  { %v7317_v11 = vld [vmem:[#allocation9 + $0x25c] sm:$0xf]  ;;  %v5192_v44 = vor.u32 %v7253_v15, %v5189_v5 }
 0x319   :  { %4566 = vmatpush.bf16.msra.mxu2 %v5832_v46  ;;  %4540 = vmatpush.bf16.msra.mxu0 %v5256_v55  ;;  %v5445_v2 = vld [vmem:[#allocation9 + $0x278] sm:$0xf0] }
 0x31a   :  { %v7389_v51 = vld [vmem:[#allocation9 + $0x49c] sm:$0xf]  ;;  %v5448_v43 = vor.u32 %v7317_v11, %v5445_v2 }
 0x31b   :  { %4580 = vmatpush.bf16.msra.mxu3 %v6088_v29  ;;  %4554 = vmatpush.bf16.msra.mxu1 %v5512_v38  ;;  %v5733_v48 = vld [vmem:[#allocation9 + $0x4b8] sm:$0xf0]  ;;  %v4308_v38 = vadd.f32 %v4307_v1, %v4294_v56  ;;  %v8270_v56 = vld [vmem:[#allocation11] sm:$0xff] }
 0x31c   :  { %v7453_v16 = vld [vmem:[#allocation9 + $0x69c] sm:$0xf]  ;;  %v5736_v58 = vor.u32 %v7389_v51, %v5733_v48  ;;  %v4295_v51 = vpop.f32.mrf.mxu2  ;;  %v1181_v1 = vperm.slane %v8270_v56, 5 }
 0x31d   :  { %4567 = vmatpush.bf16.msra.mxu2 %v5800_v20  ;;  %4541 = vmatpush.bf16.msra.mxu0 %v5224_v59  ;;  %v5989_v30 = vld [vmem:[#allocation9 + $0x6b8] sm:$0xf0]  ;;  %v4652_v59 = vmax.f32 %v4308_v38, 0.0 }
 0x31e   :  { %v7245_v18 = vld [vmem:[#allocation9 + $0x1c] sm:$0xf]  ;;  %v5992_v17 = vor.u32 %v7453_v16, %v5989_v30 }
 0x31f   :  { %4581 = vmatpush.bf16.msra.mxu3 %v6056_v40  ;;  %4555 = vmatpush.bf16.msra.mxu1 %v5480_v7  ;;  %v5157_v13 = vld [vmem:[#allocation9 + $0x38] sm:$0xf0] }
 0x320   :  { %v7309_v10 = vld [vmem:[#allocation9 + $0x21c] sm:$0xf]  ;;  %v5160_v29 = vor.u32 %v7245_v18, %v5157_v13  ;;  %v4296_v18 = vadd.f32 %v4295_v51, %v4282_v33 }
 0x321   :  { %v5413_v50 = vld [vmem:[#allocation9 + $0x238] sm:$0xf0]  ;;  %4568 = vmatpush.bf16.msra.mxu2 %v5768_v6  ;;  %4542 = vmatpush.bf16.msra.mxu0 %v5192_v44  ;;  %v4686_v6 = vmul.f32 %v4670_v45, %v4652_v59 }
 0x322   :  { %v7557_v42 = vld [vmem:[#allocation9 + $0x9dc] sm:$0xf]  ;;  %v5416_v52 = vor.u32 %v7309_v10, %v5413_v50  ;;  %v4309_v10 = vpop.f32.mrf.mxu3 }
 0x323   :  { %v6405_v39 = vld [vmem:[#allocation9 + $0x9f8] sm:$0xf0]  ;;  %4582 = vmatpush.bf16.msra.mxu3 %v6024_v12  ;;  %4556 = vmatpush.bf16.msra.mxu1 %v5448_v43  ;;  %v8266_v30 = vadd.f32 %v8236_v41, %v4686_v6 }
 0x324   :  { %v7621_v19 = vld [vmem:[#allocation9 + $0xbdc] sm:$0xf]  ;;  %v6408_v55 = vor.u32 %v7557_v42, %v6405_v39  ;;  %v4310_v39 = vadd.f32 %v4309_v10, %v4296_v18 }
 0x325   :  { %v6661_v34 = vld [vmem:[#allocation9 + $0xbf8] sm:$0xf0]  ;;  %4569 = vmatpush.bf16.msra.mxu2 %v5736_v58  ;;  %4543 = vmatpush.bf16.msra.mxu0 %v5160_v29 }
 0x326   :  { %v7381_v46 = vld [vmem:[#allocation9 + $0x45c] sm:$0xf]  ;;  %v6664_v25 = vor.u32 %v7621_v19, %v6661_v34 }
 0x327   :  { %v5701_v32 = vld [vmem:[#allocation9 + $0x478] sm:$0xf0]  ;;  %4583 = vmatpush.bf16.msra.mxu3 %v5992_v17  ;;  %4557 = vmatpush.bf16.msra.mxu1 %v5416_v52 }
 0x328   :  { %v7445_v4 = vld [vmem:[#allocation9 + $0x65c] sm:$0xf]  ;;  %v5704_v24 = vor.u32 %v7381_v46, %v5701_v32  ;;  %4544 = vmatmul.bf16.vlgmr.msra.gmra.mxu0 %v8056_v26 }
 0x329   :  { %v5957_v47 = vld [vmem:[#allocation9 + $0x678] sm:$0xf0]  ;;  %4592 = vmatpush.bf16.msrb.mxu0 %v6408_v55 }
 0x32a   :  { %v7549_v3 = vld [vmem:[#allocation9 + $0x99c] sm:$0xf]  ;;  %v5960_v57 = vor.u32 %v7445_v4, %v5957_v47  ;;  %4570 = vmatpush.bf16.msra.mxu2 %v5704_v24  ;;  %4558 = vmatmul.bf16.vlgmr.msra.gmra.mxu1 %v8058_v31  ;;  %v4660_v31 = vmax.f32 %v4310_v39, 0.0 }
 0x32b   :  { %v6373_v28 = vld [vmem:[#allocation9 + $0x9b8] sm:$0xf0]  ;;  %4606 = vmatpush.bf16.msrb.mxu1 %v6664_v25 }
 0x32c   :  { %v7613_v20 = vld [vmem:[#allocation9 + $0xb9c] sm:$0xf]  ;;  %v6376_v7 = vor.u32 %v7549_v3, %v6373_v28  ;;  %4584 = vmatpush.bf16.msra.mxu3 %v5960_v57  ;;  %v4694_v52 = vmul.f32 %v4670_v45, %v4660_v31  ;;  %v4335_v45 = vpop.f32.mrf.mxu1 }
 0x32d   :  { %v6629_v22 = vld [vmem:[#allocation9 + $0xbb8] sm:$0xf0] }
 0x32e   :  { %v7373_v9 = vld [vmem:[#allocation9 + $0x41c] sm:$0xf]  ;;  %v6632_v11 = vor.u32 %v7613_v20, %v6629_v22  ;;  %4593 = vmatpush.bf16.msrb.mxu0 %v6376_v7  ;;  %v8277_v24 = vadd.f32 %v8249_v36, %v4694_v52  ;;  %v4321_v20 = vpop.f32.mrf.mxu0  ;;  %v4363_v52 = vpop.f32.mrf.mxu3 }
 0x32f   :  { %v5669_v40 = vld [vmem:[#allocation9 + $0x438] sm:$0xf0] }
 0x330   :  { %v7437_v8 = vld [vmem:[#allocation9 + $0x61c] sm:$0xf]  ;;  %v5672_v2 = vor.u32 %v7373_v9, %v5669_v40  ;;  %4607 = vmatpush.bf16.msrb.mxu1 %v6632_v11  ;;  %v4322_v40 = vadd.f32 %v4321_v20, %v1181_v1 }
 0x331   :  { %v5925_v53 = vld [vmem:[#allocation9 + $0x638] sm:$0xf0] }
 0x332   :  { %v7685_v63 = vld [vmem:[#allocation9 + $0xddc] sm:$0xf]  ;;  %v5928_v48 = vor.u32 %v7437_v8, %v5925_v53  ;;  %4571 = vmatpush.bf16.msra.mxu2 %v5672_v2  ;;  %v4336_v7 = vadd.f32 %v4335_v45, %v4322_v40 }
 0x333   :  { %v6917_v35 = vld [vmem:[#allocation9 + $0xdf8] sm:$0xf0] }
 0x334   :  { %v7749_v15 = vld [vmem:[#allocation9 + $0xfdc] sm:$0xf]  ;;  %v6920_v37 = vor.u32 %v7685_v63, %v6917_v35  ;;  %4585 = vmatpush.bf16.msra.mxu3 %v5928_v48 }
 0x335   :  { %v7173_v5 = vld [vmem:[#allocation9 + $0xff8] sm:$0xf0]  ;;  %4572 = vmatmul.bf16.vlgmr.msra.gmra.mxu2 %v8062_v54 }
 0x336   :  { %v7541_v14 = vld [vmem:[#allocation9 + $0x95c] sm:$0xf]  ;;  %v7176_v21 = vor.u32 %v7749_v15, %v7173_v5  ;;  %4620 = vmatpush.bf16.msrb.mxu2 %v6920_v37 }
 0x337   :  { %v6341_v12 = vld [vmem:[#allocation9 + $0x978] sm:$0xf0]  ;;  %4586 = vmatmul.bf16.vlgmr.msra.gmra.mxu3 %v8064_v60 }
 0x338   :  { %v7605_v44 = vld [vmem:[#allocation9 + $0xb5c] sm:$0xf]  ;;  %v6344_v50 = vor.u32 %v7541_v14, %v6341_v12  ;;  %4634 = vmatpush.bf16.msrb.mxu3 %v7176_v21 }
 0x339   :  { %v6597_v16 = vld [vmem:[#allocation9 + $0xb78] sm:$0xf0] }
 0x33a   :  { %v7677_v43 = vld [vmem:[#allocation9 + $0xd9c] sm:$0xf]  ;;  %v6600_v26 = vor.u32 %v7605_v44, %v6597_v16  ;;  %4594 = vmatpush.bf16.msrb.mxu0 %v6344_v50 }
 0x33b   :  { %v6885_v13 = vld [vmem:[#allocation9 + $0xdb8] sm:$0xf0] }
 0x33c   :  { %v7741_v58 = vld [vmem:[#allocation9 + $0xf9c] sm:$0xf]  ;;  %v6888_v41 = vor.u32 %v7677_v43, %v6885_v13  ;;  %4608 = vmatpush.bf16.msrb.mxu1 %v6600_v26  ;;  %v4323_v43 = vpop.f32.mrf.mxu0 }
 0x33d   :  { %v7141_v42 = vld [vmem:[#allocation9 + $0xfb8] sm:$0xf0] }
 0x33e   :  { %v7533_v19 = vld [vmem:[#allocation9 + $0x91c] sm:$0xf]  ;;  %v7144_v34 = vor.u32 %v7741_v58, %v7141_v42  ;;  %4621 = vmatpush.bf16.msrb.mxu2 %v6888_v41  ;;  %v4324_v58 = vadd.f32 %v4323_v43, %v1181_v1 }
 0x33f   :  { %v6309_v49 = vld [vmem:[#allocation9 + $0x938] sm:$0xf0] }
 0x340   :  { %v7597_v33 = vld [vmem:[#allocation9 + $0xb1c] sm:$0xf]  ;;  %v6312_v29 = vor.u32 %v7533_v19, %v6309_v49  ;;  %4635 = vmatpush.bf16.msrb.mxu3 %v7144_v34  ;;  %v4337_v19 = vpop.f32.mrf.mxu1 }
 0x341   :  { %v6565_v17 = vld [vmem:[#allocation9 + $0xb38] sm:$0xf0] }
 0x342   :  { %v7669_v46 = vld [vmem:[#allocation9 + $0xd5c] sm:$0xf]  ;;  %v6568_v55 = vor.u32 %v7597_v33, %v6565_v17  ;;  %4595 = vmatpush.bf16.msrb.mxu0 %v6312_v29  ;;  %v4338_v17 = vadd.f32 %v4337_v19, %v4324_v58 }
 0x343   :  { %v6853_v32 = vld [vmem:[#allocation9 + $0xd78] sm:$0xf0] }
 0x344   :  { %v7733_v4 = vld [vmem:[#allocation9 + $0xf5c] sm:$0xf]  ;;  %v6856_v38 = vor.u32 %v7669_v46, %v6853_v32  ;;  %4609 = vmatpush.bf16.msrb.mxu1 %v6568_v55  ;;  %v4349_v32 = vpop.f32.mrf.mxu2 }
 0x345   :  { %v7109_v47 = vld [vmem:[#allocation9 + $0xf78] sm:$0xf0]  ;;  %v4350_v1 = vadd.f32 %v4349_v32, %v4336_v7 }
 0x346   :  { %v7525_v3 = vld [vmem:[#allocation9 + $0x8dc] sm:$0xf]  ;;  %v7112_v22 = vor.u32 %v7733_v4, %v7109_v47  ;;  %4622 = vmatpush.bf16.msrb.mxu2 %v6856_v38 }
 0x347   :  { %v6277_v28 = vld [vmem:[#allocation9 + $0x8f8] sm:$0xf0] }
 0x348   :  { %v7589_v54 = vld [vmem:[#allocation9 + $0xadc] sm:$0xf]  ;;  %v6280_v60 = vor.u32 %v7525_v3, %v6277_v28  ;;  %4636 = vmatpush.bf16.msrb.mxu3 %v7112_v22 }
 0x349   :  { %v6533_v25 = vld [vmem:[#allocation9 + $0xaf8] sm:$0xf0] }
 0x34a   :  { %v7661_v9 = vld [vmem:[#allocation9 + $0xd1c] sm:$0xf]  ;;  %v6536_v59 = vor.u32 %v7589_v54, %v6533_v25  ;;  %4596 = vmatpush.bf16.msrb.mxu0 %v6280_v60  ;;  %v4364_v54 = vadd.f32 %v4363_v52, %v4350_v1  ;;  %v1183_v52 = vperm.slane %v8270_v56, 7 }
 0x34b   :  { %v6821_v57 = vld [vmem:[#allocation9 + $0xd38] sm:$0xf0] }
 0x34c   :  { %v7725_v8 = vld [vmem:[#allocation9 + $0xf1c] sm:$0xf]  ;;  %v6824_v15 = vor.u32 %v7661_v9, %v6821_v57  ;;  %4610 = vmatpush.bf16.msrb.mxu1 %v6536_v59  ;;  %v4351_v60 = vpop.f32.mrf.mxu2  ;;  %v4365_v59 = vpop.f32.mrf.mxu3 }
 0x34d   :  { %v7077_v53 = vld [vmem:[#allocation9 + $0xf38] sm:$0xf0] }
 0x34e   :  { %v7517_v63 = vld [vmem:[#allocation9 + $0x89c] sm:$0xf]  ;;  %v7080_v6 = vor.u32 %v7725_v8, %v7077_v53  ;;  %4623 = vmatpush.bf16.msrb.mxu2 %v6824_v15  ;;  %v4352_v53 = vadd.f32 %v4351_v60, %v4338_v17  ;;  %v4391_v15 = vpop.f32.mrf.mxu1 }
 0x34f   :  { %v6245_v35 = vld [vmem:[#allocation9 + $0x8b8] sm:$0xf0] }
 0x350   :  { %v7581_v36 = vld [vmem:[#allocation9 + $0xa9c] sm:$0xf]  ;;  %v6248_v14 = vor.u32 %v7517_v63, %v6245_v35  ;;  %4637 = vmatpush.bf16.msrb.mxu3 %v7080_v6  ;;  %v4366_v63 = vadd.f32 %v4365_v59, %v4352_v53  ;;  %v4377_v35 = vpop.f32.mrf.mxu0 }
 0x351   :  { %v6501_v5 = vld [vmem:[#allocation9 + $0xab8] sm:$0xf0]  ;;  %v4378_v7 = vadd.f32 %v4377_v35, %v4364_v54 }
 0x352   :  { %v7653_v11 = vld [vmem:[#allocation9 + $0xcdc] sm:$0xf]  ;;  %v6504_v48 = vor.u32 %v7581_v36, %v6501_v5  ;;  %4597 = vmatpush.bf16.msrb.mxu0 %v6248_v14 }
 0x353   :  { %v6789_v2 = vld [vmem:[#allocation9 + $0xcf8] sm:$0xf0]  ;;  %v4392_v36 = vadd.f32 %v4391_v15, %v4378_v7 }
 0x354   :  { %v7717_v12 = vld [vmem:[#allocation9 + $0xedc] sm:$0xf]  ;;  %v6792_v16 = vor.u32 %v7653_v11, %v6789_v2  ;;  %4611 = vmatpush.bf16.msrb.mxu1 %v6504_v48  ;;  %v4405_v6 = vpop.f32.mrf.mxu2 }
 0x355   :  { %v7045_v51 = vld [vmem:[#allocation9 + $0xef8] sm:$0xf0]  ;;  %v4406_v11 = vadd.f32 %v4405_v6, %v4392_v36 }
 0x356   :  { %v7509_v37 = vld [vmem:[#allocation9 + $0x85c] sm:$0xf]  ;;  %v7048_v13 = vor.u32 %v7717_v12, %v7045_v51  ;;  %4624 = vmatpush.bf16.msrb.mxu2 %v6792_v16  ;;  %v4393_v51 = vpop.f32.mrf.mxu1 }
 0x357   :  { %v6213_v44 = vld [vmem:[#allocation9 + $0x878] sm:$0xf0] }
 0x358   :  { %v7573_v18 = vld [vmem:[#allocation9 + $0xa5c] sm:$0xf]  ;;  %v6216_v42 = vor.u32 %v7509_v37, %v6213_v44  ;;  %4638 = vmatpush.bf16.msrb.mxu3 %v7048_v13  ;;  %v4379_v5 = vpop.f32.mrf.mxu0 }
 0x359   :  { %v6469_v21 = vld [vmem:[#allocation9 + $0xa78] sm:$0xf0]  ;;  %v4380_v2 = vadd.f32 %v4379_v5, %v4366_v63 }
 0x35a   :  { %v7645_v10 = vld [vmem:[#allocation9 + $0xc9c] sm:$0xf]  ;;  %v6472_v49 = vor.u32 %v7573_v18, %v6469_v21  ;;  %4598 = vmatpush.bf16.msrb.mxu0 %v6216_v42 }
 0x35b   :  { %v6757_v50 = vld [vmem:[#allocation9 + $0xcb8] sm:$0xf0]  ;;  %v4394_v48 = vadd.f32 %v4393_v51, %v4380_v2 }
 0x35c   :  { %v7709_v39 = vld [vmem:[#allocation9 + $0xe9c] sm:$0xf]  ;;  %v6760_v31 = vor.u32 %v7645_v10, %v6757_v50  ;;  %4612 = vmatpush.bf16.msrb.mxu1 %v6472_v49  ;;  %v4407_v44 = vpop.f32.mrf.mxu2 }
 0x35d   :  { %v7013_v26 = vld [vmem:[#allocation9 + $0xeb8] sm:$0xf0] }
 0x35e   :  { %v7501_v41 = vld [vmem:[#allocation9 + $0x81c] sm:$0xf]  ;;  %v7016_v29 = vor.u32 %v7709_v39, %v7013_v26  ;;  %4625 = vmatpush.bf16.msrb.mxu2 %v6760_v31  ;;  %v4447_v50 = vpop.f32.mrf.mxu1  ;;  %v1182_v31 = vperm.slane %v8270_v56, 6 }
 0x35f   :  { %v6181_v33 = vld [vmem:[#allocation9 + $0x838] sm:$0xf0] }
 0x360   :  { %v7565_v34 = vld [vmem:[#allocation9 + $0xa1c] sm:$0xf]  ;;  %v6184_v55 = vor.u32 %v7501_v41, %v6181_v33  ;;  %4639 = vmatpush.bf16.msrb.mxu3 %v7016_v29  ;;  %v4433_v10 = vpop.f32.mrf.mxu0 }
 0x361   :  { %v6437_v46 = vld [vmem:[#allocation9 + $0xa38] sm:$0xf0] }
 0x362   :  { %v7637_v4 = vld [vmem:[#allocation9 + $0xc5c] sm:$0xf]  ;;  %v6440_v38 = vor.u32 %v7565_v34, %v6437_v46  ;;  %4599 = vmatpush.bf16.msrb.mxu0 %v6184_v55  ;;  %v4434_v46 = vadd.f32 %v4433_v10, %v1182_v31 }
 0x363   :  { %v6725_v47 = vld [vmem:[#allocation9 + $0xc78] sm:$0xf0] }
 0x364   :  { %v7701_v3 = vld [vmem:[#allocation9 + $0xe5c] sm:$0xf]  ;;  %v6728_v25 = vor.u32 %v7637_v4, %v6725_v47  ;;  %4613 = vmatpush.bf16.msrb.mxu1 %v6440_v38  ;;  %v4448_v4 = vadd.f32 %v4447_v50, %v4434_v46 }
 0x365   :  { %v6981_v28 = vld [vmem:[#allocation9 + $0xe78] sm:$0xf0]  ;;  %4600 = vmatmul.bf16.vlgmr.msrb.gmra.mxu0 %v8072_v23  ;;  %v4419_v23 = vpop.f32.mrf.mxu3 }
 0x366   :  { %v6984_v20 = vor.u32 %v7701_v3, %v6981_v28  ;;  %v7629_v22 = vld [vmem:[#allocation9 + $0xc1c] sm:$0xf]  ;;  %4626 = vmatpush.bf16.msrb.mxu2 %v6728_v25  ;;  %v4420_v14 = vadd.f32 %v4419_v23, %v4406_v11  ;;  %v4449_v39 = vpop.f32.mrf.mxu1 }
 0x367   :  { %v6693_v9 = vld [vmem:[#allocation9 + $0xc38] sm:$0xf0]  ;;  %4614 = vmatmul.bf16.vlgmr.msrb.gmra.mxu1 %v8074_v27  ;;  %v4671_v27 = vperm.slane %v8226_v61, 5  ;;  %v4461_v61 = vpop.f32.mrf.mxu2 }
 0x368   :  { %v7693_v57 = vld [vmem:[#allocation9 + $0xe1c] sm:$0xf]  ;;  %v6696_v45 = vor.u32 %v7629_v22, %v6693_v9  ;;  %4640 = vmatpush.bf16.msrb.mxu3 %v6984_v20  ;;  %v4653_v12 = vmax.f32 %v4420_v14, 0.0  ;;  %v4435_v58 = vpop.f32.mrf.mxu0  ;;  %v4462_v47 = vadd.f32 %v4461_v61, %v4448_v4  ;;  %v4717_v4 = vstv %s8310_s6 }
 0x369   :  { %v6949_v40 = vld [vmem:[#allocation9 + $0xe38] sm:$0xf0]  ;;  %v4436_v55 = vadd.f32 %v4435_v58, %v1182_v31 }
 0x36a   :  { %v6952_v8 = vor.u32 %v7693_v57, %v6949_v40  ;;  %4627 = vmatpush.bf16.msrb.mxu2 %v6696_v45  ;;  %v4687_v37 = vmul.f32 %v4671_v27, %v4653_v12 }
 0x36b   :  { %v4450_v22 = vadd.f32 %v4449_v39, %v4436_v55 }
 0x36c   :  { %4641 = vmatpush.bf16.msrb.mxu3 %v6952_v8 }
 0x36d   :  { %4628 = vmatmul.bf16.vlgmr.msrb.gmra.mxu2 %v8078_v62  ;;  %v4408_v62 = vadd.f32 %v4407_v44, %v4394_v48  ;;  %v4421_v16 = vpop.f32.mrf.mxu3 }
 0x36f   :  { %4642 = vmatmul.bf16.vlgmr.msrb.gmra.mxu3 %v8080_v0  ;;  %v8285_v0 = vadd.f32 %v8266_v30, %v4687_v37  ;;  %v4422_v18 = vadd.f32 %v4421_v16, %v4408_v62  ;;  %v4463_v19 = vpop.f32.mrf.mxu2 }
 0x370   :  { %v4464_v9 = vadd.f32 %v4463_v19, %v4450_v22 }
 0x371   :  { %v4661_v21 = vmax.f32 %v4422_v18, 0.0 }
 0x373   :  { %v4695_v43 = vmul.f32 %v4671_v27, %v4661_v21  ;;  %v7791_v27 = vld [vmem:[#allocation12] sm:$0xff] }
 0x374   :  { %v4672_v12 = vperm.slane %v7791_v27, 6  ;;  %v4673_v58 = vperm.slane %v7791_v27, 7 }
 0x375   :  { %v8288_v13 = vadd.f32 %v8277_v24, %v4695_v43  ;;  %v4475_v42 = vpop.f32.mrf.mxu3 }
 0x376   :  { %v4476_v3 = vadd.f32 %v4475_v42, %v4462_v47 }
 0x37d   :  { %v4477_v49 = vpop.f32.mrf.mxu3 }
 0x37e   :  { %v4478_v59 = vadd.f32 %v4477_v49, %v4464_v9 }
 0x385   :  { %v4489_v26 = vpop.f32.mrf.mxu0 }
 0x386   :  { %v4490_v20 = vadd.f32 %v4489_v26, %v4476_v3 }
 0x387   :  { %v4503_v41 = vpop.f32.mrf.mxu1 }
 0x388   :  { %v4504_v40 = vadd.f32 %v4503_v41, %v4490_v20 }
 0x38d   :  { %v4491_v33 = vpop.f32.mrf.mxu0 }
 0x38e   :  { %v4492_v7 = vadd.f32 %v4491_v33, %v4478_v59 }
 0x38f   :  { %v4505_v34 = vpop.f32.mrf.mxu1 }
 0x390   :  { %v4506_v23 = vadd.f32 %v4505_v34, %v4492_v7 }
 0x393   :  { %v4517_v30 = vpop.f32.mrf.mxu2 }
 0x394   :  { %v4518_v8 = vadd.f32 %v4517_v30, %v4504_v40 }
 0x395   :  { %v4531_v17 = vpop.f32.mrf.mxu3 }
 0x396   :  { %v4532_v36 = vadd.f32 %v4531_v17, %v4518_v8 }
 0x398   :  { %v4654_v14 = vmax.f32 %v4532_v36, 0.0 }
 0x39a   :  { %v4688_v21 = vmul.f32 %v4672_v12, %v4654_v14 }
 0x39b   :  { %v4519_v24 = vpop.f32.mrf.mxu2 }
 0x39c   :  { %v4520_v51 = vadd.f32 %v4519_v24, %v4506_v23  ;;  %v4703_v49 = vadd.f32 %v8285_v0, %v4688_v21 }
 0x39d   :  { %v4533_v29 = vpop.f32.mrf.mxu3 }
 0x39e   :  { %v4534_v43 = vadd.f32 %v4533_v29, %v4520_v51 }
 0x3a0   :  { %v4662_v39 = vmax.f32 %v4534_v43, 0.0 }
 0x3a2   :  { %v4696_v31 = vmul.f32 %v4672_v12, %v4662_v39 }
 0x3a4   :  { %v4712_v24 = vadd.f32 %v8288_v13, %v4696_v31 }
 0x3a5   :  { %v4545_v32 = vpop.f32.mrf.mxu0 }
 0x3a6   :  { %v4546_v54 = vadd.f32 %v4545_v32, %v1183_v52 }
 0x3a7   :  { %v4559_v1 = vpop.f32.mrf.mxu1 }
 0x3a8   :  { %v4560_v57 = vadd.f32 %v4559_v1, %v4546_v54 }
 0x3ad   :  { %v4547_v28 = vpop.f32.mrf.mxu0 }
 0x3ae   :  { %v4548_v63 = vadd.f32 %v4547_v28, %v1183_v52 }
 0x3af   :  { %v4561_v45 = vpop.f32.mrf.mxu1 }
 0x3b0   :  { %v4562_v5 = vadd.f32 %v4561_v45, %v4548_v63 }
 0x3b8   :  { %v4573_v38 = vpop.f32.mrf.mxu2 }
 0x3b9   :  { %v4574_v60 = vadd.f32 %v4573_v38, %v4560_v57 }
 0x3ba   :  { %v4587_v25 = vpop.f32.mrf.mxu3 }
 0x3bb   :  { %v4588_v56 = vadd.f32 %v4587_v25, %v4574_v60 }
 0x3c0   :  { %v4575_v35 = vpop.f32.mrf.mxu2 }
 0x3c1   :  { %v4576_v2 = vadd.f32 %v4575_v35, %v4562_v5 }
 0x3c2   :  { %v4589_v15 = vpop.f32.mrf.mxu3 }
 0x3c3   :  { %v4590_v62 = vadd.f32 %v4589_v15, %v4576_v2 }
 0x3e2   :  { %v4601_v53 = vpop.f32.mrf.mxu0 }
 0x3e3   :  { %v4602_v6 = vadd.f32 %v4601_v53, %v4588_v56 }
 0x3e4   :  { %v4615_v11 = vpop.f32.mrf.mxu1 }
 0x3e5   :  { %v4616_v48 = vadd.f32 %v4615_v11, %v4602_v6 }
 0x3ea   :  { %v4603_v37 = vpop.f32.mrf.mxu0 }
 0x3eb   :  { %v4604_v10 = vadd.f32 %v4603_v37, %v4590_v62 }
 0x3ec   :  { %v4617_v42 = vpop.f32.mrf.mxu1 }
 0x3ed   :  { %v4618_v26 = vadd.f32 %v4617_v42, %v4604_v10 }
 0x3f0   :  { %v4629_v44 = vpop.f32.mrf.mxu2 }
 0x3f1   :  { %v4630_v16 = vadd.f32 %v4629_v44, %v4616_v48 }
 0x3f2   :  { %v4643_v18 = vpop.f32.mrf.mxu3 }
 0x3f3   :  { %v4644_v50 = vadd.f32 %v4643_v18, %v4630_v16  ;;  %v7980_v18 = vmov 8.0  }
 0x3f5   :  { %v4655_v61 = vmax.f32 %v4644_v50, 0.0 }
 0x3f7   :  { %v4689_v19 = vmul.f32 %v4673_v58, %v4655_v61 }
 0x3f8   :  { %v4631_v41 = vpop.f32.mrf.mxu2 }
 0x3f9   :  { %v4632_v33 = vadd.f32 %v4631_v41, %v4618_v26  ;;  %v4704_v30 = vadd.f32 %v4703_v49, %v4689_v19 }
 0x3fa   :  { %v4645_v17 = vpop.f32.mrf.mxu3 }
 0x3fb   :  { %v4646_v34 = vadd.f32 %v4645_v17, %v4632_v33  ;;  %4705 = vadd.xlane.f32.xlu0 %v4704_v30 }
 0x3fd   :  { %v4663_v46 = vmax.f32 %v4646_v34, 0.0 }
 0x3ff   :  { %v4697_v32 = vmul.f32 %v4673_v58, %v4663_v46 }
 0x401   :  { %v4713_v29 = vadd.f32 %v4712_v24, %v4697_v32 }
 0x403   :  { %4714 = vadd.xlane.f32.xlu0 %v4713_v29 }
 0x46e   :  { %v4706_v47 = vpop.xlane.xlu0 %4705 }
 0x46f   :  { %v4718_v0 = vadd.f32 %v4717_v4, %v4706_v47 }
 0x471   :  { %v4720_v1 = vsub.f32 0.0, %v4718_v0  ;;  %v4798_v52 = vsel %vm4739_vm0, %v4718_v0, 0.0 }
 0x472   :  { %4799 = vadd.xlane.f32.xlu2 %v4798_v52 }
 0x473   :  { %v4724_v55 = vand.u32 2147483647, %v4720_v1  ;;  %v4721_v36 = vmax.f32 %v4720_v1, 0.0  ;;  %vm4722_vm2 = vcmp.ne.f32.partialorder %v4720_v1, %v4720_v1 }
 0x475   :  { %v4725_v3 = vsub.f32 0.0, %v4724_v55 }
 0x476   :  { %v4715_v28 = vpop.xlane.xlu0 %4714 }
 0x477   :  { %v4726_v38 = vmul.f32 1.442695, %v4725_v3  ;;  %v4719_v54 = vadd.f32 %v4717_v4, %v4715_v28 }
 0x479   :  { %7776 = vpow2.f32 %v4726_v38  ;;  %v4763_v13 = vand.u32 2147483647, %v4719_v54  ;;  %v4817_v25 = vmul.f32 1.442695, %v4719_v54  ;;  %v4760_v48 = vmax.f32 %v4719_v54, 0.0 }
 0x47a   :  { %vm4761_vm4 = vcmp.ne.f32.partialorder %v4719_v54, %v4719_v54 }
 0x47b   :  { %v4764_v20 = vsub.f32 0.0, %v4763_v13  ;;  %7778 = vpow2.f32 %v4817_v25 }
 0x47d   :  { %v4765_v22 = vmul.f32 1.442695, %v4764_v20 }
 0x47f   :  { %v7777_v9 = vpop.eup %7776  ;;  %7780 = vpow2.f32 %v4765_v22  ;;  %v4840_v22 = vlaneseq }
 0x480   :  { %v4728_v57 = vadd.f32 1.0, %v7777_v9  ;;  %v4731_v45 = vmul.f32 -0.5, %v7777_v9  ;;  %v4734_v59 = vand.u32 2147483647, %v7777_v9 }
 0x481   :  { %v7779_v40 = vpop.eup %7778 }
 0x482   :  { %v4819_v60 = vsel %vm4739_vm0, %v7779_v40, 0.0  ;;  %7782 = vlog2.f32 %v4728_v57  ;;  %v4732_v53 = vadd.f32 1.0, %v4731_v45  ;;  %vm4735_vm1 = vcmp.lt.f32.partialorder %v4734_v59, 0.0004427343 }
 0x483   :  { %4820 = vadd.xlane.f32.xlu2 %v4819_v60 }
 0x484   :  { %v4733_v15 = vmul.f32 %v7777_v9, %v4732_v53  ;;  %v4841_v9 = vand.u32 127, %v4840_v22 }
 0x485   :  { %v7781_v8 = vpop.eup %7780 }
 0x486   :  { %v4767_v63 = vadd.f32 1.0, %v7781_v8  ;;  %v4770_v35 = vmul.f32 -0.5, %v7781_v8  ;;  %v4773_v23 = vand.u32 2147483647, %v7781_v8  ;;  %vm4843_vm6 = vcmp.eq.s32.totalorder %v4841_v9, 1 }
 0x487   :  { %vm4842_vm7 = vcmp.eq.s32.totalorder %v4841_v9, 0 }
 0x488   :  { %v7783_v7 = vpop.eup %7782  ;;  %7784 = vlog2.f32 %v4767_v63  ;;  %v4771_v6 = vadd.f32 1.0, %v4770_v35  ;;  %vm4774_vm3 = vcmp.lt.f32.partialorder %v4773_v23, 0.0004427343 }
 0x489   :  { %v4730_v56 = vmul.f32 0.6931472, %v7783_v7  ;;  %7786 = vrcp.f32 %v7980_v18 }
 0x48a   :  { %v4772_v51 = vmul.f32 %v7781_v8, %v4771_v6 }
 0x48b   :  { %v4736_v5 = vsel %vm4735_vm1, %v4733_v15, %v4730_v56 }
 0x48c   :  { %v4737_v11 = vadd.f32 %v4736_v5, %v4721_v36 }
 0x48e   :  { %v7785_v2 = vpop.eup %7784  ;;  %v4738_v14 = vsel %vm4722_vm2, %v4720_v1, %v4737_v11 }
 0x48f   :  { %v4740_v27 = vsel %vm4739_vm0, %v4738_v14, 0.0  ;;  %v4769_v12 = vmul.f32 0.6931472, %v7785_v2  ;;  %v7787_v43 = vpop.eup %7786 }
 0x490   :  { %4741 = vadd.xlane.f32.xlu1 %v4740_v27  ;;  %v4751_v10 = vmul.f32 8.0, %v7787_v43  ;;  %vm4755_vm5 = vweird.f32 %v7787_v43 }
 0x491   :  { %v4775_v37 = vsel %vm4774_vm3, %v4772_v51, %v4769_v12 }
 0x492   :  { %v4776_v44 = vadd.f32 %v4775_v37, %v4760_v48  ;;  %v4752_v58 = vsub.f32 1.0, %v4751_v10 }
 0x494   :  { %v4777_v62 = vsel %vm4761_vm4, %v4719_v54, %v4776_v44  ;;  %v4753_v49 = vmul.f32 %v7787_v43, %v4752_v58 }
 0x495   :  { %v4778_v16 = vsel %vm4739_vm0, %v4777_v62, 0.0 }
 0x496   :  { %v4754_v31 = vadd.f32 %v7787_v43, %v4753_v49 }
 0x498   :  { %4779 = vadd.xlane.f32.xlu1 %v4778_v16  ;;  %v4756_v0 = vsel %vm4755_vm5, %v7787_v43, %v4754_v31 }
 0x4e5   :  { %v4800_v21 = vpop.xlane.xlu2 %4799 }
 0x4e6   :  { %v4801_v61 = vrot.slane %v4800_v21, 4 }
 0x4e8   :  { %v4802_v41 = vadd.f32 %v4801_v61, %v4800_v21 }
 0x4ea   :  { %v4803_v34 = vrot.slane %v4802_v41, 2 }
 0x4ec   :  { %v4804_v1 = vadd.f32 %v4803_v34, %v4802_v41 }
 0x4ee   :  { %v4805_v28 = vrot.slane %v4804_v1, 1 }
 0x4f0   :  { %v4806_v25 = vadd.f32 %v4805_v28, %v4804_v1 }
 0x4f6   :  { %v4821_v50 = vpop.xlane.xlu2 %4820 }
 0x4f7   :  { %v4822_v39 = vrot.slane %v4821_v50, 4 }
 0x4f9   :  { %v4823_v33 = vadd.f32 %v4822_v39, %v4821_v50 }
 0x4fb   :  { %v4824_v32 = vrot.slane %v4823_v33, 2 }
 0x4fd   :  { %v4825_v52 = vadd.f32 %v4824_v32, %v4823_v33 }
 0x4ff   :  { %v4826_v54 = vrot.slane %v4825_v52, 1 }
 0x501   :  { %v4827_v20 = vadd.f32 %v4826_v54, %v4825_v52 }
 0x503   :  { %v4742_v42 = vpop.xlane.xlu1 %4741 }
 0x504   :  { %v4743_v26 = vrot.slane %v4742_v42, 4 }
 0x506   :  { %v4744_v19 = vadd.f32 %v4743_v26, %v4742_v42 }
 0x508   :  { %v4745_v30 = vrot.slane %v4744_v19, 2 }
 0x50a   :  { %v4746_v17 = vadd.f32 %v4745_v30, %v4744_v19 }
 0x50b   :  { %v4780_v46 = vpop.xlane.xlu1 %4779 }
 0x50c   :  { %v4781_v24 = vrot.slane %v4780_v46, 4  ;;  %v4747_v29 = vrot.slane %v4746_v17, 1 }
 0x50e   :  { %v4782_v4 = vadd.f32 %v4781_v24, %v4780_v46  ;;  %v4748_v47 = vadd.f32 %v4747_v29, %v4746_v17 }
 0x510   :  { %v4783_v55 = vrot.slane %v4782_v4, 2  ;;  %7754 = vpush %v4748_v47 }
 0x511   :  { %7756 = vpush %v4756_v0 }
 0x512   :  { %v4784_v3 = vadd.f32 %v4783_v55, %v4782_v4 }
 0x514   :  { %v4785_v38 = vrot.slane %v4784_v3, 1 }
 0x516   :  { %v4786_v13 = vadd.f32 %v4785_v38, %v4784_v3 }
 0x518   :  { %7758 = vpush %v4786_v13 }
 0x519   :  { %7760 = vpush %v4806_v25 }
 0x51a   :  { %7762 = vpush %v4827_v20 }
 0x541   :  { %s7755_s6 = spop %7754 }
 0x542   :  { %s7757_s8 = spop %7756 }
 0x543   :  { %s4758_s9 = smul.f32 %s7757_s8, %s7755_s6 }
 0x545   :  { %s4759_s1 = ssub.f32 0.0, %s4758_s9 }
 0x549   :  { %s7759_s10 = spop %7758 }
 0x54a   :  { %s4796_s11 = smul.f32 %s7759_s10, %s7757_s8  ;;  %s7761_s12 = spop %7760 }
 0x54b   :  { %s4816_s13 = smul.f32 %s7761_s12, %s7757_s8  ;;  %s7763_s14 = spop %7762 }
 0x54c   :  { %s4837_s15 = smul.f32 %s7763_s14, %s7757_s8  ;;  %s4797_s17 = ssub.f32 %s4759_s1, %s4796_s11 }
 0x54e   :  { %s4838_s16 = ssub.f32 %s4816_s13, %s4837_s15  ;;  %v4846_v40 = vstv %s4797_s17 }
 0x550   :  { %s4839_s19 = sadd.f32 1.0, %s4838_s16 }
 0x552   :  { %v4844_v57 = vstv %s4839_s19 }
 0x553   :  { %v4845_v45 = vsel %vm4843_vm6, %v4844_v57, 0.0 }
 0x554   :  { %v4847_v60 = vsel %vm4842_vm7, %v4846_v40, %v4845_v45 }
 0x555   :  { %4848 = vst [vmem:[#allocation14] sm:$0x1] %v4847_v60 }
 0x556   :  { %4859 = dma.vmem_to_hbm [thread:$0]  %s4855_s3, 16, %s4857_s22, [#allocation5]  }
 0x557   :  { %7968 = dma.done.wait [#allocation5], 16  }
 0x558   :  { %7969 = vsyncadd [#allocation5], 4294967280 }
 0x559   :  { %4864 = vsyncpa [#allocation4], 1 }
 0x55a   :  { %4865 = vsyncpa [#allocation7], 1 }
 0x55b   :  { %4866 = vsyncpa [#allocation10], 1 }
 0x55c   :  { %4867 = vsyncpa [#allocation13], 1 }
 0x55d   :  { %4868 = vsyncpa [#allocation5], 1 }

</bundles_post_ra>
